<compile_context>
chip_gen: v7x
topology: tpu7x:2x2x1
jax: 0.10.0
libtpu: 0.0.40
codegen_flags: <defaults>
</compile_context>

<pallas_src>
import functools

import jax
import jax.numpy as jnp
from jax.experimental import pallas as pl
from jax.experimental.pallas import tpu as pltpu


# ----------------------------------------------------------------------------
# Fused whole-network kernel
# ----------------------------------------------------------------------------
def _sae_fc_kernel(x_ref, *rest, layer_dims, lif_after, l2_after, T, Bb,
                   lif_first, v_init, v_decay, v_threshold, eps):
    """One batch-block of the full SAE_fc_only forward, fully VMEM-resident.

    x_ref : (T, Bb, C_in)           time-major input block
    rest  : n_layers weight refs (c_in, c_out) bf16,
            then o_ref (T, Bb, C_out), then h_ref scratch (T*Bb, C_max) f32
    """
    n_layers = len(layer_dims)
    w_refs = rest[:n_layers]
    o_ref = rest[n_layers]
    h_ref = rest[n_layers + 1]          # VMEM scratch, activations stay here

    c0 = x_ref.shape[-1]
    out_dim = o_ref.shape[-1]

    def lif_step(v, cur):
        v = v * v_decay + cur
        spike = (v >= v_threshold).astype(jnp.float32)
        v = v - spike * v_threshold     # subtractive (soft) reset
        return v, spike

    # ---- optional LIF on the raw input (lif_add_at_first) ----
    v = jnp.full((Bb, c0), v_init, dtype=jnp.float32)
    for t in range(T):                  # T is small & static -> unrolled
        cur = x_ref[t].astype(jnp.float32)              # (Bb, c0)
        if lif_first:
            v, cur = lif_step(v, cur)
        h_ref[t * Bb:(t + 1) * Bb, :c0] = cur

    # ---- FC layers (encoder + decoder), one MXU matmul each ----
    for li, (c_in, c_out) in enumerate(layer_dims):
        hv = h_ref[:, :c_in]                                    # (T*Bb, c_in)
        z = jnp.dot(hv.astype(jnp.bfloat16), w_refs[li][...],
                    preferred_element_type=jnp.float32)         # bf16 MXU, f32 acc
        h_ref[:, :c_out] = z

        if lif_after[li]:
            v = jnp.full((Bb, c_out), v_init, dtype=jnp.float32)
            for t in range(T):
                cur = h_ref[t * Bb:(t + 1) * Bb, :c_out]
                v, spike = lif_step(v, cur)
                h_ref[t * Bb:(t + 1) * Bb, :c_out] = spike

        if li == l2_after:
            # SSBH_L2NormLayer: x / (||x||_2 + eps)  (eps added, not clamped)
            hv = h_ref[:, :c_out]
            ss = jnp.sum(hv * hv, axis=1, keepdims=True)
            inv = pl.reciprocal(jnp.sqrt(ss) + eps, approx=True)   # EUP slot
            h_ref[:, :c_out] = hv * inv

    # ---- write (T, Bb, out_dim) output block ----
    for t in range(T):
        o_ref[t] = h_ref[t * Bb:(t + 1) * Bb, :out_dim]


# ----------------------------------------------------------------------------
# Host-side wrapper
# ----------------------------------------------------------------------------
def _pick_batch_block(B, max_bb=64):
    """Full batch if tiny, else the largest multiple-of-8 divisor (<= max_bb)."""
    if B <= 8:
        return B                        # full-dim block: exempt from 8-row rule
    for bb in (max_bb, 32, 16, 8):
        if bb <= B and B % bb == 0:
            return bb
    return B


def sae_fc_only_forward(x, weights, *, encoder_ch, decoder_ch, in_channels,
                        TIME=10, v_init=0.0, v_decay=0.5, v_threshold=0.75,
                        v_reset=10000.0, lif_add_at_first=True,
                        sae_l2_norm_bridge=True, eps=1e-12):
    """x: (B, TIME, in_channels) -> (B, TIME, decoder_ch[-1]) float32."""
    del v_reset    # subtractive reset used; see TODO(synk) in the kernel
    assert list(decoder_ch) == list(encoder_ch[:-1][::-1]) + [in_channels]
    B, T, C_in = x.shape
    assert T == TIME and C_in == in_channels

    # layer table: (c_in, c_out) + whether a LIF follows (all enc, dec except last)
    dims, lif_after = [], []
    past = in_channels
    for c in list(encoder_ch):
        dims.append((past, c)); lif_after.append(True); past = c
    for i, c in enumerate(list(decoder_ch)):
        dims.append((past, c)); lif_after.append(i != len(decoder_ch) - 1); past = c
    l2_after = len(encoder_ch) - 1 if sae_l2_norm_bridge else -1
    out_dim = decoder_ch[-1]
    c_max = max([in_channels, out_dim] + [c for _, c in dims])

    # Time-major layout = the module's first SSBH_DimChanger_one_two.
    x_tm = jnp.transpose(x, (1, 0, 2)).astype(jnp.float32)        # (T, B, C_in)
    # Pre-transposed (in, out) bf16 weights: halves weight DMA, feeds MXU bf16 path.
    w_tm = [jnp.transpose(w).astype(jnp.bfloat16) for w in weights]

    Bb = _pick_batch_block(B)
    grid = (B // Bb,)

    in_specs = [pl.BlockSpec((T, Bb, C_in), lambda i: (0, i, 0))]
    for (ci, co) in dims:
        in_specs.append(pl.BlockSpec((ci, co), lambda i: (0, 0)))
    out_specs = pl.BlockSpec((T, Bb, out_dim), lambda i: (0, i, 0))

    kernel = functools.partial(
        _sae_fc_kernel, layer_dims=tuple(dims), lif_after=tuple(lif_after),
        l2_after=l2_after, T=T, Bb=Bb, lif_first=lif_add_at_first,
        v_init=v_init, v_decay=v_decay, v_threshold=v_threshold, eps=eps)

    out_tm = pl.pallas_call(
        kernel,
        out_shape=jax.ShapeDtypeStruct((T, B, out_dim), jnp.float32),
        grid=grid,
        in_specs=in_specs,
        out_specs=out_specs,
        scratch_shapes=[pltpu.VMEM((T * Bb, c_max), jnp.float32)],
        compiler_params=pltpu.CompilerParams(
            dimension_semantics=("parallel",)),   # megacore-shardable batch axis
    )(x_tm, *w_tm)

    return jnp.transpose(out_tm, (1, 0, 2))        # final DimChanger -> (B, T, out)


# ----------------------------------------------------------------------------
# Parameters (torch nn.Linear layout (out, in), no bias)
# ----------------------------------------------------------------------------
def init_sae_fc_params(key, encoder_ch, decoder_ch, in_channels):
    dims = []
    past = in_channels
    for c in list(encoder_ch) + list(decoder_ch):
        dims.append((past, c)); past = c
    keys = jax.random.split(key, len(dims))
    weights = []
    for k, (ci, co) in zip(keys, dims):
        bound = 1.0 / (ci ** 0.5)       # torch Linear default kaiming_uniform(a=sqrt(5))
        weights.append(jax.random.uniform(k, (co, ci), jnp.float32, -bound, bound))
    return weights


# ----------------------------------------------------------------------------
if __name__ == "__main__":
    ENCODER_CH = [96, 64, 32, 4]
    DECODER_CH = [32, 64, 96, 50]
    IN_CHANNELS = 50   # module asserts decoder_ch == encoder_ch[:-1][::-1] + [in_channels]
    TIME = 10
    BATCH = 2

    key = jax.random.PRNGKey(0)
    wkey, xkey = jax.random.split(key)
    weights = init_sae_fc_params(wkey, ENCODER_CH, DECODER_CH, IN_CHANNELS)

    x = jax.random.normal(xkey, (BATCH, TIME, IN_CHANNELS), jnp.float32)

    fwd = jax.jit(functools.partial(
        sae_fc_only_forward, encoder_ch=ENCODER_CH, decoder_ch=DECODER_CH,
        in_channels=IN_CHANNELS, TIME=TIME))
    y = fwd(x, weights)
    jax.block_until_ready(y)

    assert y.shape == (BATCH, TIME, DECODER_CH[-1]), y.shape
    assert bool(jnp.all(jnp.isfinite(y)))
    print("KERNEL_OK")
</pallas_src>

<mosaic_0001>
module attributes {stable_mosaic.version = 11 : i64} {
  func.func @_sae_fc_kernel(%arg0: i32, %arg1: memref<10x2x50xf32, #tpu.memory_space<vmem>>, %arg2: memref<50x96xbf16, #tpu.memory_space<vmem>>, %arg3: memref<96x64xbf16, #tpu.memory_space<vmem>>, %arg4: memref<64x32xbf16, #tpu.memory_space<vmem>>, %arg5: memref<32x4xbf16, #tpu.memory_space<vmem>>, %arg6: memref<4x32xbf16, #tpu.memory_space<vmem>>, %arg7: memref<32x64xbf16, #tpu.memory_space<vmem>>, %arg8: memref<64x96xbf16, #tpu.memory_space<vmem>>, %arg9: memref<96x50xbf16, #tpu.memory_space<vmem>>, %arg10: memref<10x2x50xf32, #tpu.memory_space<vmem>>, %arg11: memref<20x96xf32, #tpu.memory_space<vmem>>) attributes {dimension_semantics = [#tpu.dimension_semantics<parallel>], iteration_bounds = array<i64: 1>, scalar_prefetch = 0 : i64, scratch_operands = 1 : i64, tpu.core_type = #tpu.core_type<tc>, window_params = [{transform_indices = @transform_0, window_bounds = array<i64: 10, 2, 50>}, {pipeline_mode = #tpu.pipeline_mode<synchronous>, transform_indices = @transform_1, window_bounds = array<i64: 50, 96>}, {pipeline_mode = #tpu.pipeline_mode<synchronous>, transform_indices = @transform_2, window_bounds = array<i64: 96, 64>}, {pipeline_mode = #tpu.pipeline_mode<synchronous>, transform_indices = @transform_3, window_bounds = array<i64: 64, 32>}, {pipeline_mode = #tpu.pipeline_mode<synchronous>, transform_indices = @transform_4, window_bounds = array<i64: 32, 4>}, {pipeline_mode = #tpu.pipeline_mode<synchronous>, transform_indices = @transform_5, window_bounds = array<i64: 4, 32>}, {pipeline_mode = #tpu.pipeline_mode<synchronous>, transform_indices = @transform_6, window_bounds = array<i64: 32, 64>}, {pipeline_mode = #tpu.pipeline_mode<synchronous>, transform_indices = @transform_7, window_bounds = array<i64: 64, 96>}, {pipeline_mode = #tpu.pipeline_mode<synchronous>, transform_indices = @transform_8, window_bounds = array<i64: 96, 50>}, {transform_indices = @transform_9, window_bounds = array<i64: 10, 2, 50>}]} {
    %cst = arith.constant 0.000000e+00 : f32
    %0 = vector.broadcast %cst : f32 to vector<2x50xf32>
    %c0 = arith.constant 0 : index
    %c0_0 = arith.constant 0 : index
    %c0_1 = arith.constant 0 : index
    %1 = vector.load %arg1[%c0, %c0_0, %c0_1] : memref<10x2x50xf32, #tpu.memory_space<vmem>>, vector<1x2x50xf32>
    %2 = vector.shape_cast %1 : vector<1x2x50xf32> to vector<2x50xf32>
    %cst_2 = arith.constant 5.000000e-01 : f32
    %3 = vector.broadcast %cst_2 : f32 to vector<2x50xf32>
    %4 = arith.mulf %0, %3 : vector<2x50xf32>
    %5 = arith.addf %4, %2 : vector<2x50xf32>
    %cst_3 = arith.constant 7.500000e-01 : f32
    %6 = vector.broadcast %cst_3 : f32 to vector<2x50xf32>
    %7 = arith.cmpf oge, %5, %6 : vector<2x50xf32>
    %8 = arith.extui %7 : vector<2x50xi1> to vector<2x50xi32>
    %9 = arith.sitofp %8 : vector<2x50xi32> to vector<2x50xf32>
    %cst_4 = arith.constant 7.500000e-01 : f32
    %10 = vector.broadcast %cst_4 : f32 to vector<2x50xf32>
    %11 = arith.mulf %9, %10 : vector<2x50xf32>
    %12 = arith.subf %5, %11 : vector<2x50xf32>
    %c0_5 = arith.constant 0 : index
    %c0_6 = arith.constant 0 : index
    %13 = vector.load %arg11[%c0_5, %c0_6] : memref<20x96xf32, #tpu.memory_space<vmem>>, vector<2x50xf32>
    tpu.vector_store %arg11[%c0_5, %c0_6], %9 {strides = array<i32>} : memref<20x96xf32, #tpu.memory_space<vmem>>, vector<2x50xf32>,
    %c1 = arith.constant 1 : index
    %c0_7 = arith.constant 0 : index
    %c0_8 = arith.constant 0 : index
    %14 = vector.load %arg1[%c1, %c0_7, %c0_8] : memref<10x2x50xf32, #tpu.memory_space<vmem>>, vector<1x2x50xf32>
    %15 = vector.shape_cast %14 : vector<1x2x50xf32> to vector<2x50xf32>
    %cst_9 = arith.constant 5.000000e-01 : f32
    %16 = vector.broadcast %cst_9 : f32 to vector<2x50xf32>
    %17 = arith.mulf %12, %16 : vector<2x50xf32>
    %18 = arith.addf %17, %15 : vector<2x50xf32>
    %cst_10 = arith.constant 7.500000e-01 : f32
    %19 = vector.broadcast %cst_10 : f32 to vector<2x50xf32>
    %20 = arith.cmpf oge, %18, %19 : vector<2x50xf32>
    %21 = arith.extui %20 : vector<2x50xi1> to vector<2x50xi32>
    %22 = arith.sitofp %21 : vector<2x50xi32> to vector<2x50xf32>
    %cst_11 = arith.constant 7.500000e-01 : f32
    %23 = vector.broadcast %cst_11 : f32 to vector<2x50xf32>
    %24 = arith.mulf %22, %23 : vector<2x50xf32>
    %25 = arith.subf %18, %24 : vector<2x50xf32>
    %c2 = arith.constant 2 : index
    %c0_12 = arith.constant 0 : index
    %26 = vector.load %arg11[%c2, %c0_12] : memref<20x96xf32, #tpu.memory_space<vmem>>, vector<2x50xf32>
    tpu.vector_store %arg11[%c2, %c0_12], %22 {strides = array<i32>} : memref<20x96xf32, #tpu.memory_space<vmem>>, vector<2x50xf32>,
    %c2_13 = arith.constant 2 : index
    %c0_14 = arith.constant 0 : index
    %c0_15 = arith.constant 0 : index
    %27 = vector.load %arg1[%c2_13, %c0_14, %c0_15] : memref<10x2x50xf32, #tpu.memory_space<vmem>>, vector<1x2x50xf32>
    %28 = vector.shape_cast %27 : vector<1x2x50xf32> to vector<2x50xf32>
    %cst_16 = arith.constant 5.000000e-01 : f32
    %29 = vector.broadcast %cst_16 : f32 to vector<2x50xf32>
    %30 = arith.mulf %25, %29 : vector<2x50xf32>
    %31 = arith.addf %30, %28 : vector<2x50xf32>
    %cst_17 = arith.constant 7.500000e-01 : f32
    %32 = vector.broadcast %cst_17 : f32 to vector<2x50xf32>
    %33 = arith.cmpf oge, %31, %32 : vector<2x50xf32>
    %34 = arith.extui %33 : vector<2x50xi1> to vector<2x50xi32>
    %35 = arith.sitofp %34 : vector<2x50xi32> to vector<2x50xf32>
    %cst_18 = arith.constant 7.500000e-01 : f32
    %36 = vector.broadcast %cst_18 : f32 to vector<2x50xf32>
    %37 = arith.mulf %35, %36 : vector<2x50xf32>
    %38 = arith.subf %31, %37 : vector<2x50xf32>
    %c4 = arith.constant 4 : index
    %c0_19 = arith.constant 0 : index
    %39 = vector.load %arg11[%c4, %c0_19] : memref<20x96xf32, #tpu.memory_space<vmem>>, vector<2x50xf32>
    tpu.vector_store %arg11[%c4, %c0_19], %35 {strides = array<i32>} : memref<20x96xf32, #tpu.memory_space<vmem>>, vector<2x50xf32>,
    %c3 = arith.constant 3 : index
    %c0_20 = arith.constant 0 : index
    %c0_21 = arith.constant 0 : index
    %40 = vector.load %arg1[%c3, %c0_20, %c0_21] : memref<10x2x50xf32, #tpu.memory_space<vmem>>, vector<1x2x50xf32>
    %41 = vector.shape_cast %40 : vector<1x2x50xf32> to vector<2x50xf32>
    %cst_22 = arith.constant 5.000000e-01 : f32
    %42 = vector.broadcast %cst_22 : f32 to vector<2x50xf32>
    %43 = arith.mulf %38, %42 : vector<2x50xf32>
    %44 = arith.addf %43, %41 : vector<2x50xf32>
    %cst_23 = arith.constant 7.500000e-01 : f32
    %45 = vector.broadcast %cst_23 : f32 to vector<2x50xf32>
    %46 = arith.cmpf oge, %44, %45 : vector<2x50xf32>
    %47 = arith.extui %46 : vector<2x50xi1> to vector<2x50xi32>
    %48 = arith.sitofp %47 : vector<2x50xi32> to vector<2x50xf32>
    %cst_24 = arith.constant 7.500000e-01 : f32
    %49 = vector.broadcast %cst_24 : f32 to vector<2x50xf32>
    %50 = arith.mulf %48, %49 : vector<2x50xf32>
    %51 = arith.subf %44, %50 : vector<2x50xf32>
    %c6 = arith.constant 6 : index
    %c0_25 = arith.constant 0 : index
    %52 = vector.load %arg11[%c6, %c0_25] : memref<20x96xf32, #tpu.memory_space<vmem>>, vector<2x50xf32>
    tpu.vector_store %arg11[%c6, %c0_25], %48 {strides = array<i32>} : memref<20x96xf32, #tpu.memory_space<vmem>>, vector<2x50xf32>,
    %c4_26 = arith.constant 4 : index
    %c0_27 = arith.constant 0 : index
    %c0_28 = arith.constant 0 : index
    %53 = vector.load %arg1[%c4_26, %c0_27, %c0_28] : memref<10x2x50xf32, #tpu.memory_space<vmem>>, vector<1x2x50xf32>
    %54 = vector.shape_cast %53 : vector<1x2x50xf32> to vector<2x50xf32>
    %cst_29 = arith.constant 5.000000e-01 : f32
    %55 = vector.broadcast %cst_29 : f32 to vector<2x50xf32>
    %56 = arith.mulf %51, %55 : vector<2x50xf32>
    %57 = arith.addf %56, %54 : vector<2x50xf32>
    %cst_30 = arith.constant 7.500000e-01 : f32
    %58 = vector.broadcast %cst_30 : f32 to vector<2x50xf32>
    %59 = arith.cmpf oge, %57, %58 : vector<2x50xf32>
    %60 = arith.extui %59 : vector<2x50xi1> to vector<2x50xi32>
    %61 = arith.sitofp %60 : vector<2x50xi32> to vector<2x50xf32>
    %cst_31 = arith.constant 7.500000e-01 : f32
    %62 = vector.broadcast %cst_31 : f32 to vector<2x50xf32>
    %63 = arith.mulf %61, %62 : vector<2x50xf32>
    %64 = arith.subf %57, %63 : vector<2x50xf32>
    %c8 = arith.constant 8 : index
    %c0_32 = arith.constant 0 : index
    %65 = vector.load %arg11[%c8, %c0_32] : memref<20x96xf32, #tpu.memory_space<vmem>>, vector<2x50xf32>
    tpu.vector_store %arg11[%c8, %c0_32], %61 {strides = array<i32>} : memref<20x96xf32, #tpu.memory_space<vmem>>, vector<2x50xf32>,
    %c5 = arith.constant 5 : index
    %c0_33 = arith.constant 0 : index
    %c0_34 = arith.constant 0 : index
    %66 = vector.load %arg1[%c5, %c0_33, %c0_34] : memref<10x2x50xf32, #tpu.memory_space<vmem>>, vector<1x2x50xf32>
    %67 = vector.shape_cast %66 : vector<1x2x50xf32> to vector<2x50xf32>
    %cst_35 = arith.constant 5.000000e-01 : f32
    %68 = vector.broadcast %cst_35 : f32 to vector<2x50xf32>
    %69 = arith.mulf %64, %68 : vector<2x50xf32>
    %70 = arith.addf %69, %67 : vector<2x50xf32>
    %cst_36 = arith.constant 7.500000e-01 : f32
    %71 = vector.broadcast %cst_36 : f32 to vector<2x50xf32>
    %72 = arith.cmpf oge, %70, %71 : vector<2x50xf32>
    %73 = arith.extui %72 : vector<2x50xi1> to vector<2x50xi32>
    %74 = arith.sitofp %73 : vector<2x50xi32> to vector<2x50xf32>
    %cst_37 = arith.constant 7.500000e-01 : f32
    %75 = vector.broadcast %cst_37 : f32 to vector<2x50xf32>
    %76 = arith.mulf %74, %75 : vector<2x50xf32>
    %77 = arith.subf %70, %76 : vector<2x50xf32>
    %c10 = arith.constant 10 : index
    %c0_38 = arith.constant 0 : index
    %78 = vector.load %arg11[%c10, %c0_38] : memref<20x96xf32, #tpu.memory_space<vmem>>, vector<2x50xf32>
    tpu.vector_store %arg11[%c10, %c0_38], %74 {strides = array<i32>} : memref<20x96xf32, #tpu.memory_space<vmem>>, vector<2x50xf32>,
    %c6_39 = arith.constant 6 : index
    %c0_40 = arith.constant 0 : index
    %c0_41 = arith.constant 0 : index
    %79 = vector.load %arg1[%c6_39, %c0_40, %c0_41] : memref<10x2x50xf32, #tpu.memory_space<vmem>>, vector<1x2x50xf32>
    %80 = vector.shape_cast %79 : vector<1x2x50xf32> to vector<2x50xf32>
    %cst_42 = arith.constant 5.000000e-01 : f32
    %81 = vector.broadcast %cst_42 : f32 to vector<2x50xf32>
    %82 = arith.mulf %77, %81 : vector<2x50xf32>
    %83 = arith.addf %82, %80 : vector<2x50xf32>
    %cst_43 = arith.constant 7.500000e-01 : f32
    %84 = vector.broadcast %cst_43 : f32 to vector<2x50xf32>
    %85 = arith.cmpf oge, %83, %84 : vector<2x50xf32>
    %86 = arith.extui %85 : vector<2x50xi1> to vector<2x50xi32>
    %87 = arith.sitofp %86 : vector<2x50xi32> to vector<2x50xf32>
    %cst_44 = arith.constant 7.500000e-01 : f32
    %88 = vector.broadcast %cst_44 : f32 to vector<2x50xf32>
    %89 = arith.mulf %87, %88 : vector<2x50xf32>
    %90 = arith.subf %83, %89 : vector<2x50xf32>
    %c12 = arith.constant 12 : index
    %c0_45 = arith.constant 0 : index
    %91 = vector.load %arg11[%c12, %c0_45] : memref<20x96xf32, #tpu.memory_space<vmem>>, vector<2x50xf32>
    tpu.vector_store %arg11[%c12, %c0_45], %87 {strides = array<i32>} : memref<20x96xf32, #tpu.memory_space<vmem>>, vector<2x50xf32>,
    %c7 = arith.constant 7 : index
    %c0_46 = arith.constant 0 : index
    %c0_47 = arith.constant 0 : index
    %92 = vector.load %arg1[%c7, %c0_46, %c0_47] : memref<10x2x50xf32, #tpu.memory_space<vmem>>, vector<1x2x50xf32>
    %93 = vector.shape_cast %92 : vector<1x2x50xf32> to vector<2x50xf32>
    %cst_48 = arith.constant 5.000000e-01 : f32
    %94 = vector.broadcast %cst_48 : f32 to vector<2x50xf32>
    %95 = arith.mulf %90, %94 : vector<2x50xf32>
    %96 = arith.addf %95, %93 : vector<2x50xf32>
    %cst_49 = arith.constant 7.500000e-01 : f32
    %97 = vector.broadcast %cst_49 : f32 to vector<2x50xf32>
    %98 = arith.cmpf oge, %96, %97 : vector<2x50xf32>
    %99 = arith.extui %98 : vector<2x50xi1> to vector<2x50xi32>
    %100 = arith.sitofp %99 : vector<2x50xi32> to vector<2x50xf32>
    %cst_50 = arith.constant 7.500000e-01 : f32
    %101 = vector.broadcast %cst_50 : f32 to vector<2x50xf32>
    %102 = arith.mulf %100, %101 : vector<2x50xf32>
    %103 = arith.subf %96, %102 : vector<2x50xf32>
    %c14 = arith.constant 14 : index
    %c0_51 = arith.constant 0 : index
    %104 = vector.load %arg11[%c14, %c0_51] : memref<20x96xf32, #tpu.memory_space<vmem>>, vector<2x50xf32>
    tpu.vector_store %arg11[%c14, %c0_51], %100 {strides = array<i32>} : memref<20x96xf32, #tpu.memory_space<vmem>>, vector<2x50xf32>,
    %c8_52 = arith.constant 8 : index
    %c0_53 = arith.constant 0 : index
    %c0_54 = arith.constant 0 : index
    %105 = vector.load %arg1[%c8_52, %c0_53, %c0_54] : memref<10x2x50xf32, #tpu.memory_space<vmem>>, vector<1x2x50xf32>
    %106 = vector.shape_cast %105 : vector<1x2x50xf32> to vector<2x50xf32>
    %cst_55 = arith.constant 5.000000e-01 : f32
    %107 = vector.broadcast %cst_55 : f32 to vector<2x50xf32>
    %108 = arith.mulf %103, %107 : vector<2x50xf32>
    %109 = arith.addf %108, %106 : vector<2x50xf32>
    %cst_56 = arith.constant 7.500000e-01 : f32
    %110 = vector.broadcast %cst_56 : f32 to vector<2x50xf32>
    %111 = arith.cmpf oge, %109, %110 : vector<2x50xf32>
    %112 = arith.extui %111 : vector<2x50xi1> to vector<2x50xi32>
    %113 = arith.sitofp %112 : vector<2x50xi32> to vector<2x50xf32>
    %cst_57 = arith.constant 7.500000e-01 : f32
    %114 = vector.broadcast %cst_57 : f32 to vector<2x50xf32>
    %115 = arith.mulf %113, %114 : vector<2x50xf32>
    %116 = arith.subf %109, %115 : vector<2x50xf32>
    %c16 = arith.constant 16 : index
    %c0_58 = arith.constant 0 : index
    %117 = vector.load %arg11[%c16, %c0_58] : memref<20x96xf32, #tpu.memory_space<vmem>>, vector<2x50xf32>
    tpu.vector_store %arg11[%c16, %c0_58], %113 {strides = array<i32>} : memref<20x96xf32, #tpu.memory_space<vmem>>, vector<2x50xf32>,
    %c9 = arith.constant 9 : index
    %c0_59 = arith.constant 0 : index
    %c0_60 = arith.constant 0 : index
    %118 = vector.load %arg1[%c9, %c0_59, %c0_60] : memref<10x2x50xf32, #tpu.memory_space<vmem>>, vector<1x2x50xf32>
    %119 = vector.shape_cast %118 : vector<1x2x50xf32> to vector<2x50xf32>
    %cst_61 = arith.constant 5.000000e-01 : f32
    %120 = vector.broadcast %cst_61 : f32 to vector<2x50xf32>
    %121 = arith.mulf %116, %120 : vector<2x50xf32>
    %122 = arith.addf %121, %119 : vector<2x50xf32>
    %cst_62 = arith.constant 7.500000e-01 : f32
    %123 = vector.broadcast %cst_62 : f32 to vector<2x50xf32>
    %124 = arith.cmpf oge, %122, %123 : vector<2x50xf32>
    %125 = arith.extui %124 : vector<2x50xi1> to vector<2x50xi32>
    %126 = arith.sitofp %125 : vector<2x50xi32> to vector<2x50xf32>
    %c18 = arith.constant 18 : index
    %c0_63 = arith.constant 0 : index
    %127 = vector.load %arg11[%c18, %c0_63] : memref<20x96xf32, #tpu.memory_space<vmem>>, vector<2x50xf32>
    tpu.vector_store %arg11[%c18, %c0_63], %126 {strides = array<i32>} : memref<20x96xf32, #tpu.memory_space<vmem>>, vector<2x50xf32>,
    %c0_64 = arith.constant 0 : index
    %c0_65 = arith.constant 0 : index
    %128 = vector.load %arg11[%c0_64, %c0_65] : memref<20x96xf32, #tpu.memory_space<vmem>>, vector<20x50xf32>
    %129 = arith.truncf %128 : vector<20x50xf32> to vector<20x50xbf16>
    %c0_66 = arith.constant 0 : index
    %c0_67 = arith.constant 0 : index
    %130 = vector.load %arg2[%c0_66, %c0_67] : memref<50x96xbf16, #tpu.memory_space<vmem>>, vector<50x96xbf16>
    %cst_68 = arith.constant dense<0.000000e+00> : vector<20x96xf32>
    %131 = tpu.matmul %129, %130, %cst_68 {dimension_numbers = #tpu.dot_dimension_numbers<[1], [0], [0], [1], [0, 0, 1, 1], [], []>} : vector<20x50xbf16>, vector<50x96xbf16>, vector<20x96xf32> -> vector<20x96xf32>
    %c0_69 = arith.constant 0 : index
    %c0_70 = arith.constant 0 : index
    %132 = vector.load %arg11[%c0_69, %c0_70] : memref<20x96xf32, #tpu.memory_space<vmem>>, vector<20x96xf32>
    tpu.vector_store %arg11[%c0_69, %c0_70], %131 {strides = array<i32>} : memref<20x96xf32, #tpu.memory_space<vmem>>, vector<20x96xf32>,
    %cst_71 = arith.constant 0.000000e+00 : f32
    %133 = vector.broadcast %cst_71 : f32 to vector<2x96xf32>
    %c0_72 = arith.constant 0 : index
    %c0_73 = arith.constant 0 : index
    %134 = vector.load %arg11[%c0_72, %c0_73] : memref<20x96xf32, #tpu.memory_space<vmem>>, vector<2x96xf32>
    %cst_74 = arith.constant 5.000000e-01 : f32
    %135 = vector.broadcast %cst_74 : f32 to vector<2x96xf32>
    %136 = arith.mulf %133, %135 : vector<2x96xf32>
    %137 = arith.addf %136, %134 : vector<2x96xf32>
    %cst_75 = arith.constant 7.500000e-01 : f32
    %138 = vector.broadcast %cst_75 : f32 to vector<2x96xf32>
    %139 = arith.cmpf oge, %137, %138 : vector<2x96xf32>
    %140 = arith.extui %139 : vector<2x96xi1> to vector<2x96xi32>
    %141 = arith.sitofp %140 : vector<2x96xi32> to vector<2x96xf32>
    %cst_76 = arith.constant 7.500000e-01 : f32
    %142 = vector.broadcast %cst_76 : f32 to vector<2x96xf32>
    %143 = arith.mulf %141, %142 : vector<2x96xf32>
    %144 = arith.subf %137, %143 : vector<2x96xf32>
    %c0_77 = arith.constant 0 : index
    %c0_78 = arith.constant 0 : index
    %145 = vector.load %arg11[%c0_77, %c0_78] : memref<20x96xf32, #tpu.memory_space<vmem>>, vector<2x96xf32>
    tpu.vector_store %arg11[%c0_77, %c0_78], %141 {strides = array<i32>} : memref<20x96xf32, #tpu.memory_space<vmem>>, vector<2x96xf32>,
    %c2_79 = arith.constant 2 : index
    %c0_80 = arith.constant 0 : index
    %146 = vector.load %arg11[%c2_79, %c0_80] : memref<20x96xf32, #tpu.memory_space<vmem>>, vector<2x96xf32>
    %cst_81 = arith.constant 5.000000e-01 : f32
    %147 = vector.broadcast %cst_81 : f32 to vector<2x96xf32>
    %148 = arith.mulf %144, %147 : vector<2x96xf32>
    %149 = arith.addf %148, %146 : vector<2x96xf32>
    %cst_82 = arith.constant 7.500000e-01 : f32
    %150 = vector.broadcast %cst_82 : f32 to vector<2x96xf32>
    %151 = arith.cmpf oge, %149, %150 : vector<2x96xf32>
    %152 = arith.extui %151 : vector<2x96xi1> to vector<2x96xi32>
    %153 = arith.sitofp %152 : vector<2x96xi32> to vector<2x96xf32>
    %cst_83 = arith.constant 7.500000e-01 : f32
    %154 = vector.broadcast %cst_83 : f32 to vector<2x96xf32>
    %155 = arith.mulf %153, %154 : vector<2x96xf32>
    %156 = arith.subf %149, %155 : vector<2x96xf32>
    %c2_84 = arith.constant 2 : index
    %c0_85 = arith.constant 0 : index
    %157 = vector.load %arg11[%c2_84, %c0_85] : memref<20x96xf32, #tpu.memory_space<vmem>>, vector<2x96xf32>
    tpu.vector_store %arg11[%c2_84, %c0_85], %153 {strides = array<i32>} : memref<20x96xf32, #tpu.memory_space<vmem>>, vector<2x96xf32>,
    %c4_86 = arith.constant 4 : index
    %c0_87 = arith.constant 0 : index
    %158 = vector.load %arg11[%c4_86, %c0_87] : memref<20x96xf32, #tpu.memory_space<vmem>>, vector<2x96xf32>
    %cst_88 = arith.constant 5.000000e-01 : f32
    %159 = vector.broadcast %cst_88 : f32 to vector<2x96xf32>
    %160 = arith.mulf %156, %159 : vector<2x96xf32>
    %161 = arith.addf %160, %158 : vector<2x96xf32>
    %cst_89 = arith.constant 7.500000e-01 : f32
    %162 = vector.broadcast %cst_89 : f32 to vector<2x96xf32>
    %163 = arith.cmpf oge, %161, %162 : vector<2x96xf32>
    %164 = arith.extui %163 : vector<2x96xi1> to vector<2x96xi32>
    %165 = arith.sitofp %164 : vector<2x96xi32> to vector<2x96xf32>
    %cst_90 = arith.constant 7.500000e-01 : f32
    %166 = vector.broadcast %cst_90 : f32 to vector<2x96xf32>
    %167 = arith.mulf %165, %166 : vector<2x96xf32>
    %168 = arith.subf %161, %167 : vector<2x96xf32>
    %c4_91 = arith.constant 4 : index
    %c0_92 = arith.constant 0 : index
    %169 = vector.load %arg11[%c4_91, %c0_92] : memref<20x96xf32, #tpu.memory_space<vmem>>, vector<2x96xf32>
    tpu.vector_store %arg11[%c4_91, %c0_92], %165 {strides = array<i32>} : memref<20x96xf32, #tpu.memory_space<vmem>>, vector<2x96xf32>,
    %c6_93 = arith.constant 6 : index
    %c0_94 = arith.constant 0 : index
    %170 = vector.load %arg11[%c6_93, %c0_94] : memref<20x96xf32, #tpu.memory_space<vmem>>, vector<2x96xf32>
    %cst_95 = arith.constant 5.000000e-01 : f32
    %171 = vector.broadcast %cst_95 : f32 to vector<2x96xf32>
    %172 = arith.mulf %168, %171 : vector<2x96xf32>
    %173 = arith.addf %172, %170 : vector<2x96xf32>
    %cst_96 = arith.constant 7.500000e-01 : f32
    %174 = vector.broadcast %cst_96 : f32 to vector<2x96xf32>
    %175 = arith.cmpf oge, %173, %174 : vector<2x96xf32>
    %176 = arith.extui %175 : vector<2x96xi1> to vector<2x96xi32>
    %177 = arith.sitofp %176 : vector<2x96xi32> to vector<2x96xf32>
    %cst_97 = arith.constant 7.500000e-01 : f32
    %178 = vector.broadcast %cst_97 : f32 to vector<2x96xf32>
    %179 = arith.mulf %177, %178 : vector<2x96xf32>
    %180 = arith.subf %173, %179 : vector<2x96xf32>
    %c6_98 = arith.constant 6 : index
    %c0_99 = arith.constant 0 : index
    %181 = vector.load %arg11[%c6_98, %c0_99] : memref<20x96xf32, #tpu.memory_space<vmem>>, vector<2x96xf32>
    tpu.vector_store %arg11[%c6_98, %c0_99], %177 {strides = array<i32>} : memref<20x96xf32, #tpu.memory_space<vmem>>, vector<2x96xf32>,
    %c8_100 = arith.constant 8 : index
    %c0_101 = arith.constant 0 : index
    %182 = vector.load %arg11[%c8_100, %c0_101] : memref<20x96xf32, #tpu.memory_space<vmem>>, vector<2x96xf32>
    %cst_102 = arith.constant 5.000000e-01 : f32
    %183 = vector.broadcast %cst_102 : f32 to vector<2x96xf32>
    %184 = arith.mulf %180, %183 : vector<2x96xf32>
    %185 = arith.addf %184, %182 : vector<2x96xf32>
    %cst_103 = arith.constant 7.500000e-01 : f32
    %186 = vector.broadcast %cst_103 : f32 to vector<2x96xf32>
    %187 = arith.cmpf oge, %185, %186 : vector<2x96xf32>
    %188 = arith.extui %187 : vector<2x96xi1> to vector<2x96xi32>
    %189 = arith.sitofp %188 : vector<2x96xi32> to vector<2x96xf32>
    %cst_104 = arith.constant 7.500000e-01 : f32
    %190 = vector.broadcast %cst_104 : f32 to vector<2x96xf32>
    %191 = arith.mulf %189, %190 : vector<2x96xf32>
    %192 = arith.subf %185, %191 : vector<2x96xf32>
    %c8_105 = arith.constant 8 : index
    %c0_106 = arith.constant 0 : index
    %193 = vector.load %arg11[%c8_105, %c0_106] : memref<20x96xf32, #tpu.memory_space<vmem>>, vector<2x96xf32>
    tpu.vector_store %arg11[%c8_105, %c0_106], %189 {strides = array<i32>} : memref<20x96xf32, #tpu.memory_space<vmem>>, vector<2x96xf32>,
    %c10_107 = arith.constant 10 : index
    %c0_108 = arith.constant 0 : index
    %194 = vector.load %arg11[%c10_107, %c0_108] : memref<20x96xf32, #tpu.memory_space<vmem>>, vector<2x96xf32>
    %cst_109 = arith.constant 5.000000e-01 : f32
    %195 = vector.broadcast %cst_109 : f32 to vector<2x96xf32>
    %196 = arith.mulf %192, %195 : vector<2x96xf32>
    %197 = arith.addf %196, %194 : vector<2x96xf32>
    %cst_110 = arith.constant 7.500000e-01 : f32
    %198 = vector.broadcast %cst_110 : f32 to vector<2x96xf32>
    %199 = arith.cmpf oge, %197, %198 : vector<2x96xf32>
    %200 = arith.extui %199 : vector<2x96xi1> to vector<2x96xi32>
    %201 = arith.sitofp %200 : vector<2x96xi32> to vector<2x96xf32>
    %cst_111 = arith.constant 7.500000e-01 : f32
    %202 = vector.broadcast %cst_111 : f32 to vector<2x96xf32>
    %203 = arith.mulf %201, %202 : vector<2x96xf32>
    %204 = arith.subf %197, %203 : vector<2x96xf32>
    %c10_112 = arith.constant 10 : index
    %c0_113 = arith.constant 0 : index
    %205 = vector.load %arg11[%c10_112, %c0_113] : memref<20x96xf32, #tpu.memory_space<vmem>>, vector<2x96xf32>
    tpu.vector_store %arg11[%c10_112, %c0_113], %201 {strides = array<i32>} : memref<20x96xf32, #tpu.memory_space<vmem>>, vector<2x96xf32>,
    %c12_114 = arith.constant 12 : index
    %c0_115 = arith.constant 0 : index
    %206 = vector.load %arg11[%c12_114, %c0_115] : memref<20x96xf32, #tpu.memory_space<vmem>>, vector<2x96xf32>
    %cst_116 = arith.constant 5.000000e-01 : f32
    %207 = vector.broadcast %cst_116 : f32 to vector<2x96xf32>
    %208 = arith.mulf %204, %207 : vector<2x96xf32>
    %209 = arith.addf %208, %206 : vector<2x96xf32>
    %cst_117 = arith.constant 7.500000e-01 : f32
    %210 = vector.broadcast %cst_117 : f32 to vector<2x96xf32>
    %211 = arith.cmpf oge, %209, %210 : vector<2x96xf32>
    %212 = arith.extui %211 : vector<2x96xi1> to vector<2x96xi32>
    %213 = arith.sitofp %212 : vector<2x96xi32> to vector<2x96xf32>
    %cst_118 = arith.constant 7.500000e-01 : f32
    %214 = vector.broadcast %cst_118 : f32 to vector<2x96xf32>
    %215 = arith.mulf %213, %214 : vector<2x96xf32>
    %216 = arith.subf %209, %215 : vector<2x96xf32>
    %c12_119 = arith.constant 12 : index
    %c0_120 = arith.constant 0 : index
    %217 = vector.load %arg11[%c12_119, %c0_120] : memref<20x96xf32, #tpu.memory_space<vmem>>, vector<2x96xf32>
    tpu.vector_store %arg11[%c12_119, %c0_120], %213 {strides = array<i32>} : memref<20x96xf32, #tpu.memory_space<vmem>>, vector<2x96xf32>,
    %c14_121 = arith.constant 14 : index
    %c0_122 = arith.constant 0 : index
    %218 = vector.load %arg11[%c14_121, %c0_122] : memref<20x96xf32, #tpu.memory_space<vmem>>, vector<2x96xf32>
    %cst_123 = arith.constant 5.000000e-01 : f32
    %219 = vector.broadcast %cst_123 : f32 to vector<2x96xf32>
    %220 = arith.mulf %216, %219 : vector<2x96xf32>
    %221 = arith.addf %220, %218 : vector<2x96xf32>
    %cst_124 = arith.constant 7.500000e-01 : f32
    %222 = vector.broadcast %cst_124 : f32 to vector<2x96xf32>
    %223 = arith.cmpf oge, %221, %222 : vector<2x96xf32>
    %224 = arith.extui %223 : vector<2x96xi1> to vector<2x96xi32>
    %225 = arith.sitofp %224 : vector<2x96xi32> to vector<2x96xf32>
    %cst_125 = arith.constant 7.500000e-01 : f32
    %226 = vector.broadcast %cst_125 : f32 to vector<2x96xf32>
    %227 = arith.mulf %225, %226 : vector<2x96xf32>
    %228 = arith.subf %221, %227 : vector<2x96xf32>
    %c14_126 = arith.constant 14 : index
    %c0_127 = arith.constant 0 : index
    %229 = vector.load %arg11[%c14_126, %c0_127] : memref<20x96xf32, #tpu.memory_space<vmem>>, vector<2x96xf32>
    tpu.vector_store %arg11[%c14_126, %c0_127], %225 {strides = array<i32>} : memref<20x96xf32, #tpu.memory_space<vmem>>, vector<2x96xf32>,
    %c16_128 = arith.constant 16 : index
    %c0_129 = arith.constant 0 : index
    %230 = vector.load %arg11[%c16_128, %c0_129] : memref<20x96xf32, #tpu.memory_space<vmem>>, vector<2x96xf32>
    %cst_130 = arith.constant 5.000000e-01 : f32
    %231 = vector.broadcast %cst_130 : f32 to vector<2x96xf32>
    %232 = arith.mulf %228, %231 : vector<2x96xf32>
    %233 = arith.addf %232, %230 : vector<2x96xf32>
    %cst_131 = arith.constant 7.500000e-01 : f32
    %234 = vector.broadcast %cst_131 : f32 to vector<2x96xf32>
    %235 = arith.cmpf oge, %233, %234 : vector<2x96xf32>
    %236 = arith.extui %235 : vector<2x96xi1> to vector<2x96xi32>
    %237 = arith.sitofp %236 : vector<2x96xi32> to vector<2x96xf32>
    %cst_132 = arith.constant 7.500000e-01 : f32
    %238 = vector.broadcast %cst_132 : f32 to vector<2x96xf32>
    %239 = arith.mulf %237, %238 : vector<2x96xf32>
    %240 = arith.subf %233, %239 : vector<2x96xf32>
    %c16_133 = arith.constant 16 : index
    %c0_134 = arith.constant 0 : index
    %241 = vector.load %arg11[%c16_133, %c0_134] : memref<20x96xf32, #tpu.memory_space<vmem>>, vector<2x96xf32>
    tpu.vector_store %arg11[%c16_133, %c0_134], %237 {strides = array<i32>} : memref<20x96xf32, #tpu.memory_space<vmem>>, vector<2x96xf32>,
    %c18_135 = arith.constant 18 : index
    %c0_136 = arith.constant 0 : index
    %242 = vector.load %arg11[%c18_135, %c0_136] : memref<20x96xf32, #tpu.memory_space<vmem>>, vector<2x96xf32>
    %cst_137 = arith.constant 5.000000e-01 : f32
    %243 = vector.broadcast %cst_137 : f32 to vector<2x96xf32>
    %244 = arith.mulf %240, %243 : vector<2x96xf32>
    %245 = arith.addf %244, %242 : vector<2x96xf32>
    %cst_138 = arith.constant 7.500000e-01 : f32
    %246 = vector.broadcast %cst_138 : f32 to vector<2x96xf32>
    %247 = arith.cmpf oge, %245, %246 : vector<2x96xf32>
    %248 = arith.extui %247 : vector<2x96xi1> to vector<2x96xi32>
    %249 = arith.sitofp %248 : vector<2x96xi32> to vector<2x96xf32>
    %c18_139 = arith.constant 18 : index
    %c0_140 = arith.constant 0 : index
    %250 = vector.load %arg11[%c18_139, %c0_140] : memref<20x96xf32, #tpu.memory_space<vmem>>, vector<2x96xf32>
    tpu.vector_store %arg11[%c18_139, %c0_140], %249 {strides = array<i32>} : memref<20x96xf32, #tpu.memory_space<vmem>>, vector<2x96xf32>,
    %c0_141 = arith.constant 0 : index
    %c0_142 = arith.constant 0 : index
    %251 = vector.load %arg11[%c0_141, %c0_142] : memref<20x96xf32, #tpu.memory_space<vmem>>, vector<20x96xf32>
    %252 = arith.truncf %251 : vector<20x96xf32> to vector<20x96xbf16>
    %c0_143 = arith.constant 0 : index
    %c0_144 = arith.constant 0 : index
    %253 = vector.load %arg3[%c0_143, %c0_144] : memref<96x64xbf16, #tpu.memory_space<vmem>>, vector<96x64xbf16>
    %cst_145 = arith.constant dense<0.000000e+00> : vector<20x64xf32>
    %254 = tpu.matmul %252, %253, %cst_145 {dimension_numbers = #tpu.dot_dimension_numbers<[1], [0], [0], [1], [0, 0, 1, 1], [], []>} : vector<20x96xbf16>, vector<96x64xbf16>, vector<20x64xf32> -> vector<20x64xf32>
    %c0_146 = arith.constant 0 : index
    %c0_147 = arith.constant 0 : index
    %255 = vector.load %arg11[%c0_146, %c0_147] : memref<20x96xf32, #tpu.memory_space<vmem>>, vector<20x64xf32>
    tpu.vector_store %arg11[%c0_146, %c0_147], %254 {strides = array<i32>} : memref<20x96xf32, #tpu.memory_space<vmem>>, vector<20x64xf32>,
    %cst_148 = arith.constant 0.000000e+00 : f32
    %256 = vector.broadcast %cst_148 : f32 to vector<2x64xf32>
    %c0_149 = arith.constant 0 : index
    %c0_150 = arith.constant 0 : index
    %257 = vector.load %arg11[%c0_149, %c0_150] : memref<20x96xf32, #tpu.memory_space<vmem>>, vector<2x64xf32>
    %cst_151 = arith.constant 5.000000e-01 : f32
    %258 = vector.broadcast %cst_151 : f32 to vector<2x64xf32>
    %259 = arith.mulf %256, %258 : vector<2x64xf32>
    %260 = arith.addf %259, %257 : vector<2x64xf32>
    %cst_152 = arith.constant 7.500000e-01 : f32
    %261 = vector.broadcast %cst_152 : f32 to vector<2x64xf32>
    %262 = arith.cmpf oge, %260, %261 : vector<2x64xf32>
    %263 = arith.extui %262 : vector<2x64xi1> to vector<2x64xi32>
    %264 = arith.sitofp %263 : vector<2x64xi32> to vector<2x64xf32>
    %cst_153 = arith.constant 7.500000e-01 : f32
    %265 = vector.broadcast %cst_153 : f32 to vector<2x64xf32>
    %266 = arith.mulf %264, %265 : vector<2x64xf32>
    %267 = arith.subf %260, %266 : vector<2x64xf32>
    %c0_154 = arith.constant 0 : index
    %c0_155 = arith.constant 0 : index
    %268 = vector.load %arg11[%c0_154, %c0_155] : memref<20x96xf32, #tpu.memory_space<vmem>>, vector<2x64xf32>
    tpu.vector_store %arg11[%c0_154, %c0_155], %264 {strides = array<i32>} : memref<20x96xf32, #tpu.memory_space<vmem>>, vector<2x64xf32>,
    %c2_156 = arith.constant 2 : index
    %c0_157 = arith.constant 0 : index
    %269 = vector.load %arg11[%c2_156, %c0_157] : memref<20x96xf32, #tpu.memory_space<vmem>>, vector<2x64xf32>
    %cst_158 = arith.constant 5.000000e-01 : f32
    %270 = vector.broadcast %cst_158 : f32 to vector<2x64xf32>
    %271 = arith.mulf %267, %270 : vector<2x64xf32>
    %272 = arith.addf %271, %269 : vector<2x64xf32>
    %cst_159 = arith.constant 7.500000e-01 : f32
    %273 = vector.broadcast %cst_159 : f32 to vector<2x64xf32>
    %274 = arith.cmpf oge, %272, %273 : vector<2x64xf32>
    %275 = arith.extui %274 : vector<2x64xi1> to vector<2x64xi32>
    %276 = arith.sitofp %275 : vector<2x64xi32> to vector<2x64xf32>
    %cst_160 = arith.constant 7.500000e-01 : f32
    %277 = vector.broadcast %cst_160 : f32 to vector<2x64xf32>
    %278 = arith.mulf %276, %277 : vector<2x64xf32>
    %279 = arith.subf %272, %278 : vector<2x64xf32>
    %c2_161 = arith.constant 2 : index
    %c0_162 = arith.constant 0 : index
    %280 = vector.load %arg11[%c2_161, %c0_162] : memref<20x96xf32, #tpu.memory_space<vmem>>, vector<2x64xf32>
    tpu.vector_store %arg11[%c2_161, %c0_162], %276 {strides = array<i32>} : memref<20x96xf32, #tpu.memory_space<vmem>>, vector<2x64xf32>,
    %c4_163 = arith.constant 4 : index
    %c0_164 = arith.constant 0 : index
    %281 = vector.load %arg11[%c4_163, %c0_164] : memref<20x96xf32, #tpu.memory_space<vmem>>, vector<2x64xf32>
    %cst_165 = arith.constant 5.000000e-01 : f32
    %282 = vector.broadcast %cst_165 : f32 to vector<2x64xf32>
    %283 = arith.mulf %279, %282 : vector<2x64xf32>
    %284 = arith.addf %283, %281 : vector<2x64xf32>
    %cst_166 = arith.constant 7.500000e-01 : f32
    %285 = vector.broadcast %cst_166 : f32 to vector<2x64xf32>
    %286 = arith.cmpf oge, %284, %285 : vector<2x64xf32>
    %287 = arith.extui %286 : vector<2x64xi1> to vector<2x64xi32>
    %288 = arith.sitofp %287 : vector<2x64xi32> to vector<2x64xf32>
    %cst_167 = arith.constant 7.500000e-01 : f32
    %289 = vector.broadcast %cst_167 : f32 to vector<2x64xf32>
    %290 = arith.mulf %288, %289 : vector<2x64xf32>
    %291 = arith.subf %284, %290 : vector<2x64xf32>
    %c4_168 = arith.constant 4 : index
    %c0_169 = arith.constant 0 : index
    %292 = vector.load %arg11[%c4_168, %c0_169] : memref<20x96xf32, #tpu.memory_space<vmem>>, vector<2x64xf32>
    tpu.vector_store %arg11[%c4_168, %c0_169], %288 {strides = array<i32>} : memref<20x96xf32, #tpu.memory_space<vmem>>, vector<2x64xf32>,
    %c6_170 = arith.constant 6 : index
    %c0_171 = arith.constant 0 : index
    %293 = vector.load %arg11[%c6_170, %c0_171] : memref<20x96xf32, #tpu.memory_space<vmem>>, vector<2x64xf32>
    %cst_172 = arith.constant 5.000000e-01 : f32
    %294 = vector.broadcast %cst_172 : f32 to vector<2x64xf32>
    %295 = arith.mulf %291, %294 : vector<2x64xf32>
    %296 = arith.addf %295, %293 : vector<2x64xf32>
    %cst_173 = arith.constant 7.500000e-01 : f32
    %297 = vector.broadcast %cst_173 : f32 to vector<2x64xf32>
    %298 = arith.cmpf oge, %296, %297 : vector<2x64xf32>
    %299 = arith.extui %298 : vector<2x64xi1> to vector<2x64xi32>
    %300 = arith.sitofp %299 : vector<2x64xi32> to vector<2x64xf32>
    %cst_174 = arith.constant 7.500000e-01 : f32
    %301 = vector.broadcast %cst_174 : f32 to vector<2x64xf32>
    %302 = arith.mulf %300, %301 : vector<2x64xf32>
    %303 = arith.subf %296, %302 : vector<2x64xf32>
    %c6_175 = arith.constant 6 : index
    %c0_176 = arith.constant 0 : index
    %304 = vector.load %arg11[%c6_175, %c0_176] : memref<20x96xf32, #tpu.memory_space<vmem>>, vector<2x64xf32>
    tpu.vector_store %arg11[%c6_175, %c0_176], %300 {strides = array<i32>} : memref<20x96xf32, #tpu.memory_space<vmem>>, vector<2x64xf32>,
    %c8_177 = arith.constant 8 : index
    %c0_178 = arith.constant 0 : index
    %305 = vector.load %arg11[%c8_177, %c0_178] : memref<20x96xf32, #tpu.memory_space<vmem>>, vector<2x64xf32>
    %cst_179 = arith.constant 5.000000e-01 : f32
    %306 = vector.broadcast %cst_179 : f32 to vector<2x64xf32>
    %307 = arith.mulf %303, %306 : vector<2x64xf32>
    %308 = arith.addf %307, %305 : vector<2x64xf32>
    %cst_180 = arith.constant 7.500000e-01 : f32
    %309 = vector.broadcast %cst_180 : f32 to vector<2x64xf32>
    %310 = arith.cmpf oge, %308, %309 : vector<2x64xf32>
    %311 = arith.extui %310 : vector<2x64xi1> to vector<2x64xi32>
    %312 = arith.sitofp %311 : vector<2x64xi32> to vector<2x64xf32>
    %cst_181 = arith.constant 7.500000e-01 : f32
    %313 = vector.broadcast %cst_181 : f32 to vector<2x64xf32>
    %314 = arith.mulf %312, %313 : vector<2x64xf32>
    %315 = arith.subf %308, %314 : vector<2x64xf32>
    %c8_182 = arith.constant 8 : index
    %c0_183 = arith.constant 0 : index
    %316 = vector.load %arg11[%c8_182, %c0_183] : memref<20x96xf32, #tpu.memory_space<vmem>>, vector<2x64xf32>
    tpu.vector_store %arg11[%c8_182, %c0_183], %312 {strides = array<i32>} : memref<20x96xf32, #tpu.memory_space<vmem>>, vector<2x64xf32>,
    %c10_184 = arith.constant 10 : index
    %c0_185 = arith.constant 0 : index
    %317 = vector.load %arg11[%c10_184, %c0_185] : memref<20x96xf32, #tpu.memory_space<vmem>>, vector<2x64xf32>
    %cst_186 = arith.constant 5.000000e-01 : f32
    %318 = vector.broadcast %cst_186 : f32 to vector<2x64xf32>
    %319 = arith.mulf %315, %318 : vector<2x64xf32>
    %320 = arith.addf %319, %317 : vector<2x64xf32>
    %cst_187 = arith.constant 7.500000e-01 : f32
    %321 = vector.broadcast %cst_187 : f32 to vector<2x64xf32>
    %322 = arith.cmpf oge, %320, %321 : vector<2x64xf32>
    %323 = arith.extui %322 : vector<2x64xi1> to vector<2x64xi32>
    %324 = arith.sitofp %323 : vector<2x64xi32> to vector<2x64xf32>
    %cst_188 = arith.constant 7.500000e-01 : f32
    %325 = vector.broadcast %cst_188 : f32 to vector<2x64xf32>
    %326 = arith.mulf %324, %325 : vector<2x64xf32>
    %327 = arith.subf %320, %326 : vector<2x64xf32>
    %c10_189 = arith.constant 10 : index
    %c0_190 = arith.constant 0 : index
    %328 = vector.load %arg11[%c10_189, %c0_190] : memref<20x96xf32, #tpu.memory_space<vmem>>, vector<2x64xf32>
    tpu.vector_store %arg11[%c10_189, %c0_190], %324 {strides = array<i32>} : memref<20x96xf32, #tpu.memory_space<vmem>>, vector<2x64xf32>,
    %c12_191 = arith.constant 12 : index
    %c0_192 = arith.constant 0 : index
    %329 = vector.load %arg11[%c12_191, %c0_192] : memref<20x96xf32, #tpu.memory_space<vmem>>, vector<2x64xf32>
    %cst_193 = arith.constant 5.000000e-01 : f32
    %330 = vector.broadcast %cst_193 : f32 to vector<2x64xf32>
    %331 = arith.mulf %327, %330 : vector<2x64xf32>
    %332 = arith.addf %331, %329 : vector<2x64xf32>
    %cst_194 = arith.constant 7.500000e-01 : f32
    %333 = vector.broadcast %cst_194 : f32 to vector<2x64xf32>
    %334 = arith.cmpf oge, %332, %333 : vector<2x64xf32>
    %335 = arith.extui %334 : vector<2x64xi1> to vector<2x64xi32>
    %336 = arith.sitofp %335 : vector<2x64xi32> to vector<2x64xf32>
    %cst_195 = arith.constant 7.500000e-01 : f32
    %337 = vector.broadcast %cst_195 : f32 to vector<2x64xf32>
    %338 = arith.mulf %336, %337 : vector<2x64xf32>
    %339 = arith.subf %332, %338 : vector<2x64xf32>
    %c12_196 = arith.constant 12 : index
    %c0_197 = arith.constant 0 : index
    %340 = vector.load %arg11[%c12_196, %c0_197] : memref<20x96xf32, #tpu.memory_space<vmem>>, vector<2x64xf32>
    tpu.vector_store %arg11[%c12_196, %c0_197], %336 {strides = array<i32>} : memref<20x96xf32, #tpu.memory_space<vmem>>, vector<2x64xf32>,
    %c14_198 = arith.constant 14 : index
    %c0_199 = arith.constant 0 : index
    %341 = vector.load %arg11[%c14_198, %c0_199] : memref<20x96xf32, #tpu.memory_space<vmem>>, vector<2x64xf32>
    %cst_200 = arith.constant 5.000000e-01 : f32
    %342 = vector.broadcast %cst_200 : f32 to vector<2x64xf32>
    %343 = arith.mulf %339, %342 : vector<2x64xf32>
    %344 = arith.addf %343, %341 : vector<2x64xf32>
    %cst_201 = arith.constant 7.500000e-01 : f32
    %345 = vector.broadcast %cst_201 : f32 to vector<2x64xf32>
    %346 = arith.cmpf oge, %344, %345 : vector<2x64xf32>
    %347 = arith.extui %346 : vector<2x64xi1> to vector<2x64xi32>
    %348 = arith.sitofp %347 : vector<2x64xi32> to vector<2x64xf32>
    %cst_202 = arith.constant 7.500000e-01 : f32
    %349 = vector.broadcast %cst_202 : f32 to vector<2x64xf32>
    %350 = arith.mulf %348, %349 : vector<2x64xf32>
    %351 = arith.subf %344, %350 : vector<2x64xf32>
    %c14_203 = arith.constant 14 : index
    %c0_204 = arith.constant 0 : index
    %352 = vector.load %arg11[%c14_203, %c0_204] : memref<20x96xf32, #tpu.memory_space<vmem>>, vector<2x64xf32>
    tpu.vector_store %arg11[%c14_203, %c0_204], %348 {strides = array<i32>} : memref<20x96xf32, #tpu.memory_space<vmem>>, vector<2x64xf32>,
    %c16_205 = arith.constant 16 : index
    %c0_206 = arith.constant 0 : index
    %353 = vector.load %arg11[%c16_205, %c0_206] : memref<20x96xf32, #tpu.memory_space<vmem>>, vector<2x64xf32>
    %cst_207 = arith.constant 5.000000e-01 : f32
    %354 = vector.broadcast %cst_207 : f32 to vector<2x64xf32>
    %355 = arith.mulf %351, %354 : vector<2x64xf32>
    %356 = arith.addf %355, %353 : vector<2x64xf32>
    %cst_208 = arith.constant 7.500000e-01 : f32
    %357 = vector.broadcast %cst_208 : f32 to vector<2x64xf32>
    %358 = arith.cmpf oge, %356, %357 : vector<2x64xf32>
    %359 = arith.extui %358 : vector<2x64xi1> to vector<2x64xi32>
    %360 = arith.sitofp %359 : vector<2x64xi32> to vector<2x64xf32>
    %cst_209 = arith.constant 7.500000e-01 : f32
    %361 = vector.broadcast %cst_209 : f32 to vector<2x64xf32>
    %362 = arith.mulf %360, %361 : vector<2x64xf32>
    %363 = arith.subf %356, %362 : vector<2x64xf32>
    %c16_210 = arith.constant 16 : index
    %c0_211 = arith.constant 0 : index
    %364 = vector.load %arg11[%c16_210, %c0_211] : memref<20x96xf32, #tpu.memory_space<vmem>>, vector<2x64xf32>
    tpu.vector_store %arg11[%c16_210, %c0_211], %360 {strides = array<i32>} : memref<20x96xf32, #tpu.memory_space<vmem>>, vector<2x64xf32>,
    %c18_212 = arith.constant 18 : index
    %c0_213 = arith.constant 0 : index
    %365 = vector.load %arg11[%c18_212, %c0_213] : memref<20x96xf32, #tpu.memory_space<vmem>>, vector<2x64xf32>
    %cst_214 = arith.constant 5.000000e-01 : f32
    %366 = vector.broadcast %cst_214 : f32 to vector<2x64xf32>
    %367 = arith.mulf %363, %366 : vector<2x64xf32>
    %368 = arith.addf %367, %365 : vector<2x64xf32>
    %cst_215 = arith.constant 7.500000e-01 : f32
    %369 = vector.broadcast %cst_215 : f32 to vector<2x64xf32>
    %370 = arith.cmpf oge, %368, %369 : vector<2x64xf32>
    %371 = arith.extui %370 : vector<2x64xi1> to vector<2x64xi32>
    %372 = arith.sitofp %371 : vector<2x64xi32> to vector<2x64xf32>
    %c18_216 = arith.constant 18 : index
    %c0_217 = arith.constant 0 : index
    %373 = vector.load %arg11[%c18_216, %c0_217] : memref<20x96xf32, #tpu.memory_space<vmem>>, vector<2x64xf32>
    tpu.vector_store %arg11[%c18_216, %c0_217], %372 {strides = array<i32>} : memref<20x96xf32, #tpu.memory_space<vmem>>, vector<2x64xf32>,
    %c0_218 = arith.constant 0 : index
    %c0_219 = arith.constant 0 : index
    %374 = vector.load %arg11[%c0_218, %c0_219] : memref<20x96xf32, #tpu.memory_space<vmem>>, vector<20x64xf32>
    %375 = arith.truncf %374 : vector<20x64xf32> to vector<20x64xbf16>
    %c0_220 = arith.constant 0 : index
    %c0_221 = arith.constant 0 : index
    %376 = vector.load %arg4[%c0_220, %c0_221] : memref<64x32xbf16, #tpu.memory_space<vmem>>, vector<64x32xbf16>
    %cst_222 = arith.constant dense<0.000000e+00> : vector<20x32xf32>
    %377 = tpu.matmul %375, %376, %cst_222 {dimension_numbers = #tpu.dot_dimension_numbers<[1], [0], [0], [1], [0, 0, 1, 1], [], []>} : vector<20x64xbf16>, vector<64x32xbf16>, vector<20x32xf32> -> vector<20x32xf32>
    %c0_223 = arith.constant 0 : index
    %c0_224 = arith.constant 0 : index
    %378 = vector.load %arg11[%c0_223, %c0_224] : memref<20x96xf32, #tpu.memory_space<vmem>>, vector<20x32xf32>
    tpu.vector_store %arg11[%c0_223, %c0_224], %377 {strides = array<i32>} : memref<20x96xf32, #tpu.memory_space<vmem>>, vector<20x32xf32>,
    %cst_225 = arith.constant 0.000000e+00 : f32
    %379 = vector.broadcast %cst_225 : f32 to vector<2x32xf32>
    %c0_226 = arith.constant 0 : index
    %c0_227 = arith.constant 0 : index
    %380 = vector.load %arg11[%c0_226, %c0_227] : memref<20x96xf32, #tpu.memory_space<vmem>>, vector<2x32xf32>
    %cst_228 = arith.constant 5.000000e-01 : f32
    %381 = vector.broadcast %cst_228 : f32 to vector<2x32xf32>
    %382 = arith.mulf %379, %381 : vector<2x32xf32>
    %383 = arith.addf %382, %380 : vector<2x32xf32>
    %cst_229 = arith.constant 7.500000e-01 : f32
    %384 = vector.broadcast %cst_229 : f32 to vector<2x32xf32>
    %385 = arith.cmpf oge, %383, %384 : vector<2x32xf32>
    %386 = arith.extui %385 : vector<2x32xi1> to vector<2x32xi32>
    %387 = arith.sitofp %386 : vector<2x32xi32> to vector<2x32xf32>
    %cst_230 = arith.constant 7.500000e-01 : f32
    %388 = vector.broadcast %cst_230 : f32 to vector<2x32xf32>
    %389 = arith.mulf %387, %388 : vector<2x32xf32>
    %390 = arith.subf %383, %389 : vector<2x32xf32>
    %c0_231 = arith.constant 0 : index
    %c0_232 = arith.constant 0 : index
    %391 = vector.load %arg11[%c0_231, %c0_232] : memref<20x96xf32, #tpu.memory_space<vmem>>, vector<2x32xf32>
    tpu.vector_store %arg11[%c0_231, %c0_232], %387 {strides = array<i32>} : memref<20x96xf32, #tpu.memory_space<vmem>>, vector<2x32xf32>,
    %c2_233 = arith.constant 2 : index
    %c0_234 = arith.constant 0 : index
    %392 = vector.load %arg11[%c2_233, %c0_234] : memref<20x96xf32, #tpu.memory_space<vmem>>, vector<2x32xf32>
    %cst_235 = arith.constant 5.000000e-01 : f32
    %393 = vector.broadcast %cst_235 : f32 to vector<2x32xf32>
    %394 = arith.mulf %390, %393 : vector<2x32xf32>
    %395 = arith.addf %394, %392 : vector<2x32xf32>
    %cst_236 = arith.constant 7.500000e-01 : f32
    %396 = vector.broadcast %cst_236 : f32 to vector<2x32xf32>
    %397 = arith.cmpf oge, %395, %396 : vector<2x32xf32>
    %398 = arith.extui %397 : vector<2x32xi1> to vector<2x32xi32>
    %399 = arith.sitofp %398 : vector<2x32xi32> to vector<2x32xf32>
    %cst_237 = arith.constant 7.500000e-01 : f32
    %400 = vector.broadcast %cst_237 : f32 to vector<2x32xf32>
    %401 = arith.mulf %399, %400 : vector<2x32xf32>
    %402 = arith.subf %395, %401 : vector<2x32xf32>
    %c2_238 = arith.constant 2 : index
    %c0_239 = arith.constant 0 : index
    %403 = vector.load %arg11[%c2_238, %c0_239] : memref<20x96xf32, #tpu.memory_space<vmem>>, vector<2x32xf32>
    tpu.vector_store %arg11[%c2_238, %c0_239], %399 {strides = array<i32>} : memref<20x96xf32, #tpu.memory_space<vmem>>, vector<2x32xf32>,
    %c4_240 = arith.constant 4 : index
    %c0_241 = arith.constant 0 : index
    %404 = vector.load %arg11[%c4_240, %c0_241] : memref<20x96xf32, #tpu.memory_space<vmem>>, vector<2x32xf32>
    %cst_242 = arith.constant 5.000000e-01 : f32
    %405 = vector.broadcast %cst_242 : f32 to vector<2x32xf32>
    %406 = arith.mulf %402, %405 : vector<2x32xf32>
    %407 = arith.addf %406, %404 : vector<2x32xf32>
    %cst_243 = arith.constant 7.500000e-01 : f32
    %408 = vector.broadcast %cst_243 : f32 to vector<2x32xf32>
    %409 = arith.cmpf oge, %407, %408 : vector<2x32xf32>
    %410 = arith.extui %409 : vector<2x32xi1> to vector<2x32xi32>
    %411 = arith.sitofp %410 : vector<2x32xi32> to vector<2x32xf32>
    %cst_244 = arith.constant 7.500000e-01 : f32
    %412 = vector.broadcast %cst_244 : f32 to vector<2x32xf32>
    %413 = arith.mulf %411, %412 : vector<2x32xf32>
    %414 = arith.subf %407, %413 : vector<2x32xf32>
    %c4_245 = arith.constant 4 : index
    %c0_246 = arith.constant 0 : index
    %415 = vector.load %arg11[%c4_245, %c0_246] : memref<20x96xf32, #tpu.memory_space<vmem>>, vector<2x32xf32>
    tpu.vector_store %arg11[%c4_245, %c0_246], %411 {strides = array<i32>} : memref<20x96xf32, #tpu.memory_space<vmem>>, vector<2x32xf32>,
    %c6_247 = arith.constant 6 : index
    %c0_248 = arith.constant 0 : index
    %416 = vector.load %arg11[%c6_247, %c0_248] : memref<20x96xf32, #tpu.memory_space<vmem>>, vector<2x32xf32>
    %cst_249 = arith.constant 5.000000e-01 : f32
    %417 = vector.broadcast %cst_249 : f32 to vector<2x32xf32>
    %418 = arith.mulf %414, %417 : vector<2x32xf32>
    %419 = arith.addf %418, %416 : vector<2x32xf32>
    %cst_250 = arith.constant 7.500000e-01 : f32
    %420 = vector.broadcast %cst_250 : f32 to vector<2x32xf32>
    %421 = arith.cmpf oge, %419, %420 : vector<2x32xf32>
    %422 = arith.extui %421 : vector<2x32xi1> to vector<2x32xi32>
    %423 = arith.sitofp %422 : vector<2x32xi32> to vector<2x32xf32>
    %cst_251 = arith.constant 7.500000e-01 : f32
    %424 = vector.broadcast %cst_251 : f32 to vector<2x32xf32>
    %425 = arith.mulf %423, %424 : vector<2x32xf32>
    %426 = arith.subf %419, %425 : vector<2x32xf32>
    %c6_252 = arith.constant 6 : index
    %c0_253 = arith.constant 0 : index
    %427 = vector.load %arg11[%c6_252, %c0_253] : memref<20x96xf32, #tpu.memory_space<vmem>>, vector<2x32xf32>
    tpu.vector_store %arg11[%c6_252, %c0_253], %423 {strides = array<i32>} : memref<20x96xf32, #tpu.memory_space<vmem>>, vector<2x32xf32>,
    %c8_254 = arith.constant 8 : index
    %c0_255 = arith.constant 0 : index
    %428 = vector.load %arg11[%c8_254, %c0_255] : memref<20x96xf32, #tpu.memory_space<vmem>>, vector<2x32xf32>
    %cst_256 = arith.constant 5.000000e-01 : f32
    %429 = vector.broadcast %cst_256 : f32 to vector<2x32xf32>
    %430 = arith.mulf %426, %429 : vector<2x32xf32>
    %431 = arith.addf %430, %428 : vector<2x32xf32>
    %cst_257 = arith.constant 7.500000e-01 : f32
    %432 = vector.broadcast %cst_257 : f32 to vector<2x32xf32>
    %433 = arith.cmpf oge, %431, %432 : vector<2x32xf32>
    %434 = arith.extui %433 : vector<2x32xi1> to vector<2x32xi32>
    %435 = arith.sitofp %434 : vector<2x32xi32> to vector<2x32xf32>
    %cst_258 = arith.constant 7.500000e-01 : f32
    %436 = vector.broadcast %cst_258 : f32 to vector<2x32xf32>
    %437 = arith.mulf %435, %436 : vector<2x32xf32>
    %438 = arith.subf %431, %437 : vector<2x32xf32>
    %c8_259 = arith.constant 8 : index
    %c0_260 = arith.constant 0 : index
    %439 = vector.load %arg11[%c8_259, %c0_260] : memref<20x96xf32, #tpu.memory_space<vmem>>, vector<2x32xf32>
    tpu.vector_store %arg11[%c8_259, %c0_260], %435 {strides = array<i32>} : memref<20x96xf32, #tpu.memory_space<vmem>>, vector<2x32xf32>,
    %c10_261 = arith.constant 10 : index
    %c0_262 = arith.constant 0 : index
    %440 = vector.load %arg11[%c10_261, %c0_262] : memref<20x96xf32, #tpu.memory_space<vmem>>, vector<2x32xf32>
    %cst_263 = arith.constant 5.000000e-01 : f32
    %441 = vector.broadcast %cst_263 : f32 to vector<2x32xf32>
    %442 = arith.mulf %438, %441 : vector<2x32xf32>
    %443 = arith.addf %442, %440 : vector<2x32xf32>
    %cst_264 = arith.constant 7.500000e-01 : f32
    %444 = vector.broadcast %cst_264 : f32 to vector<2x32xf32>
    %445 = arith.cmpf oge, %443, %444 : vector<2x32xf32>
    %446 = arith.extui %445 : vector<2x32xi1> to vector<2x32xi32>
    %447 = arith.sitofp %446 : vector<2x32xi32> to vector<2x32xf32>
    %cst_265 = arith.constant 7.500000e-01 : f32
    %448 = vector.broadcast %cst_265 : f32 to vector<2x32xf32>
    %449 = arith.mulf %447, %448 : vector<2x32xf32>
    %450 = arith.subf %443, %449 : vector<2x32xf32>
    %c10_266 = arith.constant 10 : index
    %c0_267 = arith.constant 0 : index
    %451 = vector.load %arg11[%c10_266, %c0_267] : memref<20x96xf32, #tpu.memory_space<vmem>>, vector<2x32xf32>
    tpu.vector_store %arg11[%c10_266, %c0_267], %447 {strides = array<i32>} : memref<20x96xf32, #tpu.memory_space<vmem>>, vector<2x32xf32>,
    %c12_268 = arith.constant 12 : index
    %c0_269 = arith.constant 0 : index
    %452 = vector.load %arg11[%c12_268, %c0_269] : memref<20x96xf32, #tpu.memory_space<vmem>>, vector<2x32xf32>
    %cst_270 = arith.constant 5.000000e-01 : f32
    %453 = vector.broadcast %cst_270 : f32 to vector<2x32xf32>
    %454 = arith.mulf %450, %453 : vector<2x32xf32>
    %455 = arith.addf %454, %452 : vector<2x32xf32>
    %cst_271 = arith.constant 7.500000e-01 : f32
    %456 = vector.broadcast %cst_271 : f32 to vector<2x32xf32>
    %457 = arith.cmpf oge, %455, %456 : vector<2x32xf32>
    %458 = arith.extui %457 : vector<2x32xi1> to vector<2x32xi32>
    %459 = arith.sitofp %458 : vector<2x32xi32> to vector<2x32xf32>
    %cst_272 = arith.constant 7.500000e-01 : f32
    %460 = vector.broadcast %cst_272 : f32 to vector<2x32xf32>
    %461 = arith.mulf %459, %460 : vector<2x32xf32>
    %462 = arith.subf %455, %461 : vector<2x32xf32>
    %c12_273 = arith.constant 12 : index
    %c0_274 = arith.constant 0 : index
    %463 = vector.load %arg11[%c12_273, %c0_274] : memref<20x96xf32, #tpu.memory_space<vmem>>, vector<2x32xf32>
    tpu.vector_store %arg11[%c12_273, %c0_274], %459 {strides = array<i32>} : memref<20x96xf32, #tpu.memory_space<vmem>>, vector<2x32xf32>,
    %c14_275 = arith.constant 14 : index
    %c0_276 = arith.constant 0 : index
    %464 = vector.load %arg11[%c14_275, %c0_276] : memref<20x96xf32, #tpu.memory_space<vmem>>, vector<2x32xf32>
    %cst_277 = arith.constant 5.000000e-01 : f32
    %465 = vector.broadcast %cst_277 : f32 to vector<2x32xf32>
    %466 = arith.mulf %462, %465 : vector<2x32xf32>
    %467 = arith.addf %466, %464 : vector<2x32xf32>
    %cst_278 = arith.constant 7.500000e-01 : f32
    %468 = vector.broadcast %cst_278 : f32 to vector<2x32xf32>
    %469 = arith.cmpf oge, %467, %468 : vector<2x32xf32>
    %470 = arith.extui %469 : vector<2x32xi1> to vector<2x32xi32>
    %471 = arith.sitofp %470 : vector<2x32xi32> to vector<2x32xf32>
    %cst_279 = arith.constant 7.500000e-01 : f32
    %472 = vector.broadcast %cst_279 : f32 to vector<2x32xf32>
    %473 = arith.mulf %471, %472 : vector<2x32xf32>
    %474 = arith.subf %467, %473 : vector<2x32xf32>
    %c14_280 = arith.constant 14 : index
    %c0_281 = arith.constant 0 : index
    %475 = vector.load %arg11[%c14_280, %c0_281] : memref<20x96xf32, #tpu.memory_space<vmem>>, vector<2x32xf32>
    tpu.vector_store %arg11[%c14_280, %c0_281], %471 {strides = array<i32>} : memref<20x96xf32, #tpu.memory_space<vmem>>, vector<2x32xf32>,
    %c16_282 = arith.constant 16 : index
    %c0_283 = arith.constant 0 : index
    %476 = vector.load %arg11[%c16_282, %c0_283] : memref<20x96xf32, #tpu.memory_space<vmem>>, vector<2x32xf32>
    %cst_284 = arith.constant 5.000000e-01 : f32
    %477 = vector.broadcast %cst_284 : f32 to vector<2x32xf32>
    %478 = arith.mulf %474, %477 : vector<2x32xf32>
    %479 = arith.addf %478, %476 : vector<2x32xf32>
    %cst_285 = arith.constant 7.500000e-01 : f32
    %480 = vector.broadcast %cst_285 : f32 to vector<2x32xf32>
    %481 = arith.cmpf oge, %479, %480 : vector<2x32xf32>
    %482 = arith.extui %481 : vector<2x32xi1> to vector<2x32xi32>
    %483 = arith.sitofp %482 : vector<2x32xi32> to vector<2x32xf32>
    %cst_286 = arith.constant 7.500000e-01 : f32
    %484 = vector.broadcast %cst_286 : f32 to vector<2x32xf32>
    %485 = arith.mulf %483, %484 : vector<2x32xf32>
    %486 = arith.subf %479, %485 : vector<2x32xf32>
    %c16_287 = arith.constant 16 : index
    %c0_288 = arith.constant 0 : index
    %487 = vector.load %arg11[%c16_287, %c0_288] : memref<20x96xf32, #tpu.memory_space<vmem>>, vector<2x32xf32>
    tpu.vector_store %arg11[%c16_287, %c0_288], %483 {strides = array<i32>} : memref<20x96xf32, #tpu.memory_space<vmem>>, vector<2x32xf32>,
    %c18_289 = arith.constant 18 : index
    %c0_290 = arith.constant 0 : index
    %488 = vector.load %arg11[%c18_289, %c0_290] : memref<20x96xf32, #tpu.memory_space<vmem>>, vector<2x32xf32>
    %cst_291 = arith.constant 5.000000e-01 : f32
    %489 = vector.broadcast %cst_291 : f32 to vector<2x32xf32>
    %490 = arith.mulf %486, %489 : vector<2x32xf32>
    %491 = arith.addf %490, %488 : vector<2x32xf32>
    %cst_292 = arith.constant 7.500000e-01 : f32
    %492 = vector.broadcast %cst_292 : f32 to vector<2x32xf32>
    %493 = arith.cmpf oge, %491, %492 : vector<2x32xf32>
    %494 = arith.extui %493 : vector<2x32xi1> to vector<2x32xi32>
    %495 = arith.sitofp %494 : vector<2x32xi32> to vector<2x32xf32>
    %c18_293 = arith.constant 18 : index
    %c0_294 = arith.constant 0 : index
    %496 = vector.load %arg11[%c18_293, %c0_294] : memref<20x96xf32, #tpu.memory_space<vmem>>, vector<2x32xf32>
    tpu.vector_store %arg11[%c18_293, %c0_294], %495 {strides = array<i32>} : memref<20x96xf32, #tpu.memory_space<vmem>>, vector<2x32xf32>,
    %c0_295 = arith.constant 0 : index
    %c0_296 = arith.constant 0 : index
    %497 = vector.load %arg11[%c0_295, %c0_296] : memref<20x96xf32, #tpu.memory_space<vmem>>, vector<20x32xf32>
    %498 = arith.truncf %497 : vector<20x32xf32> to vector<20x32xbf16>
    %c0_297 = arith.constant 0 : index
    %c0_298 = arith.constant 0 : index
    %499 = vector.load %arg5[%c0_297, %c0_298] : memref<32x4xbf16, #tpu.memory_space<vmem>>, vector<32x4xbf16>
    %cst_299 = arith.constant dense<0.000000e+00> : vector<20x4xf32>
    %500 = tpu.matmul %498, %499, %cst_299 {dimension_numbers = #tpu.dot_dimension_numbers<[1], [0], [0], [1], [0, 0, 1, 1], [], []>} : vector<20x32xbf16>, vector<32x4xbf16>, vector<20x4xf32> -> vector<20x4xf32>
    %c0_300 = arith.constant 0 : index
    %c0_301 = arith.constant 0 : index
    %501 = vector.load %arg11[%c0_300, %c0_301] : memref<20x96xf32, #tpu.memory_space<vmem>>, vector<20x4xf32>
    tpu.vector_store %arg11[%c0_300, %c0_301], %500 {strides = array<i32>} : memref<20x96xf32, #tpu.memory_space<vmem>>, vector<20x4xf32>,
    %cst_302 = arith.constant 0.000000e+00 : f32
    %502 = vector.broadcast %cst_302 : f32 to vector<2x4xf32>
    %c0_303 = arith.constant 0 : index
    %c0_304 = arith.constant 0 : index
    %503 = vector.load %arg11[%c0_303, %c0_304] : memref<20x96xf32, #tpu.memory_space<vmem>>, vector<2x4xf32>
    %cst_305 = arith.constant 5.000000e-01 : f32
    %504 = vector.broadcast %cst_305 : f32 to vector<2x4xf32>
    %505 = arith.mulf %502, %504 : vector<2x4xf32>
    %506 = arith.addf %505, %503 : vector<2x4xf32>
    %cst_306 = arith.constant 7.500000e-01 : f32
    %507 = vector.broadcast %cst_306 : f32 to vector<2x4xf32>
    %508 = arith.cmpf oge, %506, %507 : vector<2x4xf32>
    %509 = arith.extui %508 : vector<2x4xi1> to vector<2x4xi32>
    %510 = arith.sitofp %509 : vector<2x4xi32> to vector<2x4xf32>
    %cst_307 = arith.constant 7.500000e-01 : f32
    %511 = vector.broadcast %cst_307 : f32 to vector<2x4xf32>
    %512 = arith.mulf %510, %511 : vector<2x4xf32>
    %513 = arith.subf %506, %512 : vector<2x4xf32>
    %c0_308 = arith.constant 0 : index
    %c0_309 = arith.constant 0 : index
    %514 = vector.load %arg11[%c0_308, %c0_309] : memref<20x96xf32, #tpu.memory_space<vmem>>, vector<2x4xf32>
    tpu.vector_store %arg11[%c0_308, %c0_309], %510 {strides = array<i32>} : memref<20x96xf32, #tpu.memory_space<vmem>>, vector<2x4xf32>,
    %c2_310 = arith.constant 2 : index
    %c0_311 = arith.constant 0 : index
    %515 = vector.load %arg11[%c2_310, %c0_311] : memref<20x96xf32, #tpu.memory_space<vmem>>, vector<2x4xf32>
    %cst_312 = arith.constant 5.000000e-01 : f32
    %516 = vector.broadcast %cst_312 : f32 to vector<2x4xf32>
    %517 = arith.mulf %513, %516 : vector<2x4xf32>
    %518 = arith.addf %517, %515 : vector<2x4xf32>
    %cst_313 = arith.constant 7.500000e-01 : f32
    %519 = vector.broadcast %cst_313 : f32 to vector<2x4xf32>
    %520 = arith.cmpf oge, %518, %519 : vector<2x4xf32>
    %521 = arith.extui %520 : vector<2x4xi1> to vector<2x4xi32>
    %522 = arith.sitofp %521 : vector<2x4xi32> to vector<2x4xf32>
    %cst_314 = arith.constant 7.500000e-01 : f32
    %523 = vector.broadcast %cst_314 : f32 to vector<2x4xf32>
    %524 = arith.mulf %522, %523 : vector<2x4xf32>
    %525 = arith.subf %518, %524 : vector<2x4xf32>
    %c2_315 = arith.constant 2 : index
    %c0_316 = arith.constant 0 : index
    %526 = vector.load %arg11[%c2_315, %c0_316] : memref<20x96xf32, #tpu.memory_space<vmem>>, vector<2x4xf32>
    tpu.vector_store %arg11[%c2_315, %c0_316], %522 {strides = array<i32>} : memref<20x96xf32, #tpu.memory_space<vmem>>, vector<2x4xf32>,
    %c4_317 = arith.constant 4 : index
    %c0_318 = arith.constant 0 : index
    %527 = vector.load %arg11[%c4_317, %c0_318] : memref<20x96xf32, #tpu.memory_space<vmem>>, vector<2x4xf32>
    %cst_319 = arith.constant 5.000000e-01 : f32
    %528 = vector.broadcast %cst_319 : f32 to vector<2x4xf32>
    %529 = arith.mulf %525, %528 : vector<2x4xf32>
    %530 = arith.addf %529, %527 : vector<2x4xf32>
    %cst_320 = arith.constant 7.500000e-01 : f32
    %531 = vector.broadcast %cst_320 : f32 to vector<2x4xf32>
    %532 = arith.cmpf oge, %530, %531 : vector<2x4xf32>
    %533 = arith.extui %532 : vector<2x4xi1> to vector<2x4xi32>
    %534 = arith.sitofp %533 : vector<2x4xi32> to vector<2x4xf32>
    %cst_321 = arith.constant 7.500000e-01 : f32
    %535 = vector.broadcast %cst_321 : f32 to vector<2x4xf32>
    %536 = arith.mulf %534, %535 : vector<2x4xf32>
    %537 = arith.subf %530, %536 : vector<2x4xf32>
    %c4_322 = arith.constant 4 : index
    %c0_323 = arith.constant 0 : index
    %538 = vector.load %arg11[%c4_322, %c0_323] : memref<20x96xf32, #tpu.memory_space<vmem>>, vector<2x4xf32>
    tpu.vector_store %arg11[%c4_322, %c0_323], %534 {strides = array<i32>} : memref<20x96xf32, #tpu.memory_space<vmem>>, vector<2x4xf32>,
    %c6_324 = arith.constant 6 : index
    %c0_325 = arith.constant 0 : index
    %539 = vector.load %arg11[%c6_324, %c0_325] : memref<20x96xf32, #tpu.memory_space<vmem>>, vector<2x4xf32>
    %cst_326 = arith.constant 5.000000e-01 : f32
    %540 = vector.broadcast %cst_326 : f32 to vector<2x4xf32>
    %541 = arith.mulf %537, %540 : vector<2x4xf32>
    %542 = arith.addf %541, %539 : vector<2x4xf32>
    %cst_327 = arith.constant 7.500000e-01 : f32
    %543 = vector.broadcast %cst_327 : f32 to vector<2x4xf32>
    %544 = arith.cmpf oge, %542, %543 : vector<2x4xf32>
    %545 = arith.extui %544 : vector<2x4xi1> to vector<2x4xi32>
    %546 = arith.sitofp %545 : vector<2x4xi32> to vector<2x4xf32>
    %cst_328 = arith.constant 7.500000e-01 : f32
    %547 = vector.broadcast %cst_328 : f32 to vector<2x4xf32>
    %548 = arith.mulf %546, %547 : vector<2x4xf32>
    %549 = arith.subf %542, %548 : vector<2x4xf32>
    %c6_329 = arith.constant 6 : index
    %c0_330 = arith.constant 0 : index
    %550 = vector.load %arg11[%c6_329, %c0_330] : memref<20x96xf32, #tpu.memory_space<vmem>>, vector<2x4xf32>
    tpu.vector_store %arg11[%c6_329, %c0_330], %546 {strides = array<i32>} : memref<20x96xf32, #tpu.memory_space<vmem>>, vector<2x4xf32>,
    %c8_331 = arith.constant 8 : index
    %c0_332 = arith.constant 0 : index
    %551 = vector.load %arg11[%c8_331, %c0_332] : memref<20x96xf32, #tpu.memory_space<vmem>>, vector<2x4xf32>
    %cst_333 = arith.constant 5.000000e-01 : f32
    %552 = vector.broadcast %cst_333 : f32 to vector<2x4xf32>
    %553 = arith.mulf %549, %552 : vector<2x4xf32>
    %554 = arith.addf %553, %551 : vector<2x4xf32>
    %cst_334 = arith.constant 7.500000e-01 : f32
    %555 = vector.broadcast %cst_334 : f32 to vector<2x4xf32>
    %556 = arith.cmpf oge, %554, %555 : vector<2x4xf32>
    %557 = arith.extui %556 : vector<2x4xi1> to vector<2x4xi32>
    %558 = arith.sitofp %557 : vector<2x4xi32> to vector<2x4xf32>
    %cst_335 = arith.constant 7.500000e-01 : f32
    %559 = vector.broadcast %cst_335 : f32 to vector<2x4xf32>
    %560 = arith.mulf %558, %559 : vector<2x4xf32>
    %561 = arith.subf %554, %560 : vector<2x4xf32>
    %c8_336 = arith.constant 8 : index
    %c0_337 = arith.constant 0 : index
    %562 = vector.load %arg11[%c8_336, %c0_337] : memref<20x96xf32, #tpu.memory_space<vmem>>, vector<2x4xf32>
    tpu.vector_store %arg11[%c8_336, %c0_337], %558 {strides = array<i32>} : memref<20x96xf32, #tpu.memory_space<vmem>>, vector<2x4xf32>,
    %c10_338 = arith.constant 10 : index
    %c0_339 = arith.constant 0 : index
    %563 = vector.load %arg11[%c10_338, %c0_339] : memref<20x96xf32, #tpu.memory_space<vmem>>, vector<2x4xf32>
    %cst_340 = arith.constant 5.000000e-01 : f32
    %564 = vector.broadcast %cst_340 : f32 to vector<2x4xf32>
    %565 = arith.mulf %561, %564 : vector<2x4xf32>
    %566 = arith.addf %565, %563 : vector<2x4xf32>
    %cst_341 = arith.constant 7.500000e-01 : f32
    %567 = vector.broadcast %cst_341 : f32 to vector<2x4xf32>
    %568 = arith.cmpf oge, %566, %567 : vector<2x4xf32>
    %569 = arith.extui %568 : vector<2x4xi1> to vector<2x4xi32>
    %570 = arith.sitofp %569 : vector<2x4xi32> to vector<2x4xf32>
    %cst_342 = arith.constant 7.500000e-01 : f32
    %571 = vector.broadcast %cst_342 : f32 to vector<2x4xf32>
    %572 = arith.mulf %570, %571 : vector<2x4xf32>
    %573 = arith.subf %566, %572 : vector<2x4xf32>
    %c10_343 = arith.constant 10 : index
    %c0_344 = arith.constant 0 : index
    %574 = vector.load %arg11[%c10_343, %c0_344] : memref<20x96xf32, #tpu.memory_space<vmem>>, vector<2x4xf32>
    tpu.vector_store %arg11[%c10_343, %c0_344], %570 {strides = array<i32>} : memref<20x96xf32, #tpu.memory_space<vmem>>, vector<2x4xf32>,
    %c12_345 = arith.constant 12 : index
    %c0_346 = arith.constant 0 : index
    %575 = vector.load %arg11[%c12_345, %c0_346] : memref<20x96xf32, #tpu.memory_space<vmem>>, vector<2x4xf32>
    %cst_347 = arith.constant 5.000000e-01 : f32
    %576 = vector.broadcast %cst_347 : f32 to vector<2x4xf32>
    %577 = arith.mulf %573, %576 : vector<2x4xf32>
    %578 = arith.addf %577, %575 : vector<2x4xf32>
    %cst_348 = arith.constant 7.500000e-01 : f32
    %579 = vector.broadcast %cst_348 : f32 to vector<2x4xf32>
    %580 = arith.cmpf oge, %578, %579 : vector<2x4xf32>
    %581 = arith.extui %580 : vector<2x4xi1> to vector<2x4xi32>
    %582 = arith.sitofp %581 : vector<2x4xi32> to vector<2x4xf32>
    %cst_349 = arith.constant 7.500000e-01 : f32
    %583 = vector.broadcast %cst_349 : f32 to vector<2x4xf32>
    %584 = arith.mulf %582, %583 : vector<2x4xf32>
    %585 = arith.subf %578, %584 : vector<2x4xf32>
    %c12_350 = arith.constant 12 : index
    %c0_351 = arith.constant 0 : index
    %586 = vector.load %arg11[%c12_350, %c0_351] : memref<20x96xf32, #tpu.memory_space<vmem>>, vector<2x4xf32>
    tpu.vector_store %arg11[%c12_350, %c0_351], %582 {strides = array<i32>} : memref<20x96xf32, #tpu.memory_space<vmem>>, vector<2x4xf32>,
    %c14_352 = arith.constant 14 : index
    %c0_353 = arith.constant 0 : index
    %587 = vector.load %arg11[%c14_352, %c0_353] : memref<20x96xf32, #tpu.memory_space<vmem>>, vector<2x4xf32>
    %cst_354 = arith.constant 5.000000e-01 : f32
    %588 = vector.broadcast %cst_354 : f32 to vector<2x4xf32>
    %589 = arith.mulf %585, %588 : vector<2x4xf32>
    %590 = arith.addf %589, %587 : vector<2x4xf32>
    %cst_355 = arith.constant 7.500000e-01 : f32
    %591 = vector.broadcast %cst_355 : f32 to vector<2x4xf32>
    %592 = arith.cmpf oge, %590, %591 : vector<2x4xf32>
    %593 = arith.extui %592 : vector<2x4xi1> to vector<2x4xi32>
    %594 = arith.sitofp %593 : vector<2x4xi32> to vector<2x4xf32>
    %cst_356 = arith.constant 7.500000e-01 : f32
    %595 = vector.broadcast %cst_356 : f32 to vector<2x4xf32>
    %596 = arith.mulf %594, %595 : vector<2x4xf32>
    %597 = arith.subf %590, %596 : vector<2x4xf32>
    %c14_357 = arith.constant 14 : index
    %c0_358 = arith.constant 0 : index
    %598 = vector.load %arg11[%c14_357, %c0_358] : memref<20x96xf32, #tpu.memory_space<vmem>>, vector<2x4xf32>
    tpu.vector_store %arg11[%c14_357, %c0_358], %594 {strides = array<i32>} : memref<20x96xf32, #tpu.memory_space<vmem>>, vector<2x4xf32>,
    %c16_359 = arith.constant 16 : index
    %c0_360 = arith.constant 0 : index
    %599 = vector.load %arg11[%c16_359, %c0_360] : memref<20x96xf32, #tpu.memory_space<vmem>>, vector<2x4xf32>
    %cst_361 = arith.constant 5.000000e-01 : f32
    %600 = vector.broadcast %cst_361 : f32 to vector<2x4xf32>
    %601 = arith.mulf %597, %600 : vector<2x4xf32>
    %602 = arith.addf %601, %599 : vector<2x4xf32>
    %cst_362 = arith.constant 7.500000e-01 : f32
    %603 = vector.broadcast %cst_362 : f32 to vector<2x4xf32>
    %604 = arith.cmpf oge, %602, %603 : vector<2x4xf32>
    %605 = arith.extui %604 : vector<2x4xi1> to vector<2x4xi32>
    %606 = arith.sitofp %605 : vector<2x4xi32> to vector<2x4xf32>
    %cst_363 = arith.constant 7.500000e-01 : f32
    %607 = vector.broadcast %cst_363 : f32 to vector<2x4xf32>
    %608 = arith.mulf %606, %607 : vector<2x4xf32>
    %609 = arith.subf %602, %608 : vector<2x4xf32>
    %c16_364 = arith.constant 16 : index
    %c0_365 = arith.constant 0 : index
    %610 = vector.load %arg11[%c16_364, %c0_365] : memref<20x96xf32, #tpu.memory_space<vmem>>, vector<2x4xf32>
    tpu.vector_store %arg11[%c16_364, %c0_365], %606 {strides = array<i32>} : memref<20x96xf32, #tpu.memory_space<vmem>>, vector<2x4xf32>,
    %c18_366 = arith.constant 18 : index
    %c0_367 = arith.constant 0 : index
    %611 = vector.load %arg11[%c18_366, %c0_367] : memref<20x96xf32, #tpu.memory_space<vmem>>, vector<2x4xf32>
    %cst_368 = arith.constant 5.000000e-01 : f32
    %612 = vector.broadcast %cst_368 : f32 to vector<2x4xf32>
    %613 = arith.mulf %609, %612 : vector<2x4xf32>
    %614 = arith.addf %613, %611 : vector<2x4xf32>
    %cst_369 = arith.constant 7.500000e-01 : f32
    %615 = vector.broadcast %cst_369 : f32 to vector<2x4xf32>
    %616 = arith.cmpf oge, %614, %615 : vector<2x4xf32>
    %617 = arith.extui %616 : vector<2x4xi1> to vector<2x4xi32>
    %618 = arith.sitofp %617 : vector<2x4xi32> to vector<2x4xf32>
    %c18_370 = arith.constant 18 : index
    %c0_371 = arith.constant 0 : index
    %619 = vector.load %arg11[%c18_370, %c0_371] : memref<20x96xf32, #tpu.memory_space<vmem>>, vector<2x4xf32>
    tpu.vector_store %arg11[%c18_370, %c0_371], %618 {strides = array<i32>} : memref<20x96xf32, #tpu.memory_space<vmem>>, vector<2x4xf32>,
    %c0_372 = arith.constant 0 : index
    %c0_373 = arith.constant 0 : index
    %620 = vector.load %arg11[%c0_372, %c0_373] : memref<20x96xf32, #tpu.memory_space<vmem>>, vector<20x4xf32>
    %621 = arith.mulf %620, %620 : vector<20x4xf32>
    %cst_374 = arith.constant dense<0.000000e+00> : vector<20xf32>
    %622 = vector.multi_reduction <add>, %621, %cst_374 [1] : vector<20x4xf32> to vector<20xf32>
    %623 = vector.shape_cast %622 : vector<20xf32> to vector<20x1xf32>
    %624 = math.sqrt %623 : vector<20x1xf32>
    %cst_375 = arith.constant 9.99999996E-13 : f32
    %625 = vector.broadcast %cst_375 : f32 to vector<20x1xf32>
    %626 = arith.addf %624, %625 : vector<20x1xf32>
    %627 = tpu.reciprocal %626 {approx = true} : vector<20x1xf32> -> vector<20x1xf32>
    %628 = vector.broadcast %627 : vector<20x1xf32> to vector<20x4xf32>
    %629 = arith.mulf %620, %628 : vector<20x4xf32>
    %c0_376 = arith.constant 0 : index
    %c0_377 = arith.constant 0 : index
    %630 = vector.load %arg11[%c0_376, %c0_377] : memref<20x96xf32, #tpu.memory_space<vmem>>, vector<20x4xf32>
    tpu.vector_store %arg11[%c0_376, %c0_377], %629 {strides = array<i32>} : memref<20x96xf32, #tpu.memory_space<vmem>>, vector<20x4xf32>,
    %c0_378 = arith.constant 0 : index
    %c0_379 = arith.constant 0 : index
    %631 = vector.load %arg11[%c0_378, %c0_379] : memref<20x96xf32, #tpu.memory_space<vmem>>, vector<20x4xf32>
    %632 = arith.truncf %631 : vector<20x4xf32> to vector<20x4xbf16>
    %c0_380 = arith.constant 0 : index
    %c0_381 = arith.constant 0 : index
    %633 = vector.load %arg6[%c0_380, %c0_381] : memref<4x32xbf16, #tpu.memory_space<vmem>>, vector<4x32xbf16>
    %cst_382 = arith.constant dense<0.000000e+00> : vector<20x32xf32>
    %634 = tpu.matmul %632, %633, %cst_382 {dimension_numbers = #tpu.dot_dimension_numbers<[1], [0], [0], [1], [0, 0, 1, 1], [], []>} : vector<20x4xbf16>, vector<4x32xbf16>, vector<20x32xf32> -> vector<20x32xf32>
    %c0_383 = arith.constant 0 : index
    %c0_384 = arith.constant 0 : index
    %635 = vector.load %arg11[%c0_383, %c0_384] : memref<20x96xf32, #tpu.memory_space<vmem>>, vector<20x32xf32>
    tpu.vector_store %arg11[%c0_383, %c0_384], %634 {strides = array<i32>} : memref<20x96xf32, #tpu.memory_space<vmem>>, vector<20x32xf32>,
    %cst_385 = arith.constant 0.000000e+00 : f32
    %636 = vector.broadcast %cst_385 : f32 to vector<2x32xf32>
    %c0_386 = arith.constant 0 : index
    %c0_387 = arith.constant 0 : index
    %637 = vector.load %arg11[%c0_386, %c0_387] : memref<20x96xf32, #tpu.memory_space<vmem>>, vector<2x32xf32>
    %cst_388 = arith.constant 5.000000e-01 : f32
    %638 = vector.broadcast %cst_388 : f32 to vector<2x32xf32>
    %639 = arith.mulf %636, %638 : vector<2x32xf32>
    %640 = arith.addf %639, %637 : vector<2x32xf32>
    %cst_389 = arith.constant 7.500000e-01 : f32
    %641 = vector.broadcast %cst_389 : f32 to vector<2x32xf32>
    %642 = arith.cmpf oge, %640, %641 : vector<2x32xf32>
    %643 = arith.extui %642 : vector<2x32xi1> to vector<2x32xi32>
    %644 = arith.sitofp %643 : vector<2x32xi32> to vector<2x32xf32>
    %cst_390 = arith.constant 7.500000e-01 : f32
    %645 = vector.broadcast %cst_390 : f32 to vector<2x32xf32>
    %646 = arith.mulf %644, %645 : vector<2x32xf32>
    %647 = arith.subf %640, %646 : vector<2x32xf32>
    %c0_391 = arith.constant 0 : index
    %c0_392 = arith.constant 0 : index
    %648 = vector.load %arg11[%c0_391, %c0_392] : memref<20x96xf32, #tpu.memory_space<vmem>>, vector<2x32xf32>
    tpu.vector_store %arg11[%c0_391, %c0_392], %644 {strides = array<i32>} : memref<20x96xf32, #tpu.memory_space<vmem>>, vector<2x32xf32>,
    %c2_393 = arith.constant 2 : index
    %c0_394 = arith.constant 0 : index
    %649 = vector.load %arg11[%c2_393, %c0_394] : memref<20x96xf32, #tpu.memory_space<vmem>>, vector<2x32xf32>
    %cst_395 = arith.constant 5.000000e-01 : f32
    %650 = vector.broadcast %cst_395 : f32 to vector<2x32xf32>
    %651 = arith.mulf %647, %650 : vector<2x32xf32>
    %652 = arith.addf %651, %649 : vector<2x32xf32>
    %cst_396 = arith.constant 7.500000e-01 : f32
    %653 = vector.broadcast %cst_396 : f32 to vector<2x32xf32>
    %654 = arith.cmpf oge, %652, %653 : vector<2x32xf32>
    %655 = arith.extui %654 : vector<2x32xi1> to vector<2x32xi32>
    %656 = arith.sitofp %655 : vector<2x32xi32> to vector<2x32xf32>
    %cst_397 = arith.constant 7.500000e-01 : f32
    %657 = vector.broadcast %cst_397 : f32 to vector<2x32xf32>
    %658 = arith.mulf %656, %657 : vector<2x32xf32>
    %659 = arith.subf %652, %658 : vector<2x32xf32>
    %c2_398 = arith.constant 2 : index
    %c0_399 = arith.constant 0 : index
    %660 = vector.load %arg11[%c2_398, %c0_399] : memref<20x96xf32, #tpu.memory_space<vmem>>, vector<2x32xf32>
    tpu.vector_store %arg11[%c2_398, %c0_399], %656 {strides = array<i32>} : memref<20x96xf32, #tpu.memory_space<vmem>>, vector<2x32xf32>,
    %c4_400 = arith.constant 4 : index
    %c0_401 = arith.constant 0 : index
    %661 = vector.load %arg11[%c4_400, %c0_401] : memref<20x96xf32, #tpu.memory_space<vmem>>, vector<2x32xf32>
    %cst_402 = arith.constant 5.000000e-01 : f32
    %662 = vector.broadcast %cst_402 : f32 to vector<2x32xf32>
    %663 = arith.mulf %659, %662 : vector<2x32xf32>
    %664 = arith.addf %663, %661 : vector<2x32xf32>
    %cst_403 = arith.constant 7.500000e-01 : f32
    %665 = vector.broadcast %cst_403 : f32 to vector<2x32xf32>
    %666 = arith.cmpf oge, %664, %665 : vector<2x32xf32>
    %667 = arith.extui %666 : vector<2x32xi1> to vector<2x32xi32>
    %668 = arith.sitofp %667 : vector<2x32xi32> to vector<2x32xf32>
    %cst_404 = arith.constant 7.500000e-01 : f32
    %669 = vector.broadcast %cst_404 : f32 to vector<2x32xf32>
    %670 = arith.mulf %668, %669 : vector<2x32xf32>
    %671 = arith.subf %664, %670 : vector<2x32xf32>
    %c4_405 = arith.constant 4 : index
    %c0_406 = arith.constant 0 : index
    %672 = vector.load %arg11[%c4_405, %c0_406] : memref<20x96xf32, #tpu.memory_space<vmem>>, vector<2x32xf32>
    tpu.vector_store %arg11[%c4_405, %c0_406], %668 {strides = array<i32>} : memref<20x96xf32, #tpu.memory_space<vmem>>, vector<2x32xf32>,
    %c6_407 = arith.constant 6 : index
    %c0_408 = arith.constant 0 : index
    %673 = vector.load %arg11[%c6_407, %c0_408] : memref<20x96xf32, #tpu.memory_space<vmem>>, vector<2x32xf32>
    %cst_409 = arith.constant 5.000000e-01 : f32
    %674 = vector.broadcast %cst_409 : f32 to vector<2x32xf32>
    %675 = arith.mulf %671, %674 : vector<2x32xf32>
    %676 = arith.addf %675, %673 : vector<2x32xf32>
    %cst_410 = arith.constant 7.500000e-01 : f32
    %677 = vector.broadcast %cst_410 : f32 to vector<2x32xf32>
    %678 = arith.cmpf oge, %676, %677 : vector<2x32xf32>
    %679 = arith.extui %678 : vector<2x32xi1> to vector<2x32xi32>
    %680 = arith.sitofp %679 : vector<2x32xi32> to vector<2x32xf32>
    %cst_411 = arith.constant 7.500000e-01 : f32
    %681 = vector.broadcast %cst_411 : f32 to vector<2x32xf32>
    %682 = arith.mulf %680, %681 : vector<2x32xf32>
    %683 = arith.subf %676, %682 : vector<2x32xf32>
    %c6_412 = arith.constant 6 : index
    %c0_413 = arith.constant 0 : index
    %684 = vector.load %arg11[%c6_412, %c0_413] : memref<20x96xf32, #tpu.memory_space<vmem>>, vector<2x32xf32>
    tpu.vector_store %arg11[%c6_412, %c0_413], %680 {strides = array<i32>} : memref<20x96xf32, #tpu.memory_space<vmem>>, vector<2x32xf32>,
    %c8_414 = arith.constant 8 : index
    %c0_415 = arith.constant 0 : index
    %685 = vector.load %arg11[%c8_414, %c0_415] : memref<20x96xf32, #tpu.memory_space<vmem>>, vector<2x32xf32>
    %cst_416 = arith.constant 5.000000e-01 : f32
    %686 = vector.broadcast %cst_416 : f32 to vector<2x32xf32>
    %687 = arith.mulf %683, %686 : vector<2x32xf32>
    %688 = arith.addf %687, %685 : vector<2x32xf32>
    %cst_417 = arith.constant 7.500000e-01 : f32
    %689 = vector.broadcast %cst_417 : f32 to vector<2x32xf32>
    %690 = arith.cmpf oge, %688, %689 : vector<2x32xf32>
    %691 = arith.extui %690 : vector<2x32xi1> to vector<2x32xi32>
    %692 = arith.sitofp %691 : vector<2x32xi32> to vector<2x32xf32>
    %cst_418 = arith.constant 7.500000e-01 : f32
    %693 = vector.broadcast %cst_418 : f32 to vector<2x32xf32>
    %694 = arith.mulf %692, %693 : vector<2x32xf32>
    %695 = arith.subf %688, %694 : vector<2x32xf32>
    %c8_419 = arith.constant 8 : index
    %c0_420 = arith.constant 0 : index
    %696 = vector.load %arg11[%c8_419, %c0_420] : memref<20x96xf32, #tpu.memory_space<vmem>>, vector<2x32xf32>
    tpu.vector_store %arg11[%c8_419, %c0_420], %692 {strides = array<i32>} : memref<20x96xf32, #tpu.memory_space<vmem>>, vector<2x32xf32>,
    %c10_421 = arith.constant 10 : index
    %c0_422 = arith.constant 0 : index
    %697 = vector.load %arg11[%c10_421, %c0_422] : memref<20x96xf32, #tpu.memory_space<vmem>>, vector<2x32xf32>
    %cst_423 = arith.constant 5.000000e-01 : f32
    %698 = vector.broadcast %cst_423 : f32 to vector<2x32xf32>
    %699 = arith.mulf %695, %698 : vector<2x32xf32>
    %700 = arith.addf %699, %697 : vector<2x32xf32>
    %cst_424 = arith.constant 7.500000e-01 : f32
    %701 = vector.broadcast %cst_424 : f32 to vector<2x32xf32>
    %702 = arith.cmpf oge, %700, %701 : vector<2x32xf32>
    %703 = arith.extui %702 : vector<2x32xi1> to vector<2x32xi32>
    %704 = arith.sitofp %703 : vector<2x32xi32> to vector<2x32xf32>
    %cst_425 = arith.constant 7.500000e-01 : f32
    %705 = vector.broadcast %cst_425 : f32 to vector<2x32xf32>
    %706 = arith.mulf %704, %705 : vector<2x32xf32>
    %707 = arith.subf %700, %706 : vector<2x32xf32>
    %c10_426 = arith.constant 10 : index
    %c0_427 = arith.constant 0 : index
    %708 = vector.load %arg11[%c10_426, %c0_427] : memref<20x96xf32, #tpu.memory_space<vmem>>, vector<2x32xf32>
    tpu.vector_store %arg11[%c10_426, %c0_427], %704 {strides = array<i32>} : memref<20x96xf32, #tpu.memory_space<vmem>>, vector<2x32xf32>,
    %c12_428 = arith.constant 12 : index
    %c0_429 = arith.constant 0 : index
    %709 = vector.load %arg11[%c12_428, %c0_429] : memref<20x96xf32, #tpu.memory_space<vmem>>, vector<2x32xf32>
    %cst_430 = arith.constant 5.000000e-01 : f32
    %710 = vector.broadcast %cst_430 : f32 to vector<2x32xf32>
    %711 = arith.mulf %707, %710 : vector<2x32xf32>
    %712 = arith.addf %711, %709 : vector<2x32xf32>
    %cst_431 = arith.constant 7.500000e-01 : f32
    %713 = vector.broadcast %cst_431 : f32 to vector<2x32xf32>
    %714 = arith.cmpf oge, %712, %713 : vector<2x32xf32>
    %715 = arith.extui %714 : vector<2x32xi1> to vector<2x32xi32>
    %716 = arith.sitofp %715 : vector<2x32xi32> to vector<2x32xf32>
    %cst_432 = arith.constant 7.500000e-01 : f32
    %717 = vector.broadcast %cst_432 : f32 to vector<2x32xf32>
    %718 = arith.mulf %716, %717 : vector<2x32xf32>
    %719 = arith.subf %712, %718 : vector<2x32xf32>
    %c12_433 = arith.constant 12 : index
    %c0_434 = arith.constant 0 : index
    %720 = vector.load %arg11[%c12_433, %c0_434] : memref<20x96xf32, #tpu.memory_space<vmem>>, vector<2x32xf32>
    tpu.vector_store %arg11[%c12_433, %c0_434], %716 {strides = array<i32>} : memref<20x96xf32, #tpu.memory_space<vmem>>, vector<2x32xf32>,
    %c14_435 = arith.constant 14 : index
    %c0_436 = arith.constant 0 : index
    %721 = vector.load %arg11[%c14_435, %c0_436] : memref<20x96xf32, #tpu.memory_space<vmem>>, vector<2x32xf32>
    %cst_437 = arith.constant 5.000000e-01 : f32
    %722 = vector.broadcast %cst_437 : f32 to vector<2x32xf32>
    %723 = arith.mulf %719, %722 : vector<2x32xf32>
    %724 = arith.addf %723, %721 : vector<2x32xf32>
    %cst_438 = arith.constant 7.500000e-01 : f32
    %725 = vector.broadcast %cst_438 : f32 to vector<2x32xf32>
    %726 = arith.cmpf oge, %724, %725 : vector<2x32xf32>
    %727 = arith.extui %726 : vector<2x32xi1> to vector<2x32xi32>
    %728 = arith.sitofp %727 : vector<2x32xi32> to vector<2x32xf32>
    %cst_439 = arith.constant 7.500000e-01 : f32
    %729 = vector.broadcast %cst_439 : f32 to vector<2x32xf32>
    %730 = arith.mulf %728, %729 : vector<2x32xf32>
    %731 = arith.subf %724, %730 : vector<2x32xf32>
    %c14_440 = arith.constant 14 : index
    %c0_441 = arith.constant 0 : index
    %732 = vector.load %arg11[%c14_440, %c0_441] : memref<20x96xf32, #tpu.memory_space<vmem>>, vector<2x32xf32>
    tpu.vector_store %arg11[%c14_440, %c0_441], %728 {strides = array<i32>} : memref<20x96xf32, #tpu.memory_space<vmem>>, vector<2x32xf32>,
    %c16_442 = arith.constant 16 : index
    %c0_443 = arith.constant 0 : index
    %733 = vector.load %arg11[%c16_442, %c0_443] : memref<20x96xf32, #tpu.memory_space<vmem>>, vector<2x32xf32>
    %cst_444 = arith.constant 5.000000e-01 : f32
    %734 = vector.broadcast %cst_444 : f32 to vector<2x32xf32>
    %735 = arith.mulf %731, %734 : vector<2x32xf32>
    %736 = arith.addf %735, %733 : vector<2x32xf32>
    %cst_445 = arith.constant 7.500000e-01 : f32
    %737 = vector.broadcast %cst_445 : f32 to vector<2x32xf32>
    %738 = arith.cmpf oge, %736, %737 : vector<2x32xf32>
    %739 = arith.extui %738 : vector<2x32xi1> to vector<2x32xi32>
    %740 = arith.sitofp %739 : vector<2x32xi32> to vector<2x32xf32>
    %cst_446 = arith.constant 7.500000e-01 : f32
    %741 = vector.broadcast %cst_446 : f32 to vector<2x32xf32>
    %742 = arith.mulf %740, %741 : vector<2x32xf32>
    %743 = arith.subf %736, %742 : vector<2x32xf32>
    %c16_447 = arith.constant 16 : index
    %c0_448 = arith.constant 0 : index
    %744 = vector.load %arg11[%c16_447, %c0_448] : memref<20x96xf32, #tpu.memory_space<vmem>>, vector<2x32xf32>
    tpu.vector_store %arg11[%c16_447, %c0_448], %740 {strides = array<i32>} : memref<20x96xf32, #tpu.memory_space<vmem>>, vector<2x32xf32>,
    %c18_449 = arith.constant 18 : index
    %c0_450 = arith.constant 0 : index
    %745 = vector.load %arg11[%c18_449, %c0_450] : memref<20x96xf32, #tpu.memory_space<vmem>>, vector<2x32xf32>
    %cst_451 = arith.constant 5.000000e-01 : f32
    %746 = vector.broadcast %cst_451 : f32 to vector<2x32xf32>
    %747 = arith.mulf %743, %746 : vector<2x32xf32>
    %748 = arith.addf %747, %745 : vector<2x32xf32>
    %cst_452 = arith.constant 7.500000e-01 : f32
    %749 = vector.broadcast %cst_452 : f32 to vector<2x32xf32>
    %750 = arith.cmpf oge, %748, %749 : vector<2x32xf32>
    %751 = arith.extui %750 : vector<2x32xi1> to vector<2x32xi32>
    %752 = arith.sitofp %751 : vector<2x32xi32> to vector<2x32xf32>
    %c18_453 = arith.constant 18 : index
    %c0_454 = arith.constant 0 : index
    %753 = vector.load %arg11[%c18_453, %c0_454] : memref<20x96xf32, #tpu.memory_space<vmem>>, vector<2x32xf32>
    tpu.vector_store %arg11[%c18_453, %c0_454], %752 {strides = array<i32>} : memref<20x96xf32, #tpu.memory_space<vmem>>, vector<2x32xf32>,
    %c0_455 = arith.constant 0 : index
    %c0_456 = arith.constant 0 : index
    %754 = vector.load %arg11[%c0_455, %c0_456] : memref<20x96xf32, #tpu.memory_space<vmem>>, vector<20x32xf32>
    %755 = arith.truncf %754 : vector<20x32xf32> to vector<20x32xbf16>
    %c0_457 = arith.constant 0 : index
    %c0_458 = arith.constant 0 : index
    %756 = vector.load %arg7[%c0_457, %c0_458] : memref<32x64xbf16, #tpu.memory_space<vmem>>, vector<32x64xbf16>
    %cst_459 = arith.constant dense<0.000000e+00> : vector<20x64xf32>
    %757 = tpu.matmul %755, %756, %cst_459 {dimension_numbers = #tpu.dot_dimension_numbers<[1], [0], [0], [1], [0, 0, 1, 1], [], []>} : vector<20x32xbf16>, vector<32x64xbf16>, vector<20x64xf32> -> vector<20x64xf32>
    %c0_460 = arith.constant 0 : index
    %c0_461 = arith.constant 0 : index
    %758 = vector.load %arg11[%c0_460, %c0_461] : memref<20x96xf32, #tpu.memory_space<vmem>>, vector<20x64xf32>
    tpu.vector_store %arg11[%c0_460, %c0_461], %757 {strides = array<i32>} : memref<20x96xf32, #tpu.memory_space<vmem>>, vector<20x64xf32>,
    %cst_462 = arith.constant 0.000000e+00 : f32
    %759 = vector.broadcast %cst_462 : f32 to vector<2x64xf32>
    %c0_463 = arith.constant 0 : index
    %c0_464 = arith.constant 0 : index
    %760 = vector.load %arg11[%c0_463, %c0_464] : memref<20x96xf32, #tpu.memory_space<vmem>>, vector<2x64xf32>
    %cst_465 = arith.constant 5.000000e-01 : f32
    %761 = vector.broadcast %cst_465 : f32 to vector<2x64xf32>
    %762 = arith.mulf %759, %761 : vector<2x64xf32>
    %763 = arith.addf %762, %760 : vector<2x64xf32>
    %cst_466 = arith.constant 7.500000e-01 : f32
    %764 = vector.broadcast %cst_466 : f32 to vector<2x64xf32>
    %765 = arith.cmpf oge, %763, %764 : vector<2x64xf32>
    %766 = arith.extui %765 : vector<2x64xi1> to vector<2x64xi32>
    %767 = arith.sitofp %766 : vector<2x64xi32> to vector<2x64xf32>
    %cst_467 = arith.constant 7.500000e-01 : f32
    %768 = vector.broadcast %cst_467 : f32 to vector<2x64xf32>
    %769 = arith.mulf %767, %768 : vector<2x64xf32>
    %770 = arith.subf %763, %769 : vector<2x64xf32>
    %c0_468 = arith.constant 0 : index
    %c0_469 = arith.constant 0 : index
    %771 = vector.load %arg11[%c0_468, %c0_469] : memref<20x96xf32, #tpu.memory_space<vmem>>, vector<2x64xf32>
    tpu.vector_store %arg11[%c0_468, %c0_469], %767 {strides = array<i32>} : memref<20x96xf32, #tpu.memory_space<vmem>>, vector<2x64xf32>,
    %c2_470 = arith.constant 2 : index
    %c0_471 = arith.constant 0 : index
    %772 = vector.load %arg11[%c2_470, %c0_471] : memref<20x96xf32, #tpu.memory_space<vmem>>, vector<2x64xf32>
    %cst_472 = arith.constant 5.000000e-01 : f32
    %773 = vector.broadcast %cst_472 : f32 to vector<2x64xf32>
    %774 = arith.mulf %770, %773 : vector<2x64xf32>
    %775 = arith.addf %774, %772 : vector<2x64xf32>
    %cst_473 = arith.constant 7.500000e-01 : f32
    %776 = vector.broadcast %cst_473 : f32 to vector<2x64xf32>
    %777 = arith.cmpf oge, %775, %776 : vector<2x64xf32>
    %778 = arith.extui %777 : vector<2x64xi1> to vector<2x64xi32>
    %779 = arith.sitofp %778 : vector<2x64xi32> to vector<2x64xf32>
    %cst_474 = arith.constant 7.500000e-01 : f32
    %780 = vector.broadcast %cst_474 : f32 to vector<2x64xf32>
    %781 = arith.mulf %779, %780 : vector<2x64xf32>
    %782 = arith.subf %775, %781 : vector<2x64xf32>
    %c2_475 = arith.constant 2 : index
    %c0_476 = arith.constant 0 : index
    %783 = vector.load %arg11[%c2_475, %c0_476] : memref<20x96xf32, #tpu.memory_space<vmem>>, vector<2x64xf32>
    tpu.vector_store %arg11[%c2_475, %c0_476], %779 {strides = array<i32>} : memref<20x96xf32, #tpu.memory_space<vmem>>, vector<2x64xf32>,
    %c4_477 = arith.constant 4 : index
    %c0_478 = arith.constant 0 : index
    %784 = vector.load %arg11[%c4_477, %c0_478] : memref<20x96xf32, #tpu.memory_space<vmem>>, vector<2x64xf32>
    %cst_479 = arith.constant 5.000000e-01 : f32
    %785 = vector.broadcast %cst_479 : f32 to vector<2x64xf32>
    %786 = arith.mulf %782, %785 : vector<2x64xf32>
    %787 = arith.addf %786, %784 : vector<2x64xf32>
    %cst_480 = arith.constant 7.500000e-01 : f32
    %788 = vector.broadcast %cst_480 : f32 to vector<2x64xf32>
    %789 = arith.cmpf oge, %787, %788 : vector<2x64xf32>
    %790 = arith.extui %789 : vector<2x64xi1> to vector<2x64xi32>
    %791 = arith.sitofp %790 : vector<2x64xi32> to vector<2x64xf32>
    %cst_481 = arith.constant 7.500000e-01 : f32
    %792 = vector.broadcast %cst_481 : f32 to vector<2x64xf32>
    %793 = arith.mulf %791, %792 : vector<2x64xf32>
    %794 = arith.subf %787, %793 : vector<2x64xf32>
    %c4_482 = arith.constant 4 : index
    %c0_483 = arith.constant 0 : index
    %795 = vector.load %arg11[%c4_482, %c0_483] : memref<20x96xf32, #tpu.memory_space<vmem>>, vector<2x64xf32>
    tpu.vector_store %arg11[%c4_482, %c0_483], %791 {strides = array<i32>} : memref<20x96xf32, #tpu.memory_space<vmem>>, vector<2x64xf32>,
    %c6_484 = arith.constant 6 : index
    %c0_485 = arith.constant 0 : index
    %796 = vector.load %arg11[%c6_484, %c0_485] : memref<20x96xf32, #tpu.memory_space<vmem>>, vector<2x64xf32>
    %cst_486 = arith.constant 5.000000e-01 : f32
    %797 = vector.broadcast %cst_486 : f32 to vector<2x64xf32>
    %798 = arith.mulf %794, %797 : vector<2x64xf32>
    %799 = arith.addf %798, %796 : vector<2x64xf32>
    %cst_487 = arith.constant 7.500000e-01 : f32
    %800 = vector.broadcast %cst_487 : f32 to vector<2x64xf32>
    %801 = arith.cmpf oge, %799, %800 : vector<2x64xf32>
    %802 = arith.extui %801 : vector<2x64xi1> to vector<2x64xi32>
    %803 = arith.sitofp %802 : vector<2x64xi32> to vector<2x64xf32>
    %cst_488 = arith.constant 7.500000e-01 : f32
    %804 = vector.broadcast %cst_488 : f32 to vector<2x64xf32>
    %805 = arith.mulf %803, %804 : vector<2x64xf32>
    %806 = arith.subf %799, %805 : vector<2x64xf32>
    %c6_489 = arith.constant 6 : index
    %c0_490 = arith.constant 0 : index
    %807 = vector.load %arg11[%c6_489, %c0_490] : memref<20x96xf32, #tpu.memory_space<vmem>>, vector<2x64xf32>
    tpu.vector_store %arg11[%c6_489, %c0_490], %803 {strides = array<i32>} : memref<20x96xf32, #tpu.memory_space<vmem>>, vector<2x64xf32>,
    %c8_491 = arith.constant 8 : index
    %c0_492 = arith.constant 0 : index
    %808 = vector.load %arg11[%c8_491, %c0_492] : memref<20x96xf32, #tpu.memory_space<vmem>>, vector<2x64xf32>
    %cst_493 = arith.constant 5.000000e-01 : f32
    %809 = vector.broadcast %cst_493 : f32 to vector<2x64xf32>
    %810 = arith.mulf %806, %809 : vector<2x64xf32>
    %811 = arith.addf %810, %808 : vector<2x64xf32>
    %cst_494 = arith.constant 7.500000e-01 : f32
    %812 = vector.broadcast %cst_494 : f32 to vector<2x64xf32>
    %813 = arith.cmpf oge, %811, %812 : vector<2x64xf32>
    %814 = arith.extui %813 : vector<2x64xi1> to vector<2x64xi32>
    %815 = arith.sitofp %814 : vector<2x64xi32> to vector<2x64xf32>
    %cst_495 = arith.constant 7.500000e-01 : f32
    %816 = vector.broadcast %cst_495 : f32 to vector<2x64xf32>
    %817 = arith.mulf %815, %816 : vector<2x64xf32>
    %818 = arith.subf %811, %817 : vector<2x64xf32>
    %c8_496 = arith.constant 8 : index
    %c0_497 = arith.constant 0 : index
    %819 = vector.load %arg11[%c8_496, %c0_497] : memref<20x96xf32, #tpu.memory_space<vmem>>, vector<2x64xf32>
    tpu.vector_store %arg11[%c8_496, %c0_497], %815 {strides = array<i32>} : memref<20x96xf32, #tpu.memory_space<vmem>>, vector<2x64xf32>,
    %c10_498 = arith.constant 10 : index
    %c0_499 = arith.constant 0 : index
    %820 = vector.load %arg11[%c10_498, %c0_499] : memref<20x96xf32, #tpu.memory_space<vmem>>, vector<2x64xf32>
    %cst_500 = arith.constant 5.000000e-01 : f32
    %821 = vector.broadcast %cst_500 : f32 to vector<2x64xf32>
    %822 = arith.mulf %818, %821 : vector<2x64xf32>
    %823 = arith.addf %822, %820 : vector<2x64xf32>
    %cst_501 = arith.constant 7.500000e-01 : f32
    %824 = vector.broadcast %cst_501 : f32 to vector<2x64xf32>
    %825 = arith.cmpf oge, %823, %824 : vector<2x64xf32>
    %826 = arith.extui %825 : vector<2x64xi1> to vector<2x64xi32>
    %827 = arith.sitofp %826 : vector<2x64xi32> to vector<2x64xf32>
    %cst_502 = arith.constant 7.500000e-01 : f32
    %828 = vector.broadcast %cst_502 : f32 to vector<2x64xf32>
    %829 = arith.mulf %827, %828 : vector<2x64xf32>
    %830 = arith.subf %823, %829 : vector<2x64xf32>
    %c10_503 = arith.constant 10 : index
    %c0_504 = arith.constant 0 : index
    %831 = vector.load %arg11[%c10_503, %c0_504] : memref<20x96xf32, #tpu.memory_space<vmem>>, vector<2x64xf32>
    tpu.vector_store %arg11[%c10_503, %c0_504], %827 {strides = array<i32>} : memref<20x96xf32, #tpu.memory_space<vmem>>, vector<2x64xf32>,
    %c12_505 = arith.constant 12 : index
    %c0_506 = arith.constant 0 : index
    %832 = vector.load %arg11[%c12_505, %c0_506] : memref<20x96xf32, #tpu.memory_space<vmem>>, vector<2x64xf32>
    %cst_507 = arith.constant 5.000000e-01 : f32
    %833 = vector.broadcast %cst_507 : f32 to vector<2x64xf32>
    %834 = arith.mulf %830, %833 : vector<2x64xf32>
    %835 = arith.addf %834, %832 : vector<2x64xf32>
    %cst_508 = arith.constant 7.500000e-01 : f32
    %836 = vector.broadcast %cst_508 : f32 to vector<2x64xf32>
    %837 = arith.cmpf oge, %835, %836 : vector<2x64xf32>
    %838 = arith.extui %837 : vector<2x64xi1> to vector<2x64xi32>
    %839 = arith.sitofp %838 : vector<2x64xi32> to vector<2x64xf32>
    %cst_509 = arith.constant 7.500000e-01 : f32
    %840 = vector.broadcast %cst_509 : f32 to vector<2x64xf32>
    %841 = arith.mulf %839, %840 : vector<2x64xf32>
    %842 = arith.subf %835, %841 : vector<2x64xf32>
    %c12_510 = arith.constant 12 : index
    %c0_511 = arith.constant 0 : index
    %843 = vector.load %arg11[%c12_510, %c0_511] : memref<20x96xf32, #tpu.memory_space<vmem>>, vector<2x64xf32>
    tpu.vector_store %arg11[%c12_510, %c0_511], %839 {strides = array<i32>} : memref<20x96xf32, #tpu.memory_space<vmem>>, vector<2x64xf32>,
    %c14_512 = arith.constant 14 : index
    %c0_513 = arith.constant 0 : index
    %844 = vector.load %arg11[%c14_512, %c0_513] : memref<20x96xf32, #tpu.memory_space<vmem>>, vector<2x64xf32>
    %cst_514 = arith.constant 5.000000e-01 : f32
    %845 = vector.broadcast %cst_514 : f32 to vector<2x64xf32>
    %846 = arith.mulf %842, %845 : vector<2x64xf32>
    %847 = arith.addf %846, %844 : vector<2x64xf32>
    %cst_515 = arith.constant 7.500000e-01 : f32
    %848 = vector.broadcast %cst_515 : f32 to vector<2x64xf32>
    %849 = arith.cmpf oge, %847, %848 : vector<2x64xf32>
    %850 = arith.extui %849 : vector<2x64xi1> to vector<2x64xi32>
    %851 = arith.sitofp %850 : vector<2x64xi32> to vector<2x64xf32>
    %cst_516 = arith.constant 7.500000e-01 : f32
    %852 = vector.broadcast %cst_516 : f32 to vector<2x64xf32>
    %853 = arith.mulf %851, %852 : vector<2x64xf32>
    %854 = arith.subf %847, %853 : vector<2x64xf32>
    %c14_517 = arith.constant 14 : index
    %c0_518 = arith.constant 0 : index
    %855 = vector.load %arg11[%c14_517, %c0_518] : memref<20x96xf32, #tpu.memory_space<vmem>>, vector<2x64xf32>
    tpu.vector_store %arg11[%c14_517, %c0_518], %851 {strides = array<i32>} : memref<20x96xf32, #tpu.memory_space<vmem>>, vector<2x64xf32>,
    %c16_519 = arith.constant 16 : index
    %c0_520 = arith.constant 0 : index
    %856 = vector.load %arg11[%c16_519, %c0_520] : memref<20x96xf32, #tpu.memory_space<vmem>>, vector<2x64xf32>
    %cst_521 = arith.constant 5.000000e-01 : f32
    %857 = vector.broadcast %cst_521 : f32 to vector<2x64xf32>
    %858 = arith.mulf %854, %857 : vector<2x64xf32>
    %859 = arith.addf %858, %856 : vector<2x64xf32>
    %cst_522 = arith.constant 7.500000e-01 : f32
    %860 = vector.broadcast %cst_522 : f32 to vector<2x64xf32>
    %861 = arith.cmpf oge, %859, %860 : vector<2x64xf32>
    %862 = arith.extui %861 : vector<2x64xi1> to vector<2x64xi32>
    %863 = arith.sitofp %862 : vector<2x64xi32> to vector<2x64xf32>
    %cst_523 = arith.constant 7.500000e-01 : f32
    %864 = vector.broadcast %cst_523 : f32 to vector<2x64xf32>
    %865 = arith.mulf %863, %864 : vector<2x64xf32>
    %866 = arith.subf %859, %865 : vector<2x64xf32>
    %c16_524 = arith.constant 16 : index
    %c0_525 = arith.constant 0 : index
    %867 = vector.load %arg11[%c16_524, %c0_525] : memref<20x96xf32, #tpu.memory_space<vmem>>, vector<2x64xf32>
    tpu.vector_store %arg11[%c16_524, %c0_525], %863 {strides = array<i32>} : memref<20x96xf32, #tpu.memory_space<vmem>>, vector<2x64xf32>,
    %c18_526 = arith.constant 18 : index
    %c0_527 = arith.constant 0 : index
    %868 = vector.load %arg11[%c18_526, %c0_527] : memref<20x96xf32, #tpu.memory_space<vmem>>, vector<2x64xf32>
    %cst_528 = arith.constant 5.000000e-01 : f32
    %869 = vector.broadcast %cst_528 : f32 to vector<2x64xf32>
    %870 = arith.mulf %866, %869 : vector<2x64xf32>
    %871 = arith.addf %870, %868 : vector<2x64xf32>
    %cst_529 = arith.constant 7.500000e-01 : f32
    %872 = vector.broadcast %cst_529 : f32 to vector<2x64xf32>
    %873 = arith.cmpf oge, %871, %872 : vector<2x64xf32>
    %874 = arith.extui %873 : vector<2x64xi1> to vector<2x64xi32>
    %875 = arith.sitofp %874 : vector<2x64xi32> to vector<2x64xf32>
    %c18_530 = arith.constant 18 : index
    %c0_531 = arith.constant 0 : index
    %876 = vector.load %arg11[%c18_530, %c0_531] : memref<20x96xf32, #tpu.memory_space<vmem>>, vector<2x64xf32>
    tpu.vector_store %arg11[%c18_530, %c0_531], %875 {strides = array<i32>} : memref<20x96xf32, #tpu.memory_space<vmem>>, vector<2x64xf32>,
    %c0_532 = arith.constant 0 : index
    %c0_533 = arith.constant 0 : index
    %877 = vector.load %arg11[%c0_532, %c0_533] : memref<20x96xf32, #tpu.memory_space<vmem>>, vector<20x64xf32>
    %878 = arith.truncf %877 : vector<20x64xf32> to vector<20x64xbf16>
    %c0_534 = arith.constant 0 : index
    %c0_535 = arith.constant 0 : index
    %879 = vector.load %arg8[%c0_534, %c0_535] : memref<64x96xbf16, #tpu.memory_space<vmem>>, vector<64x96xbf16>
    %cst_536 = arith.constant dense<0.000000e+00> : vector<20x96xf32>
    %880 = tpu.matmul %878, %879, %cst_536 {dimension_numbers = #tpu.dot_dimension_numbers<[1], [0], [0], [1], [0, 0, 1, 1], [], []>} : vector<20x64xbf16>, vector<64x96xbf16>, vector<20x96xf32> -> vector<20x96xf32>
    %c0_537 = arith.constant 0 : index
    %c0_538 = arith.constant 0 : index
    %881 = vector.load %arg11[%c0_537, %c0_538] : memref<20x96xf32, #tpu.memory_space<vmem>>, vector<20x96xf32>
    tpu.vector_store %arg11[%c0_537, %c0_538], %880 {strides = array<i32>} : memref<20x96xf32, #tpu.memory_space<vmem>>, vector<20x96xf32>,
    %cst_539 = arith.constant 0.000000e+00 : f32
    %882 = vector.broadcast %cst_539 : f32 to vector<2x96xf32>
    %c0_540 = arith.constant 0 : index
    %c0_541 = arith.constant 0 : index
    %883 = vector.load %arg11[%c0_540, %c0_541] : memref<20x96xf32, #tpu.memory_space<vmem>>, vector<2x96xf32>
    %cst_542 = arith.constant 5.000000e-01 : f32
    %884 = vector.broadcast %cst_542 : f32 to vector<2x96xf32>
    %885 = arith.mulf %882, %884 : vector<2x96xf32>
    %886 = arith.addf %885, %883 : vector<2x96xf32>
    %cst_543 = arith.constant 7.500000e-01 : f32
    %887 = vector.broadcast %cst_543 : f32 to vector<2x96xf32>
    %888 = arith.cmpf oge, %886, %887 : vector<2x96xf32>
    %889 = arith.extui %888 : vector<2x96xi1> to vector<2x96xi32>
    %890 = arith.sitofp %889 : vector<2x96xi32> to vector<2x96xf32>
    %cst_544 = arith.constant 7.500000e-01 : f32
    %891 = vector.broadcast %cst_544 : f32 to vector<2x96xf32>
    %892 = arith.mulf %890, %891 : vector<2x96xf32>
    %893 = arith.subf %886, %892 : vector<2x96xf32>
    %c0_545 = arith.constant 0 : index
    %c0_546 = arith.constant 0 : index
    %894 = vector.load %arg11[%c0_545, %c0_546] : memref<20x96xf32, #tpu.memory_space<vmem>>, vector<2x96xf32>
    tpu.vector_store %arg11[%c0_545, %c0_546], %890 {strides = array<i32>} : memref<20x96xf32, #tpu.memory_space<vmem>>, vector<2x96xf32>,
    %c2_547 = arith.constant 2 : index
    %c0_548 = arith.constant 0 : index
    %895 = vector.load %arg11[%c2_547, %c0_548] : memref<20x96xf32, #tpu.memory_space<vmem>>, vector<2x96xf32>
    %cst_549 = arith.constant 5.000000e-01 : f32
    %896 = vector.broadcast %cst_549 : f32 to vector<2x96xf32>
    %897 = arith.mulf %893, %896 : vector<2x96xf32>
    %898 = arith.addf %897, %895 : vector<2x96xf32>
    %cst_550 = arith.constant 7.500000e-01 : f32
    %899 = vector.broadcast %cst_550 : f32 to vector<2x96xf32>
    %900 = arith.cmpf oge, %898, %899 : vector<2x96xf32>
    %901 = arith.extui %900 : vector<2x96xi1> to vector<2x96xi32>
    %902 = arith.sitofp %901 : vector<2x96xi32> to vector<2x96xf32>
    %cst_551 = arith.constant 7.500000e-01 : f32
    %903 = vector.broadcast %cst_551 : f32 to vector<2x96xf32>
    %904 = arith.mulf %902, %903 : vector<2x96xf32>
    %905 = arith.subf %898, %904 : vector<2x96xf32>
    %c2_552 = arith.constant 2 : index
    %c0_553 = arith.constant 0 : index
    %906 = vector.load %arg11[%c2_552, %c0_553] : memref<20x96xf32, #tpu.memory_space<vmem>>, vector<2x96xf32>
    tpu.vector_store %arg11[%c2_552, %c0_553], %902 {strides = array<i32>} : memref<20x96xf32, #tpu.memory_space<vmem>>, vector<2x96xf32>,
    %c4_554 = arith.constant 4 : index
    %c0_555 = arith.constant 0 : index
    %907 = vector.load %arg11[%c4_554, %c0_555] : memref<20x96xf32, #tpu.memory_space<vmem>>, vector<2x96xf32>
    %cst_556 = arith.constant 5.000000e-01 : f32
    %908 = vector.broadcast %cst_556 : f32 to vector<2x96xf32>
    %909 = arith.mulf %905, %908 : vector<2x96xf32>
    %910 = arith.addf %909, %907 : vector<2x96xf32>
    %cst_557 = arith.constant 7.500000e-01 : f32
    %911 = vector.broadcast %cst_557 : f32 to vector<2x96xf32>
    %912 = arith.cmpf oge, %910, %911 : vector<2x96xf32>
    %913 = arith.extui %912 : vector<2x96xi1> to vector<2x96xi32>
    %914 = arith.sitofp %913 : vector<2x96xi32> to vector<2x96xf32>
    %cst_558 = arith.constant 7.500000e-01 : f32
    %915 = vector.broadcast %cst_558 : f32 to vector<2x96xf32>
    %916 = arith.mulf %914, %915 : vector<2x96xf32>
    %917 = arith.subf %910, %916 : vector<2x96xf32>
    %c4_559 = arith.constant 4 : index
    %c0_560 = arith.constant 0 : index
    %918 = vector.load %arg11[%c4_559, %c0_560] : memref<20x96xf32, #tpu.memory_space<vmem>>, vector<2x96xf32>
    tpu.vector_store %arg11[%c4_559, %c0_560], %914 {strides = array<i32>} : memref<20x96xf32, #tpu.memory_space<vmem>>, vector<2x96xf32>,
    %c6_561 = arith.constant 6 : index
    %c0_562 = arith.constant 0 : index
    %919 = vector.load %arg11[%c6_561, %c0_562] : memref<20x96xf32, #tpu.memory_space<vmem>>, vector<2x96xf32>
    %cst_563 = arith.constant 5.000000e-01 : f32
    %920 = vector.broadcast %cst_563 : f32 to vector<2x96xf32>
    %921 = arith.mulf %917, %920 : vector<2x96xf32>
    %922 = arith.addf %921, %919 : vector<2x96xf32>
    %cst_564 = arith.constant 7.500000e-01 : f32
    %923 = vector.broadcast %cst_564 : f32 to vector<2x96xf32>
    %924 = arith.cmpf oge, %922, %923 : vector<2x96xf32>
    %925 = arith.extui %924 : vector<2x96xi1> to vector<2x96xi32>
    %926 = arith.sitofp %925 : vector<2x96xi32> to vector<2x96xf32>
    %cst_565 = arith.constant 7.500000e-01 : f32
    %927 = vector.broadcast %cst_565 : f32 to vector<2x96xf32>
    %928 = arith.mulf %926, %927 : vector<2x96xf32>
    %929 = arith.subf %922, %928 : vector<2x96xf32>
    %c6_566 = arith.constant 6 : index
    %c0_567 = arith.constant 0 : index
    %930 = vector.load %arg11[%c6_566, %c0_567] : memref<20x96xf32, #tpu.memory_space<vmem>>, vector<2x96xf32>
    tpu.vector_store %arg11[%c6_566, %c0_567], %926 {strides = array<i32>} : memref<20x96xf32, #tpu.memory_space<vmem>>, vector<2x96xf32>,
    %c8_568 = arith.constant 8 : index
    %c0_569 = arith.constant 0 : index
    %931 = vector.load %arg11[%c8_568, %c0_569] : memref<20x96xf32, #tpu.memory_space<vmem>>, vector<2x96xf32>
    %cst_570 = arith.constant 5.000000e-01 : f32
    %932 = vector.broadcast %cst_570 : f32 to vector<2x96xf32>
    %933 = arith.mulf %929, %932 : vector<2x96xf32>
    %934 = arith.addf %933, %931 : vector<2x96xf32>
    %cst_571 = arith.constant 7.500000e-01 : f32
    %935 = vector.broadcast %cst_571 : f32 to vector<2x96xf32>
    %936 = arith.cmpf oge, %934, %935 : vector<2x96xf32>
    %937 = arith.extui %936 : vector<2x96xi1> to vector<2x96xi32>
    %938 = arith.sitofp %937 : vector<2x96xi32> to vector<2x96xf32>
    %cst_572 = arith.constant 7.500000e-01 : f32
    %939 = vector.broadcast %cst_572 : f32 to vector<2x96xf32>
    %940 = arith.mulf %938, %939 : vector<2x96xf32>
    %941 = arith.subf %934, %940 : vector<2x96xf32>
    %c8_573 = arith.constant 8 : index
    %c0_574 = arith.constant 0 : index
    %942 = vector.load %arg11[%c8_573, %c0_574] : memref<20x96xf32, #tpu.memory_space<vmem>>, vector<2x96xf32>
    tpu.vector_store %arg11[%c8_573, %c0_574], %938 {strides = array<i32>} : memref<20x96xf32, #tpu.memory_space<vmem>>, vector<2x96xf32>,
    %c10_575 = arith.constant 10 : index
    %c0_576 = arith.constant 0 : index
    %943 = vector.load %arg11[%c10_575, %c0_576] : memref<20x96xf32, #tpu.memory_space<vmem>>, vector<2x96xf32>
    %cst_577 = arith.constant 5.000000e-01 : f32
    %944 = vector.broadcast %cst_577 : f32 to vector<2x96xf32>
    %945 = arith.mulf %941, %944 : vector<2x96xf32>
    %946 = arith.addf %945, %943 : vector<2x96xf32>
    %cst_578 = arith.constant 7.500000e-01 : f32
    %947 = vector.broadcast %cst_578 : f32 to vector<2x96xf32>
    %948 = arith.cmpf oge, %946, %947 : vector<2x96xf32>
    %949 = arith.extui %948 : vector<2x96xi1> to vector<2x96xi32>
    %950 = arith.sitofp %949 : vector<2x96xi32> to vector<2x96xf32>
    %cst_579 = arith.constant 7.500000e-01 : f32
    %951 = vector.broadcast %cst_579 : f32 to vector<2x96xf32>
    %952 = arith.mulf %950, %951 : vector<2x96xf32>
    %953 = arith.subf %946, %952 : vector<2x96xf32>
    %c10_580 = arith.constant 10 : index
    %c0_581 = arith.constant 0 : index
    %954 = vector.load %arg11[%c10_580, %c0_581] : memref<20x96xf32, #tpu.memory_space<vmem>>, vector<2x96xf32>
    tpu.vector_store %arg11[%c10_580, %c0_581], %950 {strides = array<i32>} : memref<20x96xf32, #tpu.memory_space<vmem>>, vector<2x96xf32>,
    %c12_582 = arith.constant 12 : index
    %c0_583 = arith.constant 0 : index
    %955 = vector.load %arg11[%c12_582, %c0_583] : memref<20x96xf32, #tpu.memory_space<vmem>>, vector<2x96xf32>
    %cst_584 = arith.constant 5.000000e-01 : f32
    %956 = vector.broadcast %cst_584 : f32 to vector<2x96xf32>
    %957 = arith.mulf %953, %956 : vector<2x96xf32>
    %958 = arith.addf %957, %955 : vector<2x96xf32>
    %cst_585 = arith.constant 7.500000e-01 : f32
    %959 = vector.broadcast %cst_585 : f32 to vector<2x96xf32>
    %960 = arith.cmpf oge, %958, %959 : vector<2x96xf32>
    %961 = arith.extui %960 : vector<2x96xi1> to vector<2x96xi32>
    %962 = arith.sitofp %961 : vector<2x96xi32> to vector<2x96xf32>
    %cst_586 = arith.constant 7.500000e-01 : f32
    %963 = vector.broadcast %cst_586 : f32 to vector<2x96xf32>
    %964 = arith.mulf %962, %963 : vector<2x96xf32>
    %965 = arith.subf %958, %964 : vector<2x96xf32>
    %c12_587 = arith.constant 12 : index
    %c0_588 = arith.constant 0 : index
    %966 = vector.load %arg11[%c12_587, %c0_588] : memref<20x96xf32, #tpu.memory_space<vmem>>, vector<2x96xf32>
    tpu.vector_store %arg11[%c12_587, %c0_588], %962 {strides = array<i32>} : memref<20x96xf32, #tpu.memory_space<vmem>>, vector<2x96xf32>,
    %c14_589 = arith.constant 14 : index
    %c0_590 = arith.constant 0 : index
    %967 = vector.load %arg11[%c14_589, %c0_590] : memref<20x96xf32, #tpu.memory_space<vmem>>, vector<2x96xf32>
    %cst_591 = arith.constant 5.000000e-01 : f32
    %968 = vector.broadcast %cst_591 : f32 to vector<2x96xf32>
    %969 = arith.mulf %965, %968 : vector<2x96xf32>
    %970 = arith.addf %969, %967 : vector<2x96xf32>
    %cst_592 = arith.constant 7.500000e-01 : f32
    %971 = vector.broadcast %cst_592 : f32 to vector<2x96xf32>
    %972 = arith.cmpf oge, %970, %971 : vector<2x96xf32>
    %973 = arith.extui %972 : vector<2x96xi1> to vector<2x96xi32>
    %974 = arith.sitofp %973 : vector<2x96xi32> to vector<2x96xf32>
    %cst_593 = arith.constant 7.500000e-01 : f32
    %975 = vector.broadcast %cst_593 : f32 to vector<2x96xf32>
    %976 = arith.mulf %974, %975 : vector<2x96xf32>
    %977 = arith.subf %970, %976 : vector<2x96xf32>
    %c14_594 = arith.constant 14 : index
    %c0_595 = arith.constant 0 : index
    %978 = vector.load %arg11[%c14_594, %c0_595] : memref<20x96xf32, #tpu.memory_space<vmem>>, vector<2x96xf32>
    tpu.vector_store %arg11[%c14_594, %c0_595], %974 {strides = array<i32>} : memref<20x96xf32, #tpu.memory_space<vmem>>, vector<2x96xf32>,
    %c16_596 = arith.constant 16 : index
    %c0_597 = arith.constant 0 : index
    %979 = vector.load %arg11[%c16_596, %c0_597] : memref<20x96xf32, #tpu.memory_space<vmem>>, vector<2x96xf32>
    %cst_598 = arith.constant 5.000000e-01 : f32
    %980 = vector.broadcast %cst_598 : f32 to vector<2x96xf32>
    %981 = arith.mulf %977, %980 : vector<2x96xf32>
    %982 = arith.addf %981, %979 : vector<2x96xf32>
    %cst_599 = arith.constant 7.500000e-01 : f32
    %983 = vector.broadcast %cst_599 : f32 to vector<2x96xf32>
    %984 = arith.cmpf oge, %982, %983 : vector<2x96xf32>
    %985 = arith.extui %984 : vector<2x96xi1> to vector<2x96xi32>
    %986 = arith.sitofp %985 : vector<2x96xi32> to vector<2x96xf32>
    %cst_600 = arith.constant 7.500000e-01 : f32
    %987 = vector.broadcast %cst_600 : f32 to vector<2x96xf32>
    %988 = arith.mulf %986, %987 : vector<2x96xf32>
    %989 = arith.subf %982, %988 : vector<2x96xf32>
    %c16_601 = arith.constant 16 : index
    %c0_602 = arith.constant 0 : index
    %990 = vector.load %arg11[%c16_601, %c0_602] : memref<20x96xf32, #tpu.memory_space<vmem>>, vector<2x96xf32>
    tpu.vector_store %arg11[%c16_601, %c0_602], %986 {strides = array<i32>} : memref<20x96xf32, #tpu.memory_space<vmem>>, vector<2x96xf32>,
    %c18_603 = arith.constant 18 : index
    %c0_604 = arith.constant 0 : index
    %991 = vector.load %arg11[%c18_603, %c0_604] : memref<20x96xf32, #tpu.memory_space<vmem>>, vector<2x96xf32>
    %cst_605 = arith.constant 5.000000e-01 : f32
    %992 = vector.broadcast %cst_605 : f32 to vector<2x96xf32>
    %993 = arith.mulf %989, %992 : vector<2x96xf32>
    %994 = arith.addf %993, %991 : vector<2x96xf32>
    %cst_606 = arith.constant 7.500000e-01 : f32
    %995 = vector.broadcast %cst_606 : f32 to vector<2x96xf32>
    %996 = arith.cmpf oge, %994, %995 : vector<2x96xf32>
    %997 = arith.extui %996 : vector<2x96xi1> to vector<2x96xi32>
    %998 = arith.sitofp %997 : vector<2x96xi32> to vector<2x96xf32>
    %c18_607 = arith.constant 18 : index
    %c0_608 = arith.constant 0 : index
    %999 = vector.load %arg11[%c18_607, %c0_608] : memref<20x96xf32, #tpu.memory_space<vmem>>, vector<2x96xf32>
    tpu.vector_store %arg11[%c18_607, %c0_608], %998 {strides = array<i32>} : memref<20x96xf32, #tpu.memory_space<vmem>>, vector<2x96xf32>,
    %c0_609 = arith.constant 0 : index
    %c0_610 = arith.constant 0 : index
    %1000 = vector.load %arg11[%c0_609, %c0_610] : memref<20x96xf32, #tpu.memory_space<vmem>>, vector<20x96xf32>
    %1001 = arith.truncf %1000 : vector<20x96xf32> to vector<20x96xbf16>
    %c0_611 = arith.constant 0 : index
    %c0_612 = arith.constant 0 : index
    %1002 = vector.load %arg9[%c0_611, %c0_612] : memref<96x50xbf16, #tpu.memory_space<vmem>>, vector<96x50xbf16>
    %cst_613 = arith.constant dense<0.000000e+00> : vector<20x50xf32>
    %1003 = tpu.matmul %1001, %1002, %cst_613 {dimension_numbers = #tpu.dot_dimension_numbers<[1], [0], [0], [1], [0, 0, 1, 1], [], []>} : vector<20x96xbf16>, vector<96x50xbf16>, vector<20x50xf32> -> vector<20x50xf32>
    %c0_614 = arith.constant 0 : index
    %c0_615 = arith.constant 0 : index
    %1004 = vector.load %arg11[%c0_614, %c0_615] : memref<20x96xf32, #tpu.memory_space<vmem>>, vector<20x50xf32>
    tpu.vector_store %arg11[%c0_614, %c0_615], %1003 {strides = array<i32>} : memref<20x96xf32, #tpu.memory_space<vmem>>, vector<20x50xf32>,
    %c0_616 = arith.constant 0 : index
    %c0_617 = arith.constant 0 : index
    %1005 = vector.load %arg11[%c0_616, %c0_617] : memref<20x96xf32, #tpu.memory_space<vmem>>, vector<2x50xf32>
    %c0_618 = arith.constant 0 : index
    %c0_619 = arith.constant 0 : index
    %c0_620 = arith.constant 0 : index
    %1006 = vector.load %arg10[%c0_618, %c0_619, %c0_620] : memref<10x2x50xf32, #tpu.memory_space<vmem>>, vector<1x2x50xf32>
    %1007 = vector.shape_cast %1006 : vector<1x2x50xf32> to vector<2x50xf32>
    %1008 = vector.shape_cast %1005 : vector<2x50xf32> to vector<1x2x50xf32>
    tpu.vector_store %arg10[%c0_618, %c0_619, %c0_620], %1008 {strides = array<i32>} : memref<10x2x50xf32, #tpu.memory_space<vmem>>, vector<1x2x50xf32>,
    %c2_621 = arith.constant 2 : index
    %c0_622 = arith.constant 0 : index
    %1009 = vector.load %arg11[%c2_621, %c0_622] : memref<20x96xf32, #tpu.memory_space<vmem>>, vector<2x50xf32>
    %c1_623 = arith.constant 1 : index
    %c0_624 = arith.constant 0 : index
    %c0_625 = arith.constant 0 : index
    %1010 = vector.load %arg10[%c1_623, %c0_624, %c0_625] : memref<10x2x50xf32, #tpu.memory_space<vmem>>, vector<1x2x50xf32>
    %1011 = vector.shape_cast %1010 : vector<1x2x50xf32> to vector<2x50xf32>
    %1012 = vector.shape_cast %1009 : vector<2x50xf32> to vector<1x2x50xf32>
    tpu.vector_store %arg10[%c1_623, %c0_624, %c0_625], %1012 {strides = array<i32>} : memref<10x2x50xf32, #tpu.memory_space<vmem>>, vector<1x2x50xf32>,
    %c4_626 = arith.constant 4 : index
    %c0_627 = arith.constant 0 : index
    %1013 = vector.load %arg11[%c4_626, %c0_627] : memref<20x96xf32, #tpu.memory_space<vmem>>, vector<2x50xf32>
    %c2_628 = arith.constant 2 : index
    %c0_629 = arith.constant 0 : index
    %c0_630 = arith.constant 0 : index
    %1014 = vector.load %arg10[%c2_628, %c0_629, %c0_630] : memref<10x2x50xf32, #tpu.memory_space<vmem>>, vector<1x2x50xf32>
    %1015 = vector.shape_cast %1014 : vector<1x2x50xf32> to vector<2x50xf32>
    %1016 = vector.shape_cast %1013 : vector<2x50xf32> to vector<1x2x50xf32>
    tpu.vector_store %arg10[%c2_628, %c0_629, %c0_630], %1016 {strides = array<i32>} : memref<10x2x50xf32, #tpu.memory_space<vmem>>, vector<1x2x50xf32>,
    %c6_631 = arith.constant 6 : index
    %c0_632 = arith.constant 0 : index
    %1017 = vector.load %arg11[%c6_631, %c0_632] : memref<20x96xf32, #tpu.memory_space<vmem>>, vector<2x50xf32>
    %c3_633 = arith.constant 3 : index
    %c0_634 = arith.constant 0 : index
    %c0_635 = arith.constant 0 : index
    %1018 = vector.load %arg10[%c3_633, %c0_634, %c0_635] : memref<10x2x50xf32, #tpu.memory_space<vmem>>, vector<1x2x50xf32>
    %1019 = vector.shape_cast %1018 : vector<1x2x50xf32> to vector<2x50xf32>
    %1020 = vector.shape_cast %1017 : vector<2x50xf32> to vector<1x2x50xf32>
    tpu.vector_store %arg10[%c3_633, %c0_634, %c0_635], %1020 {strides = array<i32>} : memref<10x2x50xf32, #tpu.memory_space<vmem>>, vector<1x2x50xf32>,
    %c8_636 = arith.constant 8 : index
    %c0_637 = arith.constant 0 : index
    %1021 = vector.load %arg11[%c8_636, %c0_637] : memref<20x96xf32, #tpu.memory_space<vmem>>, vector<2x50xf32>
    %c4_638 = arith.constant 4 : index
    %c0_639 = arith.constant 0 : index
    %c0_640 = arith.constant 0 : index
    %1022 = vector.load %arg10[%c4_638, %c0_639, %c0_640] : memref<10x2x50xf32, #tpu.memory_space<vmem>>, vector<1x2x50xf32>
    %1023 = vector.shape_cast %1022 : vector<1x2x50xf32> to vector<2x50xf32>
    %1024 = vector.shape_cast %1021 : vector<2x50xf32> to vector<1x2x50xf32>
    tpu.vector_store %arg10[%c4_638, %c0_639, %c0_640], %1024 {strides = array<i32>} : memref<10x2x50xf32, #tpu.memory_space<vmem>>, vector<1x2x50xf32>,
    %c10_641 = arith.constant 10 : index
    %c0_642 = arith.constant 0 : index
    %1025 = vector.load %arg11[%c10_641, %c0_642] : memref<20x96xf32, #tpu.memory_space<vmem>>, vector<2x50xf32>
    %c5_643 = arith.constant 5 : index
    %c0_644 = arith.constant 0 : index
    %c0_645 = arith.constant 0 : index
    %1026 = vector.load %arg10[%c5_643, %c0_644, %c0_645] : memref<10x2x50xf32, #tpu.memory_space<vmem>>, vector<1x2x50xf32>
    %1027 = vector.shape_cast %1026 : vector<1x2x50xf32> to vector<2x50xf32>
    %1028 = vector.shape_cast %1025 : vector<2x50xf32> to vector<1x2x50xf32>
    tpu.vector_store %arg10[%c5_643, %c0_644, %c0_645], %1028 {strides = array<i32>} : memref<10x2x50xf32, #tpu.memory_space<vmem>>, vector<1x2x50xf32>,
    %c12_646 = arith.constant 12 : index
    %c0_647 = arith.constant 0 : index
    %1029 = vector.load %arg11[%c12_646, %c0_647] : memref<20x96xf32, #tpu.memory_space<vmem>>, vector<2x50xf32>
    %c6_648 = arith.constant 6 : index
    %c0_649 = arith.constant 0 : index
    %c0_650 = arith.constant 0 : index
    %1030 = vector.load %arg10[%c6_648, %c0_649, %c0_650] : memref<10x2x50xf32, #tpu.memory_space<vmem>>, vector<1x2x50xf32>
    %1031 = vector.shape_cast %1030 : vector<1x2x50xf32> to vector<2x50xf32>
    %1032 = vector.shape_cast %1029 : vector<2x50xf32> to vector<1x2x50xf32>
    tpu.vector_store %arg10[%c6_648, %c0_649, %c0_650], %1032 {strides = array<i32>} : memref<10x2x50xf32, #tpu.memory_space<vmem>>, vector<1x2x50xf32>,
    %c14_651 = arith.constant 14 : index
    %c0_652 = arith.constant 0 : index
    %1033 = vector.load %arg11[%c14_651, %c0_652] : memref<20x96xf32, #tpu.memory_space<vmem>>, vector<2x50xf32>
    %c7_653 = arith.constant 7 : index
    %c0_654 = arith.constant 0 : index
    %c0_655 = arith.constant 0 : index
    %1034 = vector.load %arg10[%c7_653, %c0_654, %c0_655] : memref<10x2x50xf32, #tpu.memory_space<vmem>>, vector<1x2x50xf32>
    %1035 = vector.shape_cast %1034 : vector<1x2x50xf32> to vector<2x50xf32>
    %1036 = vector.shape_cast %1033 : vector<2x50xf32> to vector<1x2x50xf32>
    tpu.vector_store %arg10[%c7_653, %c0_654, %c0_655], %1036 {strides = array<i32>} : memref<10x2x50xf32, #tpu.memory_space<vmem>>, vector<1x2x50xf32>,
    %c16_656 = arith.constant 16 : index
    %c0_657 = arith.constant 0 : index
    %1037 = vector.load %arg11[%c16_656, %c0_657] : memref<20x96xf32, #tpu.memory_space<vmem>>, vector<2x50xf32>
    %c8_658 = arith.constant 8 : index
    %c0_659 = arith.constant 0 : index
    %c0_660 = arith.constant 0 : index
    %1038 = vector.load %arg10[%c8_658, %c0_659, %c0_660] : memref<10x2x50xf32, #tpu.memory_space<vmem>>, vector<1x2x50xf32>
    %1039 = vector.shape_cast %1038 : vector<1x2x50xf32> to vector<2x50xf32>
    %1040 = vector.shape_cast %1037 : vector<2x50xf32> to vector<1x2x50xf32>
    tpu.vector_store %arg10[%c8_658, %c0_659, %c0_660], %1040 {strides = array<i32>} : memref<10x2x50xf32, #tpu.memory_space<vmem>>, vector<1x2x50xf32>,
    %c18_661 = arith.constant 18 : index
    %c0_662 = arith.constant 0 : index
    %1041 = vector.load %arg11[%c18_661, %c0_662] : memref<20x96xf32, #tpu.memory_space<vmem>>, vector<2x50xf32>
    %c9_663 = arith.constant 9 : index
    %c0_664 = arith.constant 0 : index
    %c0_665 = arith.constant 0 : index
    %1042 = vector.load %arg10[%c9_663, %c0_664, %c0_665] : memref<10x2x50xf32, #tpu.memory_space<vmem>>, vector<1x2x50xf32>
    %1043 = vector.shape_cast %1042 : vector<1x2x50xf32> to vector<2x50xf32>
    %1044 = vector.shape_cast %1041 : vector<2x50xf32> to vector<1x2x50xf32>
    tpu.vector_store %arg10[%c9_663, %c0_664, %c0_665], %1044 {strides = array<i32>} : memref<10x2x50xf32, #tpu.memory_space<vmem>>, vector<1x2x50xf32>,
    return
  }
  func.func @transform_0(%arg0: i32) -> (i32, i32, i32) {
    %c0_i32 = arith.constant 0 : i32
    %c0_i32_0 = arith.constant 0 : i32
    %c0_i32_1 = arith.constant 0 : i32
    return %c0_i32, %arg0, %c0_i32_0 : i32, i32, i32
  }
  func.func @transform_1(%arg0: i32) -> (i32, i32) {
    %c0_i32 = arith.constant 0 : i32
    %c0_i32_0 = arith.constant 0 : i32
    %c0_i32_1 = arith.constant 0 : i32
    return %c0_i32, %c0_i32_0 : i32, i32
  }
  func.func @transform_2(%arg0: i32) -> (i32, i32) {
    %c0_i32 = arith.constant 0 : i32
    %c0_i32_0 = arith.constant 0 : i32
    %c0_i32_1 = arith.constant 0 : i32
    return %c0_i32, %c0_i32_0 : i32, i32
  }
  func.func @transform_3(%arg0: i32) -> (i32, i32) {
    %c0_i32 = arith.constant 0 : i32
    %c0_i32_0 = arith.constant 0 : i32
    %c0_i32_1 = arith.constant 0 : i32
    return %c0_i32, %c0_i32_0 : i32, i32
  }
  func.func @transform_4(%arg0: i32) -> (i32, i32) {
    %c0_i32 = arith.constant 0 : i32
    %c0_i32_0 = arith.constant 0 : i32
    %c0_i32_1 = arith.constant 0 : i32
    return %c0_i32, %c0_i32_0 : i32, i32
  }
  func.func @transform_5(%arg0: i32) -> (i32, i32) {
    %c0_i32 = arith.constant 0 : i32
    %c0_i32_0 = arith.constant 0 : i32
    %c0_i32_1 = arith.constant 0 : i32
    return %c0_i32, %c0_i32_0 : i32, i32
  }
  func.func @transform_6(%arg0: i32) -> (i32, i32) {
    %c0_i32 = arith.constant 0 : i32
    %c0_i32_0 = arith.constant 0 : i32
    %c0_i32_1 = arith.constant 0 : i32
    return %c0_i32, %c0_i32_0 : i32, i32
  }
  func.func @transform_7(%arg0: i32) -> (i32, i32) {
    %c0_i32 = arith.constant 0 : i32
    %c0_i32_0 = arith.constant 0 : i32
    %c0_i32_1 = arith.constant 0 : i32
    return %c0_i32, %c0_i32_0 : i32, i32
  }
  func.func @transform_8(%arg0: i32) -> (i32, i32) {
    %c0_i32 = arith.constant 0 : i32
    %c0_i32_0 = arith.constant 0 : i32
    %c0_i32_1 = arith.constant 0 : i32
    return %c0_i32, %c0_i32_0 : i32, i32
  }
  func.func @transform_9(%arg0: i32) -> (i32, i32, i32) {
    %c0_i32 = arith.constant 0 : i32
    %c0_i32_0 = arith.constant 0 : i32
    %c0_i32_1 = arith.constant 0 : i32
    return %c0_i32, %arg0, %c0_i32_0 : i32, i32, i32
  }
}

</mosaic_0001>

<bundles_post_ra>
// kernel: sae_fc_only_forward.1
= control target key start
LH: loop header
LB: loop body
LE: loop exit
PB: predicated region body
PF: predicated region fallthrough
CT: control target
= control target key end

     0   :  { %vm2323_vm0 = vcmask 402432   ;;  %v1910_v4 = vmov 0.0   ;;  %vm171_vm2 = vcmask 1040384   ;;  %s2313_s0 = inlined_call_operand.vmem [shape: f32[10,2,50], index: 0, kind: input, shape index: {}]   ;;  %s2314_s1 = inlined_call_operand.vmem [shape: bf16[50,96], index: 1, kind: input, shape index: {}]   ;;  %s2315_s2 = inlined_call_operand.vmem [shape: bf16[96,64], index: 2, kind: input, shape index: {}]   ;;  %s2316_s3 = inlined_call_operand.vmem [shape: bf16[64,32], index: 3, kind: input, shape index: {}]   ;;  %s2317_s4 = inlined_call_operand.vmem [shape: bf16[32,4], index: 4, kind: input, shape index: {}]   ;;  %s2318_s5 = inlined_call_operand.vmem [shape: bf16[4,32], index: 5, kind: input, shape index: {}]   ;;  %s2319_s6 = inlined_call_operand.vmem [shape: bf16[32,64], index: 6, kind: input, shape index: {}]   ;;  %s2320_s7 = inlined_call_operand.vmem [shape: bf16[64,96], index: 7, kind: input, shape index: {}]   ;;  %s2321_s8 = inlined_call_operand.vmem [shape: bf16[96,50], index: 8, kind: input, shape index: {}]   ;;  %s2322_s9 = inlined_call_operand.hbm [shape: f32[10,2,50], index: 9, kind: output, shape index: {}]  }
   0x1   :  { %v1846_v0 = vld [vmem:[%s2314_s1] sm:$0xff]   ;;  %v1847_v1 = vld [vmem:[%s2314_s1 + $0x8] sm:$0xff]   ;;  %v1848_v2 = vld [vmem:[%s2314_s1 + $0x10] sm:$0xff]  }
   0x2   :  { %1750 = vmatprep.subr.bf16.mxu0 %v1846_v0  ;;  %v34_v3 = vld [vmem:[%s2313_s0] sm:$0x3]  ;;  %v1849_v6 = vld [vmem:[%s2314_s1 + $0x18] ss:$0 sps:$4 sm:$0x11]  }
   0x3   :  { %1751 = vmatpush3.bf16.msra.mxu0 %v1846_v0  ;;  %vm36_vm1 = vcmp.ge.f32.partialorder %v34_v3, 0.75  ;;  %v1573_v8 = vld [vmem:[%s2313_s0 + $0x2] sm:$0x3]  ;;  %v173_v10 = vsel %vm171_vm2, %v1849_v6, 0  ;;  %v1575_v15 = vld [vmem:[%s2313_s0 + $0x4] sm:$0x3] }
   0x4   :  { %1752 = vmatprep.subr.bf16.mxu0 %v1847_v1  ;;  %v1572_v5 = vsel %vm36_vm1, 1.0, %v1910_v4 }
   0x5   :  { %v39_v7 = vmul.f32 0.75, %v1572_v5  ;;  %42 = vst.msk [vmem:[#allocation2] sm:$0x3] %vm2323_vm0, %v1572_v5 }
   0x7   :  { %1753 = vmatpush3.bf16.msra.mxu0 %v1847_v1  ;;  %v40_v9 = vsub.f32 %v34_v3, %v39_v7 }
   0x8   :  { %1754 = vmatprep.subr.bf16.mxu0 %v1848_v2 }
   0x9   :  { %v45_v11 = vmul.f32 0.5, %v40_v9 }
   0xb   :  { %1755 = vmatpush3.bf16.msra.mxu0 %v1848_v2  ;;  %v46_v12 = vadd.f32 %v1573_v8, %v45_v11 }
   0xc   :  { %1840 = vmatprep.subr.msk.bf16.mxu0 %vm171_vm2, %v1849_v6 }
   0xd   :  { %vm47_vm3 = vcmp.ge.f32.partialorder %v46_v12, 0.75 }
   0xe   :  { %v1574_v13 = vsel %vm47_vm3, 1.0, %v1910_v4 }
   0xf   :  { %1757 = vmatpush3.bf16.msra.mxu0 %v173_v10  ;;  %v50_v14 = vmul.f32 0.75, %v1574_v13  ;;  %52 = vst.msk [vmem:[#allocation2 + $0x2] sm:$0x3] %vm2323_vm0, %v1574_v13 }
  0x11   :  { %v51_v16 = vsub.f32 %v46_v12, %v50_v14 }
  0x13   :  { %v55_v17 = vmul.f32 0.5, %v51_v16 }
  0x15   :  { %v56_v18 = vadd.f32 %v1575_v15, %v55_v17 }
  0x17   :  { %vm57_vm4 = vcmp.ge.f32.partialorder %v56_v18, 0.75 }
  0x18   :  { %v1576_v19 = vsel %vm57_vm4, 1.0, %v1910_v4 }
  0x19   :  { %14 = vsyncpa [#allocation4], 0  ;;  %v60_v20 = vmul.f32 0.75, %v1576_v19  ;;  %62 = vst.msk [vmem:[#allocation2 + $0x4] sm:$0x3] %vm2323_vm0, %v1576_v19  ;;  %vm164_vm10 = vcmask 408576  }
  0x1a   :  { %v1577_v22 = vld [vmem:[%s2313_s0 + $0x6] sm:$0x3]  ;;  %v1579_v28 = vld [vmem:[%s2313_s0 + $0x8] sm:$0x3]  ;;  %v1581_v34 = vld [vmem:[%s2313_s0 + $0xa] sm:$0x3] }
  0x1b   :  { %v61_v21 = vsub.f32 %v56_v18, %v60_v20  ;;  %v1583_v40 = vld [vmem:[%s2313_s0 + $0xc] sm:$0x3]  ;;  %v1585_v46 = vld [vmem:[%s2313_s0 + $0xe] sm:$0x3]  ;;  %v1587_v52 = vld [vmem:[%s2313_s0 + $0x10] sm:$0x3] }
  0x1c   :  { %v1589_v61 = vld [vmem:[%s2313_s0 + $0x12] sm:$0x3]  ;;  %v1850_v3 = vld [vmem:[%s2315_s2] sm:$0xff]   ;;  %v1851_v5 = vld [vmem:[%s2315_s2 + $0x8] sm:$0xff]   ;;  %vm226_vm13 = vcmask 781312   ;;  %vm223_vm14 = vcmask 785408  }
  0x1d   :  { %v65_v23 = vmul.f32 0.5, %v61_v21  ;;  %1762 = vmatprep.subr.bf16.mxu1 %v1850_v3  ;;  %v1852_v6 = vld [vmem:[%s2315_s2 + $0x10] sm:$0xff]   ;;  %v1853_v7 = vld [vmem:[%s2315_s2 + $0x18] sm:$0xff]   ;;  %v1854_v8 = vld [vmem:[%s2315_s2 + $0x20] sm:$0xff]   ;;  %vm235_vm15 = vcmask 779264  }
  0x1e   :  { %1763 = vmatpush3.bf16.msra.mxu1 %v1850_v3  ;;  %v1855_v9 = vld [vmem:[%s2315_s2 + $0x28] sm:$0xff]  }
  0x1f   :  { %v66_v24 = vadd.f32 %v1577_v22, %v65_v23  ;;  %1764 = vmatprep.subr.bf16.mxu1 %v1851_v5 }
  0x21   :  { %vm67_vm5 = vcmp.ge.f32.partialorder %v66_v24, 0.75 }
  0x22   :  { %v1578_v25 = vsel %vm67_vm5, 1.0, %v1910_v4  ;;  %1765 = vmatpush3.bf16.msra.mxu1 %v1851_v5 }
  0x23   :  { %v70_v26 = vmul.f32 0.75, %v1578_v25  ;;  %72 = vst.msk [vmem:[#allocation2 + $0x6] sm:$0x3] %vm2323_vm0, %v1578_v25  ;;  %1766 = vmatprep.subr.bf16.mxu1 %v1852_v6 }
  0x25   :  { %v71_v27 = vsub.f32 %v66_v24, %v70_v26 }
  0x26   :  { %1767 = vmatpush3.bf16.msra.mxu1 %v1852_v6 }
  0x27   :  { %v75_v29 = vmul.f32 0.5, %v71_v27  ;;  %1768 = vmatprep.subr.bf16.mxu1 %v1853_v7 }
  0x29   :  { %v76_v30 = vadd.f32 %v1579_v28, %v75_v29 }
  0x2a   :  { %v131_v54 = vld [vmem:[#allocation2] sm:$0xff]  ;;  %1769 = vmatpush3.bf16.msra.mxu1 %v1853_v7 }
  0x2b   :  { %vm77_vm6 = vcmp.ge.f32.partialorder %v76_v30, 0.75  ;;  %1770 = vmatprep.subr.bf16.mxu1 %v1854_v8 }
  0x2c   :  { %v1580_v31 = vsel %vm77_vm6, 1.0, %v1910_v4 }
  0x2d   :  { %v80_v32 = vmul.f32 0.75, %v1580_v31  ;;  %82 = vst.msk [vmem:[#allocation2 + $0x8] sm:$0x3] %vm2323_vm0, %v1580_v31 }
  0x2e   :  { %1771 = vmatpush3.bf16.msra.mxu1 %v1854_v8 }
  0x2f   :  { %v81_v33 = vsub.f32 %v76_v30, %v80_v32  ;;  %1772 = vmatprep.subr.bf16.mxu1 %v1855_v9 }
  0x31   :  { %v85_v35 = vmul.f32 0.5, %v81_v33 }
  0x32   :  { %1773 = vmatpush3.bf16.msra.mxu1 %v1855_v9 }
  0x33   :  { %v86_v36 = vadd.f32 %v1581_v34, %v85_v35 }
  0x35   :  { %vm87_vm7 = vcmp.ge.f32.partialorder %v86_v36, 0.75 }
  0x36   :  { %v1582_v37 = vsel %vm87_vm7, 1.0, %v1910_v4 }
  0x37   :  { %v90_v38 = vmul.f32 0.75, %v1582_v37  ;;  %92 = vst.msk [vmem:[#allocation2 + $0xa] sm:$0x3] %vm2323_vm0, %v1582_v37 }
  0x39   :  { %v91_v39 = vsub.f32 %v86_v36, %v90_v38 }
  0x3b   :  { %v95_v41 = vmul.f32 0.5, %v91_v39 }
  0x3d   :  { %v96_v42 = vadd.f32 %v1583_v40, %v95_v41 }
  0x3f   :  { %vm97_vm8 = vcmp.ge.f32.partialorder %v96_v42, 0.75 }
  0x40   :  { %v1584_v43 = vsel %vm97_vm8, 1.0, %v1910_v4 }
  0x41   :  { %v100_v44 = vmul.f32 0.75, %v1584_v43  ;;  %102 = vst.msk [vmem:[#allocation2 + $0xc] sm:$0x3] %vm2323_vm0, %v1584_v43 }
  0x43   :  { %v101_v45 = vsub.f32 %v96_v42, %v100_v44 }
  0x45   :  { %v105_v47 = vmul.f32 0.5, %v101_v45 }
  0x47   :  { %v106_v48 = vadd.f32 %v1585_v46, %v105_v47 }
  0x49   :  { %vm107_vm9 = vcmp.ge.f32.partialorder %v106_v48, 0.75 }
  0x4a   :  { %v1586_v49 = vsel %vm107_vm9, 1.0, %v1910_v4 }
  0x4b   :  { %v110_v50 = vmul.f32 0.75, %v1586_v49  ;;  %112 = vst.msk [vmem:[#allocation2 + $0xe] sm:$0x3] %vm2323_vm0, %v1586_v49 }
  0x4d   :  { %v111_v51 = vsub.f32 %v106_v48, %v110_v50 }
  0x4f   :  { %v115_v53 = vmul.f32 0.5, %v111_v51 }
  0x51   :  { %v116_v55 = vadd.f32 %v1587_v52, %v115_v53 }
  0x52   :  { %v132_v56 = vld [vmem:[#allocation2 + $0x8] sm:$0xff] }
  0x53   :  { %vm117_vm11 = vcmp.ge.f32.partialorder %v116_v55, 0.75  ;;  %v134_v57 = vpack.c.bf16 %v132_v56, %v131_v54 }
  0x54   :  { %v1588_v58 = vsel %vm117_vm11, 1.0, %v1910_v4 }
  0x55   :  { %v120_v59 = vmul.f32 0.75, %v1588_v58  ;;  %122 = vst.msk [vmem:[#allocation2 + $0x10] sm:$0x3] %vm2323_vm0, %v1588_v58  ;;  %1758 = vmatprep.mubr.msk.bf16.mxu0 %vm164_vm10, %v134_v57 }
  0x57   :  { %v121_v60 = vsub.f32 %v116_v55, %v120_v59 }
  0x59   :  { %v125_v62 = vmul.f32 0.5, %v121_v60 }
  0x5b   :  { %v126_v63 = vadd.f32 %v1589_v61, %v125_v62 }
  0x5d   :  { %vm127_vm12 = vcmp.ge.f32.partialorder %v126_v63, 0.75 }
  0x5e   :  { %v1590_v0 = vsel %vm127_vm12, 1.0, %v1910_v4  ;;  %vm426_vm12 = vcmask 519168  }
  0x5f   :  { %130 = vst.msk [vmem:[#allocation2 + $0x12] sm:$0x3] %vm2323_vm0, %v1590_v0 }
  0x66   :  { %v133_v1 = vld [vmem:[#allocation2 + $0x10] sm:$0xf] }
  0x67   :  { %v135_v2 = vpack.c.bf16 %v133_v1, %v133_v1 }
  0x69   :  { %1759 = vmatmul.mubr.msk.bf16.vlgmr.msra.gmra.mrb[0].mxu0 %vm164_vm10, %v135_v2 }
 0x13c   :  { %v1760_v10 = vpop.f32.mrb[0].mxu0 }
 0x13d   :  { %227 = vst.msk [vmem:[#allocation2 + $0x10] sm:$0xf] %vm226_vm13, %v1760_v10  ;;  %v209_v11 = vpop.f32.mrb[1].mxu0 }
 0x13e   :  { %224 = vst.msk [vmem:[#allocation2] sm:$0xff] %vm223_vm14, %v209_v11  ;;  %v1761_v12 = vpop.f32.mrb[2].mxu0 }
 0x13f   :  { %v212_v13 = vpop.f32.mrb[3].mxu0  ;;  %v1856_v12 = vld [vmem:[%s2316_s3] sm:$0xff]  }
 0x140   :  { %225 = vst.msk [vmem:[#allocation2 + $0x8] sm:$0xff] %vm223_vm14, %v212_v13  ;;  %1778 = vmatprep.subr.bf16.mxu0 %v1856_v12  ;;  %v1857_v13 = vld [vmem:[%s2316_s3 + $0x8] sm:$0xff]  }
 0x141   :  { %1779 = vmatpush3.bf16.msra.mxu0 %v1856_v12 }
 0x142   :  { %1780 = vmatprep.subr.bf16.mxu0 %v1857_v13 }
 0x144   :  { %v300_v61 = vld [vmem:[#allocation2 + $0x10] sm:$0x3]  ;;  %v309_v7 = vld [vmem:[#allocation2 + $0x12] sm:$0x3] }
 0x145   :  { %v228_v14 = vld [vmem:[#allocation2] sm:$0x3]  ;;  %v237_v19 = vld [vmem:[#allocation2 + $0x2] sm:$0x3]  ;;  %v246_v25 = vld [vmem:[#allocation2 + $0x4] sm:$0x3]  ;;  %1781 = vmatpush3.bf16.msra.mxu0 %v1857_v13 }
 0x146   :  { %vm230_vm1 = vcmp.ge.f32.partialorder %v228_v14, 0.75  ;;  %v255_v31 = vld [vmem:[#allocation2 + $0x6] sm:$0x3] }
 0x147   :  { %v1597_v15 = vsel %vm230_vm1, 1.0, %v1910_v4  ;;  %v264_v37 = vld [vmem:[#allocation2 + $0x8] sm:$0x3]  ;;  %v273_v43 = vld [vmem:[#allocation2 + $0xa] sm:$0x3]  ;;  %vm423_vm1 = vcmask 523264  }
 0x148   :  { %v233_v16 = vmul.f32 0.75, %v1597_v15  ;;  %236 = vst.msk [vmem:[#allocation2] sm:$0x3] %vm235_vm15, %v1597_v15  ;;  %v282_v49 = vld [vmem:[#allocation2 + $0xc] sm:$0x3]  ;;  %v1859_v15 = vld [vmem:[%s2316_s3 + $0x18] sm:$0xff]  }
 0x149   :  { %v291_v55 = vld [vmem:[#allocation2 + $0xe] sm:$0x3] }
 0x14a   :  { %v234_v17 = vsub.f32 %v228_v14, %v233_v16  ;;  %v1858_v14 = vld [vmem:[%s2316_s3 + $0x10] sm:$0xff]  }
 0x14b   :  { %1782 = vmatprep.subr.bf16.mxu0 %v1858_v14 }
 0x14c   :  { %v238_v18 = vmul.f32 0.5, %v234_v17  ;;  %1783 = vmatpush3.bf16.msra.mxu0 %v1858_v14 }
 0x14d   :  { %1784 = vmatprep.subr.bf16.mxu0 %v1859_v15 }
 0x14e   :  { %v239_v20 = vadd.f32 %v238_v18, %v237_v19 }
 0x150   :  { %vm240_vm2 = vcmp.ge.f32.partialorder %v239_v20, 0.75  ;;  %1785 = vmatpush3.bf16.msra.mxu0 %v1859_v15 }
 0x151   :  { %v1598_v21 = vsel %vm240_vm2, 1.0, %v1910_v4  ;;  %vm435_vm2 = vcmask 517120  }
 0x152   :  { %v243_v22 = vmul.f32 0.75, %v1598_v21  ;;  %245 = vst.msk [vmem:[#allocation2 + $0x2] sm:$0x3] %vm235_vm15, %v1598_v21 }
 0x154   :  { %v244_v23 = vsub.f32 %v239_v20, %v243_v22 }
 0x156   :  { %v247_v24 = vmul.f32 0.5, %v244_v23 }
 0x158   :  { %v248_v26 = vadd.f32 %v247_v24, %v246_v25 }
 0x15a   :  { %vm249_vm3 = vcmp.ge.f32.partialorder %v248_v26, 0.75 }
 0x15b   :  { %v1599_v27 = vsel %vm249_vm3, 1.0, %v1910_v4 }
 0x15c   :  { %v252_v28 = vmul.f32 0.75, %v1599_v27  ;;  %254 = vst.msk [vmem:[#allocation2 + $0x4] sm:$0x3] %vm235_vm15, %v1599_v27 }
 0x15e   :  { %v253_v29 = vsub.f32 %v248_v26, %v252_v28 }
 0x160   :  { %v256_v30 = vmul.f32 0.5, %v253_v29 }
 0x162   :  { %v257_v32 = vadd.f32 %v256_v30, %v255_v31 }
 0x164   :  { %vm258_vm4 = vcmp.ge.f32.partialorder %v257_v32, 0.75 }
 0x165   :  { %v1600_v33 = vsel %vm258_vm4, 1.0, %v1910_v4 }
 0x166   :  { %v261_v34 = vmul.f32 0.75, %v1600_v33  ;;  %263 = vst.msk [vmem:[#allocation2 + $0x6] sm:$0x3] %vm235_vm15, %v1600_v33 }
 0x168   :  { %v262_v35 = vsub.f32 %v257_v32, %v261_v34 }
 0x16a   :  { %v265_v36 = vmul.f32 0.5, %v262_v35 }
 0x16c   :  { %v266_v38 = vadd.f32 %v265_v36, %v264_v37 }
 0x16d   :  { %v316_v63 = vld [vmem:[#allocation2] sm:$0xff] }
 0x16e   :  { %vm267_vm5 = vcmp.ge.f32.partialorder %v266_v38, 0.75 }
 0x16f   :  { %v1601_v39 = vsel %vm267_vm5, 1.0, %v1910_v4 }
 0x170   :  { %v270_v40 = vmul.f32 0.75, %v1601_v39  ;;  %272 = vst.msk [vmem:[#allocation2 + $0x8] sm:$0x3] %vm235_vm15, %v1601_v39 }
 0x172   :  { %v271_v41 = vsub.f32 %v266_v38, %v270_v40 }
 0x174   :  { %v274_v42 = vmul.f32 0.5, %v271_v41 }
 0x176   :  { %v275_v44 = vadd.f32 %v274_v42, %v273_v43 }
 0x178   :  { %vm276_vm6 = vcmp.ge.f32.partialorder %v275_v44, 0.75 }
 0x179   :  { %v1602_v45 = vsel %vm276_vm6, 1.0, %v1910_v4 }
 0x17a   :  { %v279_v46 = vmul.f32 0.75, %v1602_v45  ;;  %281 = vst.msk [vmem:[#allocation2 + $0xa] sm:$0x3] %vm235_vm15, %v1602_v45 }
 0x17c   :  { %v280_v47 = vsub.f32 %v275_v44, %v279_v46 }
 0x17e   :  { %v283_v48 = vmul.f32 0.5, %v280_v47 }
 0x180   :  { %v284_v50 = vadd.f32 %v283_v48, %v282_v49 }
 0x182   :  { %vm285_vm7 = vcmp.ge.f32.partialorder %v284_v50, 0.75 }
 0x183   :  { %v1603_v51 = vsel %vm285_vm7, 1.0, %v1910_v4 }
 0x184   :  { %v288_v52 = vmul.f32 0.75, %v1603_v51  ;;  %290 = vst.msk [vmem:[#allocation2 + $0xc] sm:$0x3] %vm235_vm15, %v1603_v51 }
 0x186   :  { %v289_v53 = vsub.f32 %v284_v50, %v288_v52 }
 0x188   :  { %v292_v54 = vmul.f32 0.5, %v289_v53 }
 0x18a   :  { %v293_v56 = vadd.f32 %v292_v54, %v291_v55 }
 0x18c   :  { %vm294_vm8 = vcmp.ge.f32.partialorder %v293_v56, 0.75 }
 0x18d   :  { %v1604_v57 = vsel %vm294_vm8, 1.0, %v1910_v4 }
 0x18e   :  { %v297_v58 = vmul.f32 0.75, %v1604_v57  ;;  %299 = vst.msk [vmem:[#allocation2 + $0xe] sm:$0x3] %vm235_vm15, %v1604_v57 }
 0x190   :  { %v298_v59 = vsub.f32 %v293_v56, %v297_v58 }
 0x192   :  { %v301_v60 = vmul.f32 0.5, %v298_v59 }
 0x194   :  { %v302_v62 = vadd.f32 %v301_v60, %v300_v61 }
 0x195   :  { %v317_v0 = vld [vmem:[#allocation2 + $0x8] sm:$0xff] }
 0x196   :  { %vm303_vm9 = vcmp.ge.f32.partialorder %v302_v62, 0.75  ;;  %v319_v1 = vpack.c.bf16 %v317_v0, %v316_v63 }
 0x197   :  { %v1605_v2 = vsel %vm303_vm9, 1.0, %v1910_v4 }
 0x198   :  { %v306_v3 = vmul.f32 0.75, %v1605_v2  ;;  %308 = vst.msk [vmem:[#allocation2 + $0x10] sm:$0x3] %vm235_vm15, %v1605_v2  ;;  %1774 = vmatprep.mubr.msk.bf16.mxu1 %vm223_vm14, %v319_v1 }
 0x19a   :  { %v307_v5 = vsub.f32 %v302_v62, %v306_v3 }
 0x19c   :  { %v310_v6 = vmul.f32 0.5, %v307_v5 }
 0x19e   :  { %v311_v8 = vadd.f32 %v310_v6, %v309_v7 }
 0x1a0   :  { %vm312_vm11 = vcmp.ge.f32.partialorder %v311_v8, 0.75 }
 0x1a1   :  { %v1606_v9 = vsel %vm312_vm11, 1.0, %v1910_v4 }
 0x1a2   :  { %315 = vst.msk [vmem:[#allocation2 + $0x12] sm:$0x3] %vm235_vm15, %v1606_v9 }
 0x1a9   :  { %v318_v10 = vld [vmem:[#allocation2 + $0x10] sm:$0xf] }
 0x1aa   :  { %v320_v11 = vpack.c.bf16 %v318_v10, %v318_v10 }
 0x1ac   :  { %1775 = vmatmul.mubr.msk.bf16.vlgmr.msra.gmra.mrb[0].mxu1 %vm223_vm14, %v320_v11 }
 0x27f   :  { %v1776_v16 = vpop.f32.mrb[0].mxu1 }
 0x280   :  { %427 = vst.msk [vmem:[#allocation2 + $0x10] sm:$0xf] %vm426_vm12, %v1776_v16  ;;  %v409_v17 = vpop.f32.mrb[1].mxu1 }
 0x281   :  { %v1777_v18 = vpop.f32.mrb[2].mxu1  ;;  %424 = vst.msk [vmem:[#allocation2] sm:$0xff] %vm423_vm1, %v409_v17 }
 0x282   :  { %v412_v19 = vpop.f32.mrb[3].mxu1  ;;  %v1860_v18 = vld [vmem:[%s2317_s4] sm:$0xff]  }
 0x283   :  { %425 = vst.msk [vmem:[#allocation2 + $0x8] sm:$0xff] %vm423_vm1, %v412_v19  ;;  %v1861_v19 = vld [vmem:[%s2317_s4 + $0x8] sm:$0xff]   ;;  %1790 = vmatprep.subr.bf16.mxu1 %v1860_v18 }
 0x284   :  { %1791 = vmatpush3.bf16.msra.mxu1 %v1860_v18 }
 0x285   :  { %1792 = vmatprep.subr.bf16.mxu1 %v1861_v19 }
 0x287   :  { %v500_v3 = vld [vmem:[#allocation2 + $0x10] sm:$0x3]  ;;  %v509_v13 = vld [vmem:[#allocation2 + $0x12] sm:$0x3] }
 0x288   :  { %v428_v20 = vld [vmem:[#allocation2] sm:$0x3]  ;;  %v437_v25 = vld [vmem:[#allocation2 + $0x2] sm:$0x3]  ;;  %v446_v31 = vld [vmem:[#allocation2 + $0x4] sm:$0x3]  ;;  %1793 = vmatpush3.bf16.msra.mxu1 %v1861_v19 }
 0x289   :  { %vm430_vm3 = vcmp.ge.f32.partialorder %v428_v20, 0.75  ;;  %v455_v37 = vld [vmem:[#allocation2 + $0x6] sm:$0x3] }
 0x28a   :  { %v1615_v21 = vsel %vm430_vm3, 1.0, %v1910_v4  ;;  %v464_v43 = vld [vmem:[#allocation2 + $0x8] sm:$0x3]  ;;  %v473_v49 = vld [vmem:[#allocation2 + $0xa] sm:$0x3] }
 0x28b   :  { %v433_v22 = vmul.f32 0.75, %v1615_v21  ;;  %436 = vst.msk [vmem:[#allocation2] sm:$0x3] %vm435_vm2, %v1615_v21  ;;  %v482_v55 = vld [vmem:[#allocation2 + $0xc] sm:$0x3] }
 0x28c   :  { %v491_v61 = vld [vmem:[#allocation2 + $0xe] sm:$0x3] }
 0x28d   :  { %v434_v23 = vsub.f32 %v428_v20, %v433_v22 }
 0x28f   :  { %v438_v24 = vmul.f32 0.5, %v434_v23 }
 0x291   :  { %v439_v26 = vadd.f32 %v438_v24, %v437_v25 }
 0x293   :  { %vm440_vm4 = vcmp.ge.f32.partialorder %v439_v26, 0.75 }
 0x294   :  { %v1616_v27 = vsel %vm440_vm4, 1.0, %v1910_v4 }
 0x295   :  { %v443_v28 = vmul.f32 0.75, %v1616_v27  ;;  %445 = vst.msk [vmem:[#allocation2 + $0x2] sm:$0x3] %vm435_vm2, %v1616_v27 }
 0x297   :  { %v444_v29 = vsub.f32 %v439_v26, %v443_v28 }
 0x299   :  { %v447_v30 = vmul.f32 0.5, %v444_v29 }
 0x29b   :  { %v448_v32 = vadd.f32 %v447_v30, %v446_v31 }
 0x29d   :  { %vm449_vm5 = vcmp.ge.f32.partialorder %v448_v32, 0.75 }
 0x29e   :  { %v1617_v33 = vsel %vm449_vm5, 1.0, %v1910_v4  ;;  %vm610_vm5 = vcmask 257024  }
 0x29f   :  { %v452_v34 = vmul.f32 0.75, %v1617_v33  ;;  %454 = vst.msk [vmem:[#allocation2 + $0x4] sm:$0x3] %vm435_vm2, %v1617_v33 }
 0x2a1   :  { %v453_v35 = vsub.f32 %v448_v32, %v452_v34 }
 0x2a3   :  { %v456_v36 = vmul.f32 0.5, %v453_v35 }
 0x2a5   :  { %v457_v38 = vadd.f32 %v456_v36, %v455_v37 }
 0x2a7   :  { %vm458_vm6 = vcmp.ge.f32.partialorder %v457_v38, 0.75 }
 0x2a8   :  { %v1618_v39 = vsel %vm458_vm6, 1.0, %v1910_v4  ;;  %vm607_vm6 = vcmask 261120  }
 0x2a9   :  { %v461_v40 = vmul.f32 0.75, %v1618_v39  ;;  %463 = vst.msk [vmem:[#allocation2 + $0x6] sm:$0x3] %vm435_vm2, %v1618_v39 }
 0x2ab   :  { %v462_v41 = vsub.f32 %v457_v38, %v461_v40 }
 0x2ad   :  { %v465_v42 = vmul.f32 0.5, %v462_v41 }
 0x2af   :  { %v466_v44 = vadd.f32 %v465_v42, %v464_v43 }
 0x2b0   :  { %v516_v6 = vld [vmem:[#allocation2] sm:$0xff] }
 0x2b1   :  { %vm467_vm7 = vcmp.ge.f32.partialorder %v466_v44, 0.75 }
 0x2b2   :  { %v1619_v45 = vsel %vm467_vm7, 1.0, %v1910_v4  ;;  %vm619_vm7 = vcmask 254976  }
 0x2b3   :  { %v470_v46 = vmul.f32 0.75, %v1619_v45  ;;  %472 = vst.msk [vmem:[#allocation2 + $0x8] sm:$0x3] %vm435_vm2, %v1619_v45 }
 0x2b5   :  { %v471_v47 = vsub.f32 %v466_v44, %v470_v46 }
 0x2b7   :  { %v474_v48 = vmul.f32 0.5, %v471_v47 }
 0x2b9   :  { %v475_v50 = vadd.f32 %v474_v48, %v473_v49 }
 0x2bb   :  { %vm476_vm8 = vcmp.ge.f32.partialorder %v475_v50, 0.75 }
 0x2bc   :  { %v1620_v51 = vsel %vm476_vm8, 1.0, %v1910_v4 }
 0x2bd   :  { %v479_v52 = vmul.f32 0.75, %v1620_v51  ;;  %481 = vst.msk [vmem:[#allocation2 + $0xa] sm:$0x3] %vm435_vm2, %v1620_v51 }
 0x2bf   :  { %v480_v53 = vsub.f32 %v475_v50, %v479_v52 }
 0x2c1   :  { %v483_v54 = vmul.f32 0.5, %v480_v53 }
 0x2c3   :  { %v484_v56 = vadd.f32 %v483_v54, %v482_v55 }
 0x2c5   :  { %vm485_vm9 = vcmp.ge.f32.partialorder %v484_v56, 0.75 }
 0x2c6   :  { %v1621_v57 = vsel %vm485_vm9, 1.0, %v1910_v4 }
 0x2c7   :  { %v488_v58 = vmul.f32 0.75, %v1621_v57  ;;  %490 = vst.msk [vmem:[#allocation2 + $0xc] sm:$0x3] %vm435_vm2, %v1621_v57 }
 0x2c9   :  { %v489_v59 = vsub.f32 %v484_v56, %v488_v58 }
 0x2cb   :  { %v492_v60 = vmul.f32 0.5, %v489_v59 }
 0x2cd   :  { %v493_v62 = vadd.f32 %v492_v60, %v491_v61 }
 0x2cf   :  { %vm494_vm11 = vcmp.ge.f32.partialorder %v493_v62, 0.75 }
 0x2d0   :  { %v1622_v63 = vsel %vm494_vm11, 1.0, %v1910_v4 }
 0x2d1   :  { %v497_v0 = vmul.f32 0.75, %v1622_v63  ;;  %499 = vst.msk [vmem:[#allocation2 + $0xe] sm:$0x3] %vm435_vm2, %v1622_v63 }
 0x2d3   :  { %v498_v1 = vsub.f32 %v493_v62, %v497_v0 }
 0x2d5   :  { %v501_v2 = vmul.f32 0.5, %v498_v1 }
 0x2d7   :  { %v502_v5 = vadd.f32 %v501_v2, %v500_v3 }
 0x2d8   :  { %v517_v7 = vld [vmem:[#allocation2 + $0x8] sm:$0xff] }
 0x2d9   :  { %vm503_vm3 = vcmp.ge.f32.partialorder %v502_v5, 0.75  ;;  %v519_v8 = vpack.c.bf16 %v517_v7, %v516_v6 }
 0x2da   :  { %v1623_v9 = vsel %vm503_vm3, 1.0, %v1910_v4 }
 0x2db   :  { %v506_v10 = vmul.f32 0.75, %v1623_v9  ;;  %508 = vst.msk [vmem:[#allocation2 + $0x10] sm:$0x3] %vm435_vm2, %v1623_v9  ;;  %1786 = vmatprep.mubr.msk.bf16.mxu0 %vm423_vm1, %v519_v8 }
 0x2dd   :  { %v507_v11 = vsub.f32 %v502_v5, %v506_v10 }
 0x2df   :  { %v510_v12 = vmul.f32 0.5, %v507_v11 }
 0x2e1   :  { %v511_v14 = vadd.f32 %v510_v12, %v509_v13 }
 0x2e3   :  { %vm512_vm4 = vcmp.ge.f32.partialorder %v511_v14, 0.75 }
 0x2e4   :  { %v1624_v15 = vsel %vm512_vm4, 1.0, %v1910_v4 }
 0x2e5   :  { %515 = vst.msk [vmem:[#allocation2 + $0x12] sm:$0x3] %vm435_vm2, %v1624_v15 }
 0x2ec   :  { %v518_v16 = vld [vmem:[#allocation2 + $0x10] sm:$0xf] }
 0x2ed   :  { %v520_v17 = vpack.c.bf16 %v518_v16, %v518_v16 }
 0x2ef   :  { %1787 = vmatmul.mubr.msk.bf16.vlgmr.msra.gmra.mrb[4].mxu0 %vm423_vm1, %v520_v17 }
 0x3c2   :  { %v1788_v20 = vpop.f32.mrb[4].mxu0 }
 0x3c3   :  { %611 = vst.msk [vmem:[#allocation2 + $0x10] sm:$0xf] %vm610_vm5, %v1788_v20  ;;  %v593_v21 = vpop.f32.mrb[5].mxu0 }
 0x3c4   :  { %v1789_v22 = vpop.f32.mrb[6].mxu0  ;;  %608 = vst.msk [vmem:[#allocation2] sm:$0xff] %vm607_vm6, %v593_v21 }
 0x3c5   :  { %v596_v23 = vpop.f32.mrb[7].mxu0 }
 0x3c6   :  { %609 = vst.msk [vmem:[#allocation2 + $0x8] sm:$0xff] %vm607_vm6, %v596_v23 }
 0x3ca   :  { %v684_v8 = vld [vmem:[#allocation2 + $0x10] sm:$0x3]  ;;  %v693_v17 = vld [vmem:[#allocation2 + $0x12] sm:$0x3] }
 0x3cb   :  { %v612_v24 = vld [vmem:[#allocation2] sm:$0x3]  ;;  %v621_v29 = vld [vmem:[#allocation2 + $0x2] sm:$0x3]  ;;  %v630_v35 = vld [vmem:[#allocation2 + $0x4] sm:$0x3] }
 0x3cc   :  { %vm614_vm8 = vcmp.ge.f32.partialorder %v612_v24, 0.75  ;;  %v639_v41 = vld [vmem:[#allocation2 + $0x6] sm:$0x3] }
 0x3cd   :  { %v1631_v25 = vsel %vm614_vm8, 1.0, %v1910_v4  ;;  %v648_v47 = vld [vmem:[#allocation2 + $0x8] sm:$0x3]  ;;  %v657_v53 = vld [vmem:[#allocation2 + $0xa] sm:$0x3] }
 0x3ce   :  { %v617_v26 = vmul.f32 0.75, %v1631_v25  ;;  %620 = vst.msk [vmem:[#allocation2] sm:$0x3] %vm619_vm7, %v1631_v25  ;;  %v666_v59 = vld [vmem:[#allocation2 + $0xc] sm:$0x3] }
 0x3cf   :  { %v675_v1 = vld [vmem:[#allocation2 + $0xe] sm:$0x3] }
 0x3d0   :  { %v618_v27 = vsub.f32 %v612_v24, %v617_v26 }
 0x3d2   :  { %v622_v28 = vmul.f32 0.5, %v618_v27 }
 0x3d4   :  { %v623_v30 = vadd.f32 %v622_v28, %v621_v29 }
 0x3d6   :  { %vm624_vm9 = vcmp.ge.f32.partialorder %v623_v30, 0.75 }
 0x3d7   :  { %v1632_v31 = vsel %vm624_vm9, 1.0, %v1910_v4 }
 0x3d8   :  { %v627_v32 = vmul.f32 0.75, %v1632_v31  ;;  %629 = vst.msk [vmem:[#allocation2 + $0x2] sm:$0x3] %vm619_vm7, %v1632_v31 }
 0x3da   :  { %v628_v33 = vsub.f32 %v623_v30, %v627_v32 }
 0x3dc   :  { %v631_v34 = vmul.f32 0.5, %v628_v33 }
 0x3de   :  { %v632_v36 = vadd.f32 %v631_v34, %v630_v35 }
 0x3e0   :  { %vm633_vm11 = vcmp.ge.f32.partialorder %v632_v36, 0.75 }
 0x3e1   :  { %v1633_v37 = vsel %vm633_vm11, 1.0, %v1910_v4 }
 0x3e2   :  { %v636_v38 = vmul.f32 0.75, %v1633_v37  ;;  %638 = vst.msk [vmem:[#allocation2 + $0x4] sm:$0x3] %vm619_vm7, %v1633_v37 }
 0x3e4   :  { %v637_v39 = vsub.f32 %v632_v36, %v636_v38 }
 0x3e6   :  { %v640_v40 = vmul.f32 0.5, %v637_v39 }
 0x3e8   :  { %v641_v42 = vadd.f32 %v640_v40, %v639_v41 }
 0x3ea   :  { %vm642_vm3 = vcmp.ge.f32.partialorder %v641_v42, 0.75 }
 0x3eb   :  { %v1634_v43 = vsel %vm642_vm3, 1.0, %v1910_v4 }
 0x3ec   :  { %v645_v44 = vmul.f32 0.75, %v1634_v43  ;;  %647 = vst.msk [vmem:[#allocation2 + $0x6] sm:$0x3] %vm619_vm7, %v1634_v43 }
 0x3ee   :  { %v646_v45 = vsub.f32 %v641_v42, %v645_v44 }
 0x3f0   :  { %v649_v46 = vmul.f32 0.5, %v646_v45 }
 0x3f2   :  { %v650_v48 = vadd.f32 %v649_v46, %v648_v47 }
 0x3f3   :  { %v700_v10 = vld [vmem:[#allocation2] sm:$0xff] }
 0x3f4   :  { %vm651_vm4 = vcmp.ge.f32.partialorder %v650_v48, 0.75 }
 0x3f5   :  { %v1635_v49 = vsel %vm651_vm4, 1.0, %v1910_v4 }
 0x3f6   :  { %v654_v50 = vmul.f32 0.75, %v1635_v49  ;;  %656 = vst.msk [vmem:[#allocation2 + $0x8] sm:$0x3] %vm619_vm7, %v1635_v49 }
 0x3f8   :  { %v655_v51 = vsub.f32 %v650_v48, %v654_v50 }
 0x3fa   :  { %v658_v52 = vmul.f32 0.5, %v655_v51 }
 0x3fc   :  { %v659_v54 = vadd.f32 %v658_v52, %v657_v53 }
 0x3fe   :  { %vm660_vm8 = vcmp.ge.f32.partialorder %v659_v54, 0.75 }
 0x3ff   :  { %v1636_v55 = vsel %vm660_vm8, 1.0, %v1910_v4  ;;  %vm778_vm8 = vcmask 27648  }
 0x400   :  { %v663_v56 = vmul.f32 0.75, %v1636_v55  ;;  %665 = vst.msk [vmem:[#allocation2 + $0xa] sm:$0x3] %vm619_vm7, %v1636_v55 }
 0x402   :  { %v664_v57 = vsub.f32 %v659_v54, %v663_v56 }
 0x404   :  { %v667_v58 = vmul.f32 0.5, %v664_v57 }
 0x406   :  { %v668_v60 = vadd.f32 %v667_v58, %v666_v59 }
 0x408   :  { %vm669_vm9 = vcmp.ge.f32.partialorder %v668_v60, 0.75 }
 0x409   :  { %v1637_v61 = vsel %vm669_vm9, 1.0, %v1910_v4  ;;  %vm775_vm9 = vcmask 31744  }
 0x40a   :  { %v672_v62 = vmul.f32 0.75, %v1637_v61  ;;  %674 = vst.msk [vmem:[#allocation2 + $0xc] sm:$0x3] %vm619_vm7, %v1637_v61 }
 0x40c   :  { %v673_v63 = vsub.f32 %v668_v60, %v672_v62 }
 0x40e   :  { %v676_v0 = vmul.f32 0.5, %v673_v63 }
 0x410   :  { %v677_v2 = vadd.f32 %v676_v0, %v675_v1 }
 0x412   :  { %vm678_vm11 = vcmp.ge.f32.partialorder %v677_v2, 0.75 }
 0x413   :  { %v1638_v3 = vsel %vm678_vm11, 1.0, %v1910_v4  ;;  %vm787_vm11 = vcmask 25600  }
 0x414   :  { %v681_v5 = vmul.f32 0.75, %v1638_v3  ;;  %683 = vst.msk [vmem:[#allocation2 + $0xe] sm:$0x3] %vm619_vm7, %v1638_v3 }
 0x416   :  { %v682_v6 = vsub.f32 %v677_v2, %v681_v5 }
 0x418   :  { %v685_v7 = vmul.f32 0.5, %v682_v6 }
 0x41a   :  { %v686_v9 = vadd.f32 %v685_v7, %v684_v8 }
 0x41b   :  { %v701_v11 = vld [vmem:[#allocation2 + $0x8] sm:$0xff] }
 0x41c   :  { %vm687_vm3 = vcmp.ge.f32.partialorder %v686_v9, 0.75  ;;  %v703_v12 = vpack.c.bf16 %v701_v11, %v700_v10 }
 0x41d   :  { %v1639_v13 = vsel %vm687_vm3, 1.0, %v1910_v4 }
 0x41e   :  { %v690_v14 = vmul.f32 0.75, %v1639_v13  ;;  %692 = vst.msk [vmem:[#allocation2 + $0x10] sm:$0x3] %vm619_vm7, %v1639_v13  ;;  %1794 = vmatprep.mubr.msk.bf16.mxu1 %vm607_vm6, %v703_v12 }
 0x420   :  { %v691_v15 = vsub.f32 %v686_v9, %v690_v14 }
 0x422   :  { %v694_v16 = vmul.f32 0.5, %v691_v15 }
 0x424   :  { %v695_v18 = vadd.f32 %v694_v16, %v693_v17 }
 0x426   :  { %vm696_vm4 = vcmp.ge.f32.partialorder %v695_v18, 0.75 }
 0x427   :  { %v1640_v19 = vsel %vm696_vm4, 1.0, %v1910_v4 }
 0x428   :  { %699 = vst.msk [vmem:[#allocation2 + $0x12] sm:$0x3] %vm619_vm7, %v1640_v19 }
 0x42f   :  { %v702_v20 = vld [vmem:[#allocation2 + $0x10] sm:$0xf] }
 0x430   :  { %v704_v21 = vpack.c.bf16 %v702_v20, %v702_v20 }
 0x432   :  { %1795 = vmatmul.mubr.msk.bf16.vlgmr.msra.gmra.mrb[4].mxu1 %vm607_vm6, %v704_v21 }
 0x505   :  { %v1796_v22 = vpop.f32.mrb[4].mxu1 }
 0x506   :  { %v761_v23 = vpop.f32.mrb[5].mxu1  ;;  %779 = vst.msk [vmem:[#allocation2 + $0x10] sm:$0xf] %vm778_vm8, %v1796_v22 }
 0x507   :  { %v1797_v24 = vpop.f32.mrb[6].mxu1  ;;  %776 = vst.msk [vmem:[#allocation2] sm:$0xff] %vm775_vm9, %v761_v23 }
 0x508   :  { %v764_v25 = vpop.f32.mrb[7].mxu1 }
 0x509   :  { %777 = vst.msk [vmem:[#allocation2 + $0x8] sm:$0xff] %vm775_vm9, %v764_v25 }
 0x50d   :  { %v852_v13 = vld [vmem:[#allocation2 + $0x10] sm:$0x3]  ;;  %v861_v22 = vld [vmem:[#allocation2 + $0x12] sm:$0x3] }
 0x50e   :  { %v780_v26 = vld [vmem:[#allocation2] sm:$0x3]  ;;  %v789_v31 = vld [vmem:[#allocation2 + $0x2] sm:$0x3]  ;;  %v798_v37 = vld [vmem:[#allocation2 + $0x4] sm:$0x3] }
 0x50f   :  { %vm782_vm3 = vcmp.ge.f32.partialorder %v780_v26, 0.75  ;;  %v807_v43 = vld [vmem:[#allocation2 + $0x6] sm:$0x3] }
 0x510   :  { %v1645_v27 = vsel %vm782_vm3, 1.0, %v1910_v4  ;;  %v816_v49 = vld [vmem:[#allocation2 + $0x8] sm:$0x3]  ;;  %v825_v58 = vld [vmem:[#allocation2 + $0xa] sm:$0x3] }
 0x511   :  { %v785_v28 = vmul.f32 0.75, %v1645_v27  ;;  %788 = vst.msk [vmem:[#allocation2] sm:$0x3] %vm787_vm11, %v1645_v27  ;;  %v834_v0 = vld [vmem:[#allocation2 + $0xc] sm:$0x3] }
 0x512   :  { %v843_v7 = vld [vmem:[#allocation2 + $0xe] sm:$0x3] }
 0x513   :  { %v786_v29 = vsub.f32 %v780_v26, %v785_v28  ;;  %v921_v28 = vld [vmem:[%s2318_s5] sm:$0x3] }
 0x515   :  { %v790_v30 = vmul.f32 0.5, %v786_v29 }
 0x517   :  { %v791_v32 = vadd.f32 %v790_v30, %v789_v31 }
 0x519   :  { %vm792_vm4 = vcmp.ge.f32.partialorder %v791_v32, 0.75 }
 0x51a   :  { %v1646_v33 = vsel %vm792_vm4, 1.0, %v1910_v4 }
 0x51b   :  { %v795_v34 = vmul.f32 0.75, %v1646_v33  ;;  %797 = vst.msk [vmem:[#allocation2 + $0x2] sm:$0x3] %vm787_vm11, %v1646_v33 }
 0x51d   :  { %v796_v35 = vsub.f32 %v791_v32, %v795_v34 }
 0x51f   :  { %v799_v36 = vmul.f32 0.5, %v796_v35 }
 0x521   :  { %v800_v38 = vadd.f32 %v799_v36, %v798_v37 }
 0x523   :  { %vm801_vm0 = vcmp.ge.f32.partialorder %v800_v38, 0.75 }
 0x524   :  { %v1647_v39 = vsel %vm801_vm0, 1.0, %v1910_v4 }
 0x525   :  { %v804_v40 = vmul.f32 0.75, %v1647_v39  ;;  %806 = vst.msk [vmem:[#allocation2 + $0x4] sm:$0x3] %vm787_vm11, %v1647_v39 }
 0x527   :  { %v805_v41 = vsub.f32 %v800_v38, %v804_v40 }
 0x529   :  { %v808_v42 = vmul.f32 0.5, %v805_v41 }
 0x52b   :  { %v809_v44 = vadd.f32 %v808_v42, %v807_v43 }
 0x52d   :  { %vm810_vm3 = vcmp.ge.f32.partialorder %v809_v44, 0.75 }
 0x52e   :  { %v1648_v45 = vsel %vm810_vm3, 1.0, %v1910_v4 }
 0x52f   :  { %815 = vst.msk [vmem:[#allocation2 + $0x6] sm:$0x3] %vm787_vm11, %v1648_v45  ;;  %v813_v46 = vmul.f32 0.75, %v1648_v45 }
 0x531   :  { %v814_v47 = vsub.f32 %v809_v44, %v813_v46 }
 0x533   :  { %v817_v48 = vmul.f32 0.5, %v814_v47 }
 0x535   :  { %v818_v50 = vadd.f32 %v817_v48, %v816_v49 }
 0x536   :  { %v2150_v51 = vld [vmem:[#allocation2] sm:$0xff] }
 0x537   :  { %v871_v52 = vmul.f32 %v2150_v51, %v2150_v51  ;;  %vm819_vm0 = vcmp.ge.f32.partialorder %v818_v50, 0.75 }
 0x538   :  { %v1649_v53 = vsel %vm819_vm0, 1.0, %v1910_v4 }
 0x539   :  { %v874_v54 = vsel %vm775_vm9, %v871_v52, 0.0  ;;  %v822_v55 = vmul.f32 0.75, %v1649_v53  ;;  %824 = vst.msk [vmem:[#allocation2 + $0x8] sm:$0x3] %vm787_vm11, %v1649_v53 }
 0x53a   :  { %875 = vadd.xlane.f32.xlu0 %v874_v54 }
 0x53b   :  { %v823_v56 = vsub.f32 %v818_v50, %v822_v55 }
 0x53d   :  { %v826_v57 = vmul.f32 0.5, %v823_v56 }
 0x53f   :  { %v827_v59 = vadd.f32 %v826_v57, %v825_v58 }
 0x541   :  { %vm828_vm4 = vcmp.ge.f32.partialorder %v827_v59, 0.75 }
 0x542   :  { %v1650_v60 = vsel %vm828_vm4, 1.0, %v1910_v4 }
 0x543   :  { %v831_v61 = vmul.f32 0.75, %v1650_v60  ;;  %833 = vst.msk [vmem:[#allocation2 + $0xa] sm:$0x3] %vm787_vm11, %v1650_v60 }
 0x545   :  { %v832_v62 = vsub.f32 %v827_v59, %v831_v61 }
 0x547   :  { %v835_v63 = vmul.f32 0.5, %v832_v62  ;;  %v1862_v62 = vld [vmem:[%s2319_s6] sm:$0xff]  }
 0x548   :  { %1804 = vmatprep.subr.bf16.mxu1 %v1862_v62 }
 0x549   :  { %v836_v1 = vadd.f32 %v835_v63, %v834_v0  ;;  %v1863_v63 = vld [vmem:[%s2319_s6 + $0x8] sm:$0xff]   ;;  %1805 = vmatpush3.bf16.msra.mxu1 %v1862_v62 }
 0x54a   :  { %1806 = vmatprep.subr.bf16.mxu1 %v1863_v63 }
 0x54b   :  { %vm837_vm3 = vcmp.ge.f32.partialorder %v836_v1, 0.75 }
 0x54c   :  { %v1651_v2 = vsel %vm837_vm3, 1.0, %v1910_v4 }
 0x54d   :  { %v840_v3 = vmul.f32 0.75, %v1651_v2  ;;  %842 = vst.msk [vmem:[#allocation2 + $0xc] sm:$0x3] %vm787_vm11, %v1651_v2  ;;  %1807 = vmatpush3.bf16.msra.mxu1 %v1863_v63 }
 0x54f   :  { %v841_v5 = vsub.f32 %v836_v1, %v840_v3 }
 0x551   :  { %v844_v6 = vmul.f32 0.5, %v841_v5 }
 0x553   :  { %v845_v8 = vadd.f32 %v844_v6, %v843_v7 }
 0x555   :  { %vm846_vm0 = vcmp.ge.f32.partialorder %v845_v8, 0.75 }
 0x556   :  { %v1652_v9 = vsel %vm846_vm0, 1.0, %v1910_v4  ;;  %vm928_vm0 = vcmask 1041408  }
 0x557   :  { %851 = vst.msk [vmem:[#allocation2 + $0xe] sm:$0x3] %vm787_vm11, %v1652_v9  ;;  %v849_v10 = vmul.f32 0.75, %v1652_v9  ;;  %1841 = vmatprep.subr.msk.bf16.mxu0 %vm928_vm0, %v921_v28  ;;  %v930_v29 = vsel %vm928_vm0, %v921_v28, 0 }
 0x558   :  { %1799 = vmatpush3.bf16.msra.mxu0 %v930_v29 }
 0x559   :  { %v850_v11 = vsub.f32 %v845_v8, %v849_v10 }
 0x55b   :  { %v853_v12 = vmul.f32 0.5, %v850_v11 }
 0x55d   :  { %v854_v14 = vadd.f32 %v853_v12, %v852_v13 }
 0x55e   :  { %v869_v15 = vld [vmem:[#allocation2 + $0x8] sm:$0xff] }
 0x55f   :  { %v872_v16 = vmul.f32 %v869_v15, %v869_v15  ;;  %vm855_vm4 = vcmp.ge.f32.partialorder %v854_v14, 0.75 }
 0x560   :  { %v1653_v17 = vsel %vm855_vm4, 1.0, %v1910_v4 }
 0x561   :  { %v877_v18 = vsel %vm775_vm9, %v872_v16, 0.0  ;;  %v858_v19 = vmul.f32 0.75, %v1653_v17  ;;  %860 = vst.msk [vmem:[#allocation2 + $0x10] sm:$0x3] %vm787_vm11, %v1653_v17 }
 0x562   :  { %878 = vadd.xlane.f32.xlu0 %v877_v18 }
 0x563   :  { %v859_v20 = vsub.f32 %v854_v14, %v858_v19 }
 0x565   :  { %v862_v21 = vmul.f32 0.5, %v859_v20 }
 0x567   :  { %v863_v23 = vadd.f32 %v862_v21, %v861_v22 }
 0x569   :  { %vm864_vm3 = vcmp.ge.f32.partialorder %v863_v23, 0.75 }
 0x56a   :  { %v1654_v24 = vsel %vm864_vm3, 1.0, %v1910_v4 }
 0x56b   :  { %867 = vst.msk [vmem:[#allocation2 + $0x12] sm:$0x3] %vm787_vm11, %v1654_v24 }
 0x572   :  { %v870_v25 = vld [vmem:[#allocation2 + $0x10] sm:$0xf] }
 0x573   :  { %v873_v26 = vmul.f32 %v870_v25, %v870_v25 }
 0x575   :  { %v880_v27 = vsel %vm778_vm8, %v873_v26, 0.0 }
 0x576   :  { %881 = vadd.xlane.f32.xlu1 %v880_v27 }
 0x5c7   :  { %v876_v30 = vpop.xlane.xlu0 %875 }
 0x5c8   :  { %1874 = vrsqrt.f32 %v876_v30  ;;  %vm885_vm4 = vcmp.eq.f32.partialorder %v876_v30, inf  ;;  %v888_v33 = vand.u32 2147483648, %v876_v30  ;;  %vm887_vm11 = vcmp.eq.f32.partialorder %v876_v30, 0.0 }
 0x5d2   :  { %v1875_v31 = vpop.eup %1874 }
 0x5d3   :  { %v884_v32 = vmul.f32 %v1875_v31, %v876_v30 }
 0x5d5   :  { %v886_v34 = vsel %vm885_vm4, %v876_v30, %v884_v32 }
 0x5d6   :  { %v889_v35 = vsel %vm887_vm11, %v888_v33, %v886_v34 }
 0x5d7   :  { %v904_v36 = vadd.f32 1e-12, %v889_v35 }
 0x5d9   :  { %1876 = vrcp.f32 %v904_v36 }
 0x5e3   :  { %v1877_v37 = vpop.eup %1876 }
 0x5e4   :  { %v910_v38 = vmul.f32 %v1877_v37, %v2150_v51 }
 0x5e6   :  { %913 = vst.msk [vmem:[#allocation2] sm:$0xff] %vm775_vm9, %v910_v38 }
 0x5ed   :  { %v916_v55 = vld [vmem:[#allocation2] sm:$0xff] }
 0x5ef   :  { %v879_v39 = vpop.xlane.xlu0 %878 }
 0x5f0   :  { %1878 = vrsqrt.f32 %v879_v39  ;;  %vm892_vm3 = vcmp.eq.f32.partialorder %v879_v39, inf  ;;  %v895_v42 = vand.u32 2147483648, %v879_v39  ;;  %vm894_vm0 = vcmp.eq.f32.partialorder %v879_v39, 0.0 }
 0x5fa   :  { %v1879_v40 = vpop.eup %1878 }
 0x5fb   :  { %v891_v41 = vmul.f32 %v1879_v40, %v879_v39 }
 0x5fd   :  { %v893_v43 = vsel %vm892_vm3, %v879_v39, %v891_v41 }
 0x5fe   :  { %v896_v44 = vsel %vm894_vm0, %v895_v42, %v893_v43 }
 0x5ff   :  { %v905_v45 = vadd.f32 1e-12, %v896_v44 }
 0x601   :  { %1880 = vrcp.f32 %v905_v45 }
 0x603   :  { %v882_v46 = vpop.xlane.xlu1 %881 }
 0x604   :  { %1882 = vrsqrt.f32 %v882_v46  ;;  %vm899_vm4 = vcmp.eq.f32.partialorder %v882_v46, inf  ;;  %v902_v51 = vand.u32 2147483648, %v882_v46  ;;  %vm901_vm11 = vcmp.eq.f32.partialorder %v882_v46, 0.0 }
 0x60b   :  { %v1881_v47 = vpop.eup %1880 }
 0x60c   :  { %v911_v48 = vmul.f32 %v1881_v47, %v869_v15 }
 0x60e   :  { %v1883_v49 = vpop.eup %1882  ;;  %914 = vst.msk [vmem:[#allocation2 + $0x8] sm:$0xff] %vm775_vm9, %v911_v48 }
 0x60f   :  { %v898_v50 = vmul.f32 %v1883_v49, %v882_v46 }
 0x611   :  { %v900_v52 = vsel %vm899_vm4, %v882_v46, %v898_v50 }
 0x612   :  { %v903_v53 = vsel %vm901_vm11, %v902_v51, %v900_v52 }
 0x613   :  { %v906_v54 = vadd.f32 1e-12, %v903_v53 }
 0x615   :  { %1884 = vrcp.f32 %v906_v54  ;;  %v917_v56 = vld [vmem:[#allocation2 + $0x8] sm:$0xff] }
 0x616   :  { %v919_v57 = vpack.c.bf16 %v917_v56, %v916_v55 }
 0x618   :  { %1800 = vmatprep.mubr.msk.bf16.mxu0 %vm775_vm9, %v919_v57 }
 0x61f   :  { %v1885_v58 = vpop.eup %1884 }
 0x620   :  { %v912_v59 = vmul.f32 %v1885_v58, %v870_v25 }
 0x622   :  { %915 = vst.msk [vmem:[#allocation2 + $0x10] sm:$0xf] %vm778_vm8, %v912_v59 }
 0x629   :  { %v918_v60 = vld [vmem:[#allocation2 + $0x10] sm:$0xf] }
 0x62a   :  { %v920_v61 = vpack.c.bf16 %v918_v60, %v918_v60 }
 0x62c   :  { %1801 = vmatmul.mubr.msk.bf16.vlgmr.msra.gmra.mrb[8].mxu0 %vm775_vm9, %v920_v61 }
 0x6ff   :  { %v1802_v0 = vpop.f32.mrb[8].mxu0 }
 0x700   :  { %982 = vst.msk [vmem:[#allocation2 + $0x10] sm:$0xf] %vm610_vm5, %v1802_v0  ;;  %v966_v1 = vpop.f32.mrb[9].mxu0 }
 0x701   :  { %980 = vst.msk [vmem:[#allocation2] sm:$0xff] %vm607_vm6, %v966_v1  ;;  %v1803_v2 = vpop.f32.mrb[10].mxu0 }
 0x702   :  { %v969_v3 = vpop.f32.mrb[11].mxu0  ;;  %v1864_v2 = vld [vmem:[%s2320_s7] sm:$0xff]  }
 0x703   :  { %981 = vst.msk [vmem:[#allocation2 + $0x8] sm:$0xff] %vm607_vm6, %v969_v3  ;;  %1812 = vmatprep.subr.bf16.mxu0 %v1864_v2  ;;  %v1865_v3 = vld [vmem:[%s2320_s7 + $0x8] sm:$0xff]  }
 0x704   :  { %1813 = vmatpush3.bf16.msra.mxu0 %v1864_v2 }
 0x705   :  { %1814 = vmatprep.subr.bf16.mxu0 %v1865_v3 }
 0x707   :  { %v1054_v52 = vld [vmem:[#allocation2 + $0x10] sm:$0x3]  ;;  %v1063_v61 = vld [vmem:[#allocation2 + $0x12] sm:$0x3] }
 0x708   :  { %v983_v5 = vld [vmem:[#allocation2] sm:$0x3]  ;;  %v991_v10 = vld [vmem:[#allocation2 + $0x2] sm:$0x3]  ;;  %v1000_v16 = vld [vmem:[#allocation2 + $0x4] sm:$0x3]  ;;  %1815 = vmatpush3.bf16.msra.mxu0 %v1865_v3 }
 0x709   :  { %vm985_vm8 = vcmp.ge.f32.partialorder %v983_v5, 0.75  ;;  %v1009_v22 = vld [vmem:[#allocation2 + $0x6] sm:$0x3] }
 0x70a   :  { %v1657_v6 = vsel %vm985_vm8, 1.0, %v1910_v4  ;;  %v1018_v28 = vld [vmem:[#allocation2 + $0x8] sm:$0x3]  ;;  %v1027_v34 = vld [vmem:[#allocation2 + $0xa] sm:$0x3] }
 0x70b   :  { %v988_v7 = vmul.f32 0.75, %v1657_v6  ;;  %990 = vst.msk [vmem:[#allocation2] sm:$0x3] %vm619_vm7, %v1657_v6  ;;  %v1036_v40 = vld [vmem:[#allocation2 + $0xc] sm:$0x3]  ;;  %v1867_v6 = vld [vmem:[%s2320_s7 + $0x18] sm:$0xff]  }
 0x70c   :  { %v1045_v46 = vld [vmem:[#allocation2 + $0xe] sm:$0x3] }
 0x70d   :  { %v989_v8 = vsub.f32 %v983_v5, %v988_v7  ;;  %v1866_v5 = vld [vmem:[%s2320_s7 + $0x10] sm:$0xff]  }
 0x70e   :  { %1816 = vmatprep.subr.bf16.mxu0 %v1866_v5 }
 0x70f   :  { %v992_v9 = vmul.f32 0.5, %v989_v8  ;;  %1817 = vmatpush3.bf16.msra.mxu0 %v1866_v5 }
 0x710   :  { %1818 = vmatprep.subr.bf16.mxu0 %v1867_v6 }
 0x711   :  { %v993_v11 = vadd.f32 %v992_v9, %v991_v10 }
 0x713   :  { %vm994_vm9 = vcmp.ge.f32.partialorder %v993_v11, 0.75  ;;  %1819 = vmatpush3.bf16.msra.mxu0 %v1867_v6 }
 0x714   :  { %v1658_v12 = vsel %vm994_vm9, 1.0, %v1910_v4 }
 0x715   :  { %v997_v13 = vmul.f32 0.75, %v1658_v12  ;;  %999 = vst.msk [vmem:[#allocation2 + $0x2] sm:$0x3] %vm619_vm7, %v1658_v12 }
 0x717   :  { %v998_v14 = vsub.f32 %v993_v11, %v997_v13 }
 0x719   :  { %v1001_v15 = vmul.f32 0.5, %v998_v14 }
 0x71b   :  { %v1002_v17 = vadd.f32 %v1001_v15, %v1000_v16 }
 0x71d   :  { %vm1003_vm5 = vcmp.ge.f32.partialorder %v1002_v17, 0.75 }
 0x71e   :  { %v1659_v18 = vsel %vm1003_vm5, 1.0, %v1910_v4 }
 0x71f   :  { %v1006_v19 = vmul.f32 0.75, %v1659_v18  ;;  %1008 = vst.msk [vmem:[#allocation2 + $0x4] sm:$0x3] %vm619_vm7, %v1659_v18 }
 0x721   :  { %v1007_v20 = vsub.f32 %v1002_v17, %v1006_v19 }
 0x723   :  { %v1010_v21 = vmul.f32 0.5, %v1007_v20 }
 0x725   :  { %v1011_v23 = vadd.f32 %v1010_v21, %v1009_v22 }
 0x727   :  { %vm1012_vm3 = vcmp.ge.f32.partialorder %v1011_v23, 0.75 }
 0x728   :  { %v1660_v24 = vsel %vm1012_vm3, 1.0, %v1910_v4 }
 0x729   :  { %v1015_v25 = vmul.f32 0.75, %v1660_v24  ;;  %1017 = vst.msk [vmem:[#allocation2 + $0x6] sm:$0x3] %vm619_vm7, %v1660_v24 }
 0x72b   :  { %v1016_v26 = vsub.f32 %v1011_v23, %v1015_v25 }
 0x72d   :  { %v1019_v27 = vmul.f32 0.5, %v1016_v26 }
 0x72f   :  { %v1020_v29 = vadd.f32 %v1019_v27, %v1018_v28 }
 0x730   :  { %v1070_v54 = vld [vmem:[#allocation2] sm:$0xff] }
 0x731   :  { %vm1021_vm0 = vcmp.ge.f32.partialorder %v1020_v29, 0.75 }
 0x732   :  { %v1661_v30 = vsel %vm1021_vm0, 1.0, %v1910_v4 }
 0x733   :  { %v1024_v31 = vmul.f32 0.75, %v1661_v30  ;;  %1026 = vst.msk [vmem:[#allocation2 + $0x8] sm:$0x3] %vm619_vm7, %v1661_v30 }
 0x735   :  { %v1025_v32 = vsub.f32 %v1020_v29, %v1024_v31 }
 0x737   :  { %v1028_v33 = vmul.f32 0.5, %v1025_v32 }
 0x739   :  { %v1029_v35 = vadd.f32 %v1028_v33, %v1027_v34 }
 0x73b   :  { %vm1030_vm4 = vcmp.ge.f32.partialorder %v1029_v35, 0.75 }
 0x73c   :  { %v1662_v36 = vsel %vm1030_vm4, 1.0, %v1910_v4 }
 0x73d   :  { %v1033_v37 = vmul.f32 0.75, %v1662_v36  ;;  %1035 = vst.msk [vmem:[#allocation2 + $0xa] sm:$0x3] %vm619_vm7, %v1662_v36 }
 0x73f   :  { %v1034_v38 = vsub.f32 %v1029_v35, %v1033_v37 }
 0x741   :  { %v1037_v39 = vmul.f32 0.5, %v1034_v38 }
 0x743   :  { %v1038_v41 = vadd.f32 %v1037_v39, %v1036_v40 }
 0x745   :  { %vm1039_vm11 = vcmp.ge.f32.partialorder %v1038_v41, 0.75 }
 0x746   :  { %v1663_v42 = vsel %vm1039_vm11, 1.0, %v1910_v4 }
 0x747   :  { %v1042_v43 = vmul.f32 0.75, %v1663_v42  ;;  %1044 = vst.msk [vmem:[#allocation2 + $0xc] sm:$0x3] %vm619_vm7, %v1663_v42 }
 0x749   :  { %v1043_v44 = vsub.f32 %v1038_v41, %v1042_v43 }
 0x74b   :  { %v1046_v45 = vmul.f32 0.5, %v1043_v44 }
 0x74d   :  { %v1047_v47 = vadd.f32 %v1046_v45, %v1045_v46 }
 0x74f   :  { %vm1048_vm8 = vcmp.ge.f32.partialorder %v1047_v47, 0.75 }
 0x750   :  { %v1664_v48 = vsel %vm1048_vm8, 1.0, %v1910_v4 }
 0x751   :  { %v1051_v49 = vmul.f32 0.75, %v1664_v48  ;;  %1053 = vst.msk [vmem:[#allocation2 + $0xe] sm:$0x3] %vm619_vm7, %v1664_v48 }
 0x753   :  { %v1052_v50 = vsub.f32 %v1047_v47, %v1051_v49 }
 0x755   :  { %v1055_v51 = vmul.f32 0.5, %v1052_v50 }
 0x757   :  { %v1056_v53 = vadd.f32 %v1055_v51, %v1054_v52 }
 0x758   :  { %v1071_v55 = vld [vmem:[#allocation2 + $0x8] sm:$0xff] }
 0x759   :  { %vm1057_vm9 = vcmp.ge.f32.partialorder %v1056_v53, 0.75  ;;  %v1073_v56 = vpack.c.bf16 %v1071_v55, %v1070_v54 }
 0x75a   :  { %v1665_v57 = vsel %vm1057_vm9, 1.0, %v1910_v4 }
 0x75b   :  { %v1060_v58 = vmul.f32 0.75, %v1665_v57  ;;  %1808 = vmatprep.mubr.msk.bf16.mxu1 %vm607_vm6, %v1073_v56  ;;  %1062 = vst.msk [vmem:[#allocation2 + $0x10] sm:$0x3] %vm619_vm7, %v1665_v57 }
 0x75d   :  { %v1061_v59 = vsub.f32 %v1056_v53, %v1060_v58 }
 0x75f   :  { %v1064_v60 = vmul.f32 0.5, %v1061_v59 }
 0x761   :  { %v1065_v62 = vadd.f32 %v1064_v60, %v1063_v61 }
 0x763   :  { %vm1066_vm5 = vcmp.ge.f32.partialorder %v1065_v62, 0.75 }
 0x764   :  { %v1666_v63 = vsel %vm1066_vm5, 1.0, %v1910_v4 }
 0x765   :  { %1069 = vst.msk [vmem:[#allocation2 + $0x12] sm:$0x3] %vm619_vm7, %v1666_v63 }
 0x76c   :  { %v1072_v0 = vld [vmem:[#allocation2 + $0x10] sm:$0xf] }
 0x76d   :  { %v1074_v1 = vpack.c.bf16 %v1072_v0, %v1072_v0 }
 0x76f   :  { %1809 = vmatmul.mubr.msk.bf16.vlgmr.msra.gmra.mrb[8].mxu1 %vm607_vm6, %v1074_v1 }
 0x842   :  { %v1810_v7 = vpop.f32.mrb[8].mxu1 }
 0x843   :  { %1147 = vst.msk [vmem:[#allocation2 + $0x10] sm:$0xf] %vm426_vm12, %v1810_v7  ;;  %v1131_v8 = vpop.f32.mrb[9].mxu1 }
 0x844   :  { %1145 = vst.msk [vmem:[#allocation2] sm:$0xff] %vm423_vm1, %v1131_v8  ;;  %v1811_v9 = vpop.f32.mrb[10].mxu1 }
 0x845   :  { %v1134_v10 = vpop.f32.mrb[11].mxu1  ;;  %v1868_v9 = vld [vmem:[%s2321_s8] sm:$0xff]  }
 0x846   :  { %1146 = vst.msk [vmem:[#allocation2 + $0x8] sm:$0xff] %vm423_vm1, %v1134_v10  ;;  %v1869_v10 = vld [vmem:[%s2321_s8 + $0x8] sm:$0xff]   ;;  %1824 = vmatprep.subr.bf16.mxu1 %v1868_v9 }
 0x847   :  { %1825 = vmatpush3.bf16.msra.mxu1 %v1868_v9 }
 0x848   :  { %1826 = vmatprep.subr.bf16.mxu1 %v1869_v10 }
 0x84a   :  { %v1219_v58 = vld [vmem:[#allocation2 + $0x10] sm:$0x3]  ;;  %v1228_v3 = vld [vmem:[#allocation2 + $0x12] sm:$0x3] }
 0x84b   :  { %v1148_v11 = vld [vmem:[#allocation2] sm:$0x3]  ;;  %v1156_v16 = vld [vmem:[#allocation2 + $0x2] sm:$0x3]  ;;  %v1165_v22 = vld [vmem:[#allocation2 + $0x4] sm:$0x3]  ;;  %1827 = vmatpush3.bf16.msra.mxu1 %v1869_v10 }
 0x84c   :  { %vm1150_vm6 = vcmp.ge.f32.partialorder %v1148_v11, 0.75  ;;  %v1174_v28 = vld [vmem:[#allocation2 + $0x6] sm:$0x3] }
 0x84d   :  { %v1671_v12 = vsel %vm1150_vm6, 1.0, %v1910_v4  ;;  %v1183_v34 = vld [vmem:[#allocation2 + $0x8] sm:$0x3]  ;;  %v1192_v40 = vld [vmem:[#allocation2 + $0xa] sm:$0x3] }
 0x84e   :  { %v1153_v13 = vmul.f32 0.75, %v1671_v12  ;;  %1155 = vst.msk [vmem:[#allocation2] sm:$0x3] %vm435_vm2, %v1671_v12  ;;  %v1201_v46 = vld [vmem:[#allocation2 + $0xc] sm:$0x3]  ;;  %v1871_v12 = vld [vmem:[%s2321_s8 + $0x18] sm:$0xff]  }
 0x84f   :  { %v1210_v52 = vld [vmem:[#allocation2 + $0xe] sm:$0x3] }
 0x850   :  { %v1154_v14 = vsub.f32 %v1148_v11, %v1153_v13  ;;  %v1870_v11 = vld [vmem:[%s2321_s8 + $0x10] sm:$0xff]   ;;  %v1872_v13 = vld [vmem:[%s2321_s8 + $0x20] sm:$0xff]  }
 0x851   :  { %1828 = vmatprep.subr.bf16.mxu1 %v1870_v11 }
 0x852   :  { %v1157_v15 = vmul.f32 0.5, %v1154_v14  ;;  %1829 = vmatpush3.bf16.msra.mxu1 %v1870_v11  ;;  %v1873_v14 = vld [vmem:[%s2321_s8 + $0x28] sm:$0xff]   ;;  %s1911_s8 = smov [#allocation3]  }
 0x853   :  { %1830 = vmatprep.subr.bf16.mxu1 %v1871_v12  ;;  %s1561_s11 = sshll.u32 %s1911_s8, 4  ;;  %s1562_s11 = int_to_ptr.vmem [resolvable:$true] %s1561_s11 }
 0x854   :  { %v1158_v17 = vadd.f32 %v1157_v15, %v1156_v16  ;;  %s1886_s12 = scalar_lea.vmem %s1562_s11, 320  ;;  %p1891_p1 = scmp.lt.s32.totalorder %s1562_s11, %s1562_s11 }
 0x855   :  { %p1887_p0 = scmp.ne.s32.totalorder %s1562_s11, %s1886_s12  ;;  %p1892_p2 = scmp.lt.s32.totalorder %s1886_s12, %s1886_s12 }
 0x856   :  { %vm1159_vm7 = vcmp.ge.f32.partialorder %v1158_v17, 0.75  ;;  %1831 = vmatpush3.bf16.msra.mxu1 %v1871_v12 }
 0x857   :  { %v1672_v18 = vsel %vm1159_vm7, 1.0, %v1910_v4  ;;  %1832 = vmatprep.subr.bf16.mxu1 %v1872_v13  ;;  %p1893_p3 = por %p1892_p2, %p1891_p1 }
 0x858   :  { %v1162_v19 = vmul.f32 0.75, %v1672_v18  ;;  %1164 = vst.msk [vmem:[#allocation2 + $0x2] sm:$0x3] %vm435_vm2, %v1672_v18 }
 0x859   :  { %p1894_p4 = pnand %p1893_p3, %p1887_p0 }
 0x85a   :  { %v1163_v20 = vsub.f32 %v1158_v17, %v1162_v19  ;;  %1833 = vmatpush3.bf16.msra.mxu1 %v1872_v13 }
 0x85b   :  { %1834 = vmatprep.subr.bf16.mxu1 %v1873_v14 }
 0x85c   :  { %v1166_v21 = vmul.f32 0.5, %v1163_v20 }
 0x85e   :  { %v1167_v23 = vadd.f32 %v1166_v21, %v1165_v22  ;;  %1835 = vmatpush3.bf16.msra.mxu1 %v1873_v14 }
 0x860   :  { %vm1168_vm12 = vcmp.ge.f32.partialorder %v1167_v23, 0.75 }
 0x861   :  { %v1673_v24 = vsel %vm1168_vm12, 1.0, %v1910_v4 }
 0x862   :  { %v1171_v25 = vmul.f32 0.75, %v1673_v24  ;;  %1173 = vst.msk [vmem:[#allocation2 + $0x4] sm:$0x3] %vm435_vm2, %v1673_v24 }
 0x864   :  { %v1172_v26 = vsub.f32 %v1167_v23, %v1171_v25 }
 0x866   :  { %v1175_v27 = vmul.f32 0.5, %v1172_v26 }
 0x868   :  { %v1176_v29 = vadd.f32 %v1175_v27, %v1174_v28 }
 0x86a   :  { %vm1177_vm3 = vcmp.ge.f32.partialorder %v1176_v29, 0.75 }
 0x86b   :  { %v1674_v30 = vsel %vm1177_vm3, 1.0, %v1910_v4 }
 0x86c   :  { %v1180_v31 = vmul.f32 0.75, %v1674_v30  ;;  %1182 = vst.msk [vmem:[#allocation2 + $0x6] sm:$0x3] %vm435_vm2, %v1674_v30 }
 0x86e   :  { %v1181_v32 = vsub.f32 %v1176_v29, %v1180_v31 }
 0x870   :  { %v1184_v33 = vmul.f32 0.5, %v1181_v32 }
 0x872   :  { %v1185_v35 = vadd.f32 %v1184_v33, %v1183_v34 }
 0x873   :  { %v1235_v60 = vld [vmem:[#allocation2] sm:$0xff] }
 0x874   :  { %vm1186_vm0 = vcmp.ge.f32.partialorder %v1185_v35, 0.75 }
 0x875   :  { %v1675_v36 = vsel %vm1186_vm0, 1.0, %v1910_v4 }
 0x876   :  { %v1189_v37 = vmul.f32 0.75, %v1675_v36  ;;  %1191 = vst.msk [vmem:[#allocation2 + $0x8] sm:$0x3] %vm435_vm2, %v1675_v36 }
 0x878   :  { %v1190_v38 = vsub.f32 %v1185_v35, %v1189_v37 }
 0x87a   :  { %v1193_v39 = vmul.f32 0.5, %v1190_v38 }
 0x87c   :  { %v1194_v41 = vadd.f32 %v1193_v39, %v1192_v40 }
 0x87e   :  { %vm1195_vm4 = vcmp.ge.f32.partialorder %v1194_v41, 0.75 }
 0x87f   :  { %v1676_v42 = vsel %vm1195_vm4, 1.0, %v1910_v4 }
 0x880   :  { %v1198_v43 = vmul.f32 0.75, %v1676_v42  ;;  %1200 = vst.msk [vmem:[#allocation2 + $0xa] sm:$0x3] %vm435_vm2, %v1676_v42 }
 0x882   :  { %v1199_v44 = vsub.f32 %v1194_v41, %v1198_v43 }
 0x884   :  { %v1202_v45 = vmul.f32 0.5, %v1199_v44 }
 0x886   :  { %v1203_v47 = vadd.f32 %v1202_v45, %v1201_v46 }
 0x888   :  { %vm1204_vm11 = vcmp.ge.f32.partialorder %v1203_v47, 0.75 }
 0x889   :  { %v1677_v48 = vsel %vm1204_vm11, 1.0, %v1910_v4 }
 0x88a   :  { %v1207_v49 = vmul.f32 0.75, %v1677_v48  ;;  %1209 = vst.msk [vmem:[#allocation2 + $0xc] sm:$0x3] %vm435_vm2, %v1677_v48 }
 0x88c   :  { %v1208_v50 = vsub.f32 %v1203_v47, %v1207_v49 }
 0x88e   :  { %v1211_v51 = vmul.f32 0.5, %v1208_v50 }
 0x890   :  { %v1212_v53 = vadd.f32 %v1211_v51, %v1210_v52 }
 0x892   :  { %vm1213_vm8 = vcmp.ge.f32.partialorder %v1212_v53, 0.75 }
 0x893   :  { %v1678_v54 = vsel %vm1213_vm8, 1.0, %v1910_v4  ;;  %vm1525_vm8 = vcmask 404480  }
 0x894   :  { %v1216_v55 = vmul.f32 0.75, %v1678_v54  ;;  %1218 = vst.msk [vmem:[#allocation2 + $0xe] sm:$0x3] %vm435_vm2, %v1678_v54 }
 0x896   :  { %v1217_v56 = vsub.f32 %v1212_v53, %v1216_v55 }
 0x898   :  { %v1220_v57 = vmul.f32 0.5, %v1217_v56 }
 0x89a   :  { %v1221_v59 = vadd.f32 %v1220_v57, %v1219_v58 }
 0x89b   :  { %v1236_v61 = vld [vmem:[#allocation2 + $0x8] sm:$0xff] }
 0x89c   :  { %vm1222_vm9 = vcmp.ge.f32.partialorder %v1221_v59, 0.75  ;;  %v1238_v62 = vpack.c.bf16 %v1236_v61, %v1235_v60 }
 0x89d   :  { %v1679_v63 = vsel %vm1222_vm9, 1.0, %v1910_v4 }
 0x89e   :  { %v1225_v0 = vmul.f32 0.75, %v1679_v63  ;;  %1820 = vmatprep.mubr.msk.bf16.mxu0 %vm423_vm1, %v1238_v62  ;;  %1227 = vst.msk [vmem:[#allocation2 + $0x10] sm:$0x3] %vm435_vm2, %v1679_v63 }
 0x8a0   :  { %v1226_v1 = vsub.f32 %v1221_v59, %v1225_v0 }
 0x8a2   :  { %v1229_v2 = vmul.f32 0.5, %v1226_v1 }
 0x8a4   :  { %v1230_v5 = vadd.f32 %v1229_v2, %v1228_v3 }
 0x8a6   :  { %vm1231_vm5 = vcmp.ge.f32.partialorder %v1230_v5, 0.75 }
 0x8a7   :  { %v1680_v6 = vsel %vm1231_vm5, 1.0, %v1910_v4 }
 0x8a8   :  { %1234 = vst.msk [vmem:[#allocation2 + $0x12] sm:$0x3] %vm435_vm2, %v1680_v6 }
 0x8af   :  { %v1237_v7 = vld [vmem:[#allocation2 + $0x10] sm:$0xf] }
 0x8b0   :  { %v1239_v8 = vpack.c.bf16 %v1237_v7, %v1237_v7 }
 0x8b2   :  { %1821 = vmatmul.mubr.msk.bf16.vlgmr.msra.gmra.mrb[12].mxu0 %vm423_vm1, %v1239_v8 }
 0x985   :  { %v1822_v15 = vpop.f32.mrb[12].mxu0 }
 0x986   :  { %1328 = vst.msk [vmem:[#allocation2 + $0x10] sm:$0xf] %vm226_vm13, %v1822_v15  ;;  %v1312_v16 = vpop.f32.mrb[13].mxu0 }
 0x987   :  { %1326 = vst.msk [vmem:[#allocation2] sm:$0xff] %vm223_vm14, %v1312_v16  ;;  %v1823_v17 = vpop.f32.mrb[14].mxu0 }
 0x988   :  { %v1315_v18 = vpop.f32.mrb[15].mxu0 }
 0x989   :  { %1327 = vst.msk [vmem:[#allocation2 + $0x8] sm:$0xff] %vm223_vm14, %v1315_v18 }
 0x98d   :  { %v1400_v2 = vld [vmem:[#allocation2 + $0x10] sm:$0x3]  ;;  %v1409_v12 = vld [vmem:[#allocation2 + $0x12] sm:$0x3] }
 0x98e   :  { %v1329_v19 = vld [vmem:[#allocation2] sm:$0x3]  ;;  %v1337_v24 = vld [vmem:[#allocation2 + $0x2] sm:$0x3]  ;;  %v1346_v30 = vld [vmem:[#allocation2 + $0x4] sm:$0x3] }
 0x98f   :  { %vm1331_vm1 = vcmp.ge.f32.partialorder %v1329_v19, 0.75  ;;  %v1355_v36 = vld [vmem:[#allocation2 + $0x6] sm:$0x3] }
 0x990   :  { %v1687_v20 = vsel %vm1331_vm1, 1.0, %v1910_v4  ;;  %v1364_v42 = vld [vmem:[#allocation2 + $0x8] sm:$0x3]  ;;  %v1373_v48 = vld [vmem:[#allocation2 + $0xa] sm:$0x3] }
 0x991   :  { %v1334_v21 = vmul.f32 0.75, %v1687_v20  ;;  %1336 = vst.msk [vmem:[#allocation2] sm:$0x3] %vm235_vm15, %v1687_v20  ;;  %v1382_v54 = vld [vmem:[#allocation2 + $0xc] sm:$0x3] }
 0x992   :  { %v1391_v60 = vld [vmem:[#allocation2 + $0xe] sm:$0x3] }
 0x993   :  { %v1335_v22 = vsub.f32 %v1329_v19, %v1334_v21 }
 0x995   :  { %v1338_v23 = vmul.f32 0.5, %v1335_v22 }
 0x997   :  { %v1339_v25 = vadd.f32 %v1338_v23, %v1337_v24 }
 0x999   :  { %vm1340_vm2 = vcmp.ge.f32.partialorder %v1339_v25, 0.75 }
 0x99a   :  { %v1688_v26 = vsel %vm1340_vm2, 1.0, %v1910_v4 }
 0x99b   :  { %v1343_v27 = vmul.f32 0.75, %v1688_v26  ;;  %1345 = vst.msk [vmem:[#allocation2 + $0x2] sm:$0x3] %vm235_vm15, %v1688_v26 }
 0x99d   :  { %v1344_v28 = vsub.f32 %v1339_v25, %v1343_v27 }
 0x99f   :  { %v1347_v29 = vmul.f32 0.5, %v1344_v28 }
 0x9a1   :  { %v1348_v31 = vadd.f32 %v1347_v29, %v1346_v30 }
 0x9a3   :  { %vm1349_vm13 = vcmp.ge.f32.partialorder %v1348_v31, 0.75 }
 0x9a4   :  { %v1689_v32 = vsel %vm1349_vm13, 1.0, %v1910_v4 }
 0x9a5   :  { %v1352_v33 = vmul.f32 0.75, %v1689_v32  ;;  %1354 = vst.msk [vmem:[#allocation2 + $0x4] sm:$0x3] %vm235_vm15, %v1689_v32 }
 0x9a7   :  { %v1353_v34 = vsub.f32 %v1348_v31, %v1352_v33 }
 0x9a9   :  { %v1356_v35 = vmul.f32 0.5, %v1353_v34 }
 0x9ab   :  { %v1357_v37 = vadd.f32 %v1356_v35, %v1355_v36 }
 0x9ad   :  { %vm1358_vm6 = vcmp.ge.f32.partialorder %v1357_v37, 0.75 }
 0x9ae   :  { %v1690_v38 = vsel %vm1358_vm6, 1.0, %v1910_v4 }
 0x9af   :  { %v1361_v39 = vmul.f32 0.75, %v1690_v38  ;;  %1363 = vst.msk [vmem:[#allocation2 + $0x6] sm:$0x3] %vm235_vm15, %v1690_v38 }
 0x9b1   :  { %v1362_v40 = vsub.f32 %v1357_v37, %v1361_v39 }
 0x9b3   :  { %v1365_v41 = vmul.f32 0.5, %v1362_v40 }
 0x9b5   :  { %v1366_v43 = vadd.f32 %v1365_v41, %v1364_v42 }
 0x9b6   :  { %v1416_v5 = vld [vmem:[#allocation2] sm:$0xff] }
 0x9b7   :  { %vm1367_vm7 = vcmp.ge.f32.partialorder %v1366_v43, 0.75 }
 0x9b8   :  { %v1691_v44 = vsel %vm1367_vm7, 1.0, %v1910_v4 }
 0x9b9   :  { %v1370_v45 = vmul.f32 0.75, %v1691_v44  ;;  %1372 = vst.msk [vmem:[#allocation2 + $0x8] sm:$0x3] %vm235_vm15, %v1691_v44 }
 0x9bb   :  { %v1371_v46 = vsub.f32 %v1366_v43, %v1370_v45 }
 0x9bd   :  { %v1374_v47 = vmul.f32 0.5, %v1371_v46 }
 0x9bf   :  { %v1375_v49 = vadd.f32 %v1374_v47, %v1373_v48 }
 0x9c1   :  { %vm1376_vm12 = vcmp.ge.f32.partialorder %v1375_v49, 0.75 }
 0x9c2   :  { %v1692_v50 = vsel %vm1376_vm12, 1.0, %v1910_v4 }
 0x9c3   :  { %v1379_v51 = vmul.f32 0.75, %v1692_v50  ;;  %1381 = vst.msk [vmem:[#allocation2 + $0xa] sm:$0x3] %vm235_vm15, %v1692_v50 }
 0x9c5   :  { %v1380_v52 = vsub.f32 %v1375_v49, %v1379_v51 }
 0x9c7   :  { %v1383_v53 = vmul.f32 0.5, %v1380_v52 }
 0x9c9   :  { %v1384_v55 = vadd.f32 %v1383_v53, %v1382_v54 }
 0x9cb   :  { %vm1385_vm3 = vcmp.ge.f32.partialorder %v1384_v55, 0.75 }
 0x9cc   :  { %v1693_v56 = vsel %vm1385_vm3, 1.0, %v1910_v4 }
 0x9cd   :  { %v1388_v57 = vmul.f32 0.75, %v1693_v56  ;;  %1390 = vst.msk [vmem:[#allocation2 + $0xc] sm:$0x3] %vm235_vm15, %v1693_v56 }
 0x9cf   :  { %v1389_v58 = vsub.f32 %v1384_v55, %v1388_v57 }
 0x9d1   :  { %v1392_v59 = vmul.f32 0.5, %v1389_v58 }
 0x9d3   :  { %v1393_v61 = vadd.f32 %v1392_v59, %v1391_v60 }
 0x9d5   :  { %vm1394_vm0 = vcmp.ge.f32.partialorder %v1393_v61, 0.75 }
 0x9d6   :  { %v1694_v62 = vsel %vm1394_vm0, 1.0, %v1910_v4 }
 0x9d7   :  { %v1397_v63 = vmul.f32 0.75, %v1694_v62  ;;  %1399 = vst.msk [vmem:[#allocation2 + $0xe] sm:$0x3] %vm235_vm15, %v1694_v62 }
 0x9d9   :  { %v1398_v0 = vsub.f32 %v1393_v61, %v1397_v63 }
 0x9db   :  { %v1401_v1 = vmul.f32 0.5, %v1398_v0 }
 0x9dd   :  { %v1402_v3 = vadd.f32 %v1401_v1, %v1400_v2 }
 0x9de   :  { %v1417_v6 = vld [vmem:[#allocation2 + $0x8] sm:$0xff] }
 0x9df   :  { %vm1403_vm4 = vcmp.ge.f32.partialorder %v1402_v3, 0.75  ;;  %v1419_v7 = vpack.c.bf16 %v1417_v6, %v1416_v5 }
 0x9e0   :  { %v1695_v8 = vsel %vm1403_vm4, 1.0, %v1910_v4 }
 0x9e1   :  { %v1406_v9 = vmul.f32 0.75, %v1695_v8  ;;  %1836 = vmatprep.mubr.msk.bf16.mxu1 %vm223_vm14, %v1419_v7  ;;  %1408 = vst.msk [vmem:[#allocation2 + $0x10] sm:$0x3] %vm235_vm15, %v1695_v8 }
 0x9e3   :  { %v1407_v10 = vsub.f32 %v1402_v3, %v1406_v9 }
 0x9e5   :  { %v1410_v11 = vmul.f32 0.5, %v1407_v10 }
 0x9e7   :  { %v1411_v13 = vadd.f32 %v1410_v11, %v1409_v12 }
 0x9e9   :  { %vm1412_vm11 = vcmp.ge.f32.partialorder %v1411_v13, 0.75 }
 0x9ea   :  { %v1696_v14 = vsel %vm1412_vm11, 1.0, %v1910_v4 }
 0x9eb   :  { %1415 = vst.msk [vmem:[#allocation2 + $0x12] sm:$0x3] %vm235_vm15, %v1696_v14  ;;  %vm2324_vm15 = vcmask 402432  }
 0x9f2   :  { %v1418_v15 = vld [vmem:[#allocation2 + $0x10] sm:$0xf] }
 0x9f3   :  { %v1420_v16 = vpack.c.bf16 %v1418_v15, %v1418_v15 }
 0x9f5   :  { %1837 = vmatmul.mubr.msk.bf16.vlgmr.msra.gmra.mrb[12].mxu1 %vm223_vm14, %v1420_v16  ;;  %vm2325_vm14 = vmmov %vm2324_vm15 }
 0x9f6   :  { %vm2326_vm9 = vmmov %vm2325_vm14 }
 0x9f7   :  { %vm2327_vm5 = vmmov %vm2326_vm9 }
 0x9f8   :  { %vm2328_vm1 = vmmov %vm2327_vm5 }
 0x9f9   :  { %vm2329_vm2 = vmmov %vm2328_vm1 }
 0x9fa   :  { %vm2331_vm13 = vmmov %vm2328_vm1 }
 0x9fb   :  { %vm2332_vm6 = vmmov %vm2328_vm1 }
 0x9fc   :  { %vm2333_vm7 = vmmov %vm2328_vm1 }
 0xac8   :  { %v1838_v17 = vpop.f32.mrb[12].mxu1 }
 0xac9   :  { %v1509_v18 = vpop.f32.mrb[13].mxu1  ;;  %1526 = vst.msk [vmem:[#allocation2 + $0x10] sm:$0xf] %vm1525_vm8, %v1838_v17 }
 0xaca   :  { %1523 = vst.msk [vmem:[#allocation2] sm:$0xff] %vm164_vm10, %v1509_v18  ;;  %v1839_v19 = vpop.f32.mrb[14].mxu1 }
 0xacb   :  { %v1512_v20 = vpop.f32.mrb[15].mxu1 }
 0xacc   :  { %1524 = vst.msk [vmem:[#allocation2 + $0x8] sm:$0xff] %vm164_vm10, %v1512_v20  ;;  %vm2330_vm10 = vmmov %vm2328_vm1 }
 0xad0   :  { %v1550_v21 = vld [vmem:[#allocation2 + $0x10] sm:$0x3]  ;;  %v1553_v22 = vld [vmem:[#allocation2 + $0x12] sm:$0x3] }
 0xad1   :  { %v1527_v4 = vld [vmem:[#allocation2] sm:$0x3]  ;;  %v1529_v23 = vld [vmem:[#allocation2 + $0x2] sm:$0x3]  ;;  %v1532_v24 = vld [vmem:[#allocation2 + $0x4] sm:$0x3] }
 0xad2   :  { %1552 = vst.msk [vmem:[#allocation3 + $0x10] sm:$0x3] %vm2324_vm15, %v1550_v21  ;;  %v1535_v25 = vld [vmem:[#allocation2 + $0x6] sm:$0x3] }
 0xad3   :  { %1555 = vst.msk [vmem:[#allocation3 + $0x12] sm:$0x3] %vm2325_vm14, %v1553_v22  ;;  %v1538_v26 = vld [vmem:[#allocation2 + $0x8] sm:$0x3]  ;;  %v1541_v27 = vld [vmem:[#allocation2 + $0xa] sm:$0x3] }
 0xad4   :  { %1528 = vst.msk [vmem:[#allocation3] sm:$0x3] %vm2326_vm9, %v1527_v4  ;;  %v1544_v28 = vld [vmem:[#allocation2 + $0xc] sm:$0x3]  ;;  %v1547_v29 = vld [vmem:[#allocation2 + $0xe] sm:$0x3] }
 0xad5   :  { %1531 = vst.msk [vmem:[#allocation3 + $0x2] sm:$0x3] %vm2327_vm5, %v1529_v23 }
 0xad6   :  { %1534 = vst.msk [vmem:[#allocation3 + $0x4] sm:$0x3] %vm2328_vm1, %v1532_v24 }
 0xad7   :  { %1537 = vst.msk [vmem:[#allocation3 + $0x6] sm:$0x3] %vm2329_vm2, %v1535_v25 }
 0xad8   :  { %1540 = vst.msk [vmem:[#allocation3 + $0x8] sm:$0x3] %vm2330_vm10, %v1538_v26 }
 0xad9   :  { %1543 = vst.msk [vmem:[#allocation3 + $0xa] sm:$0x3] %vm2331_vm13, %v1541_v27 }
 0xada   :  { %1546 = vst.msk [vmem:[#allocation3 + $0xc] sm:$0x3] %vm2332_vm6, %v1544_v28 }
 0xadb   :  { %1549 = vst.msk [vmem:[#allocation3 + $0xe] sm:$0x3] %vm2333_vm7, %v1547_v29 }
 0xadc   :  { %1897 = shalt.err (!%p1894_p4)
}
 0xadd   :  { %s1898_s14 = scalar_lea.hbm %s2322_s9, 320 }
 0xade   :  { %p1899_p5 = scmp.ne.s32.totalorder %s2322_s9, %s1898_s14  ;;  %p1902_p6 = scmp.lt.u32.totalorder %s1898_s14, %s2322_s9 }
 0xae0   :  { %p1904_p7 = pnand %p1902_p6, %p1899_p5 }
 0xae2   :  { %1907 = shalt.err (!%p1904_p7)
}
 0xae3   :  { %s1912_s6 = smov 32   ;;  %s1913_s18 = smov 2  }
 0xae4   :  { %1567 = dma.vmem_to_hbm [thread:$0]  %s1562_s11, 320, %s2322_s9, [#allocation4], %s1912_s6, %s1912_s6, %s1913_s18  }
 0xae5   :  { %1908 = dma.done.wait [#allocation4], 320  }
 0xae6   :  { %1909 = vsyncadd [#allocation4], 4294966976 }
 0xae7   :  { %1571 = vsyncpa [#allocation4], 1 }

</bundles_post_ra>
